<compile_context>
chip_gen: v7x
topology: tpu7x:2x2x1
jax: 0.10.0
libtpu: 0.0.40
codegen_flags: <defaults>
</compile_context>

<pallas_src>
import functools

import jax
import jax.numpy as jnp
from jax.experimental import pallas as pl
from jax.experimental.pallas import tpu as pltpu


def _round_up(x, m):
    return (x + m - 1) // m * m


# ----------------------------------------------------------------------------
# Pallas kernel: neighbor-packed fused MLP (conv0+BN+ReLU -> conv1+BN+ReLU ->
# conv2+BN+ReLU) with a max-reduction over the nsample axis.
# ----------------------------------------------------------------------------
def _mlp_max_kernel(x_ref, w0_ref, w1_ref, w2_ref, b_ref, out_ref):
    # x_ref : (n_slabs, tile, pack*D) bf16 -- neighbor-packed grouped features
    # w*_ref: block-diagonal fused conv+BN weights, bf16
    # b_ref : (3, BW) f32 packed, lane-tiled biases
    # out   : (tile, out_w) f32 lane-dense block (out_w = 128 for C2=64, pack>=2)
    n_slabs, tile, kd = x_ref.shape
    n0 = w0_ref.shape[1]
    n1 = w1_ref.shape[1]
    n2 = w2_ref.shape[1]

    b = b_ref[...]                       # f32
    b0 = b[0:1, :n0]
    b1 = b[1:2, :n1]
    b2 = b[2:3, :n2]

    # Fold the neighbor-slab axis into the matmul M dimension.  `tile` is a
    # multiple of 8 and the minor dim is unchanged, so this reshape is
    # layout-free (no relayout, no copy).
    x = x_ref[...].reshape(n_slabs * tile, kd)

    h = jnp.dot(x, w0_ref[...], preferred_element_type=jnp.float32) + b0
    h = jnp.maximum(h, 0.0)
    h = jnp.dot(h.astype(w1_ref.dtype), w1_ref[...],
                preferred_element_type=jnp.float32) + b1
    h = jnp.maximum(h, 0.0)
    h = jnp.dot(h.astype(w2_ref.dtype), w2_ref[...],
                preferred_element_type=jnp.float32) + b2
    h = jnp.maximum(h, 0.0)              # (n_slabs*tile, pack*C2) f32

    # Max over the neighbor slabs: sublane-aligned static slices, VPU only.
    red = h[0:tile]
    for s in range(1, n_slabs):
        red = jnp.maximum(red, h[s * tile:(s + 1) * tile])

    # Tree-reduce the packed neighbor lane-groups down to the (lane-dense)
    # output width; all slice boundaries are multiples of 128.
    out_w = out_ref.shape[1]
    width = n2
    while width > out_w:
        half = width // 2
        red = jnp.maximum(red[:, :half], red[:, half:width])
        width = half
    out_ref[...] = red


def _choose_tile(bm, requested):
    bm_ceil = _round_up(max(bm, 1), 256)
    # Cap so the grid has >= 2 (ideally >= 4) steps -> megacore sharding on v7x
    # and DMA/compute pipelining everywhere, even at small row counts.
    cap = max(256, (bm_ceil // 4) // 256 * 256)
    req = max(256, _round_up(requested, 256))
    return min(req, cap)


def grouped_mlp_max(x, packed_params, tile=1024):
    """x: (nsample//pack, BM, pack*D) grouped features, slab-major, neighbor-packed."""
    w0, w1, w2, b_all, c2 = packed_params
    n_slabs, bm, kd = x.shape
    assert kd == w0.shape[0], (kd, w0.shape)
    pack = w2.shape[1] // c2

    tile = _choose_tile(bm, tile)
    bm_pad = _round_up(bm, tile)
    grid = (bm_pad // tile,)

    # Lane-dense output: stop the in-kernel lane-group reduce at >=128 lanes and
    # finish the (tiny) remaining cross-group max in the wrapper.
    out_w = c2 if pack * c2 < 128 else max(c2, 128)

    x = jnp.pad(x, ((0, 0), (0, bm_pad - bm), (0, 0))).astype(jnp.bfloat16)

    n0, n1, n2 = w0.shape[1], w1.shape[1], w2.shape[1]
    flops = 2 * n_slabs * bm_pad * (kd * n0 + n0 * n1 + n1 * n2)
    bytes_accessed = (x.size * 2 + bm_pad * out_w * 4
                      + (w0.size + w1.size + w2.size) * 2 + b_all.size * 4)

    grid_spec = pltpu.PrefetchScalarGridSpec(
        num_scalar_prefetch=0,
        grid=grid,
        in_specs=[
            pl.BlockSpec((n_slabs, tile, kd), lambda i: (0, i, 0)),
            pl.BlockSpec(w0.shape, lambda i: (0, 0)),      # resident weights
            pl.BlockSpec(w1.shape, lambda i: (0, 0)),
            pl.BlockSpec(w2.shape, lambda i: (0, 0)),
            pl.BlockSpec(b_all.shape, lambda i: (0, 0)),   # packed biases
        ],
        out_specs=pl.BlockSpec((tile, out_w), lambda i: (i, 0)),
    )
    out = pl.pallas_call(
        _mlp_max_kernel,
        out_shape=jax.ShapeDtypeStruct((bm_pad, out_w), jnp.float32),
        grid_spec=grid_spec,
        compiler_params=pltpu.CompilerParams(
            dimension_semantics=("parallel",),
            vmem_limit_bytes=64 * 1024 * 1024),
        cost_estimate=pl.CostEstimate(
            flops=int(flops), transcendentals=0,
            bytes_accessed=int(bytes_accessed)),
    )(x, w0, w1, w2, b_all)

    out = out[:bm]
    if out_w > c2:
        out = jnp.max(out.reshape(bm, out_w // c2, c2), axis=1)
    return out


def _default_pack(nsample):
    cap = 8
    try:
        kind = jax.devices()[0].device_kind.lower()
        if "v5" in kind or "v4" in kind:   # 128-wide MXU generations
            cap = 4
    except Exception:
        pass
    pack = 1
    while pack * 2 <= cap and nsample % (pack * 2) == 0:
        pack *= 2
    return pack


# ----------------------------------------------------------------------------
# Plain-JAX glue reproducing the pointops sampling/grouping semantics.
# ----------------------------------------------------------------------------
def _fps_single(xyz, npoint):
    n = xyz.shape[0]

    def body(i, state):
        dists, idxs, last = state
        d = jnp.sum((xyz - xyz[last]) ** 2, axis=-1)
        dists = jnp.minimum(dists, d)
        nxt = jnp.argmax(dists).astype(jnp.int32)
        idxs = idxs.at[i].set(nxt)
        return dists, idxs, nxt

    dists = jnp.full((n,), 1e10, jnp.float32)
    idxs = jnp.zeros((npoint,), jnp.int32)
    _, idxs, _ = jax.lax.fori_loop(1, npoint, body, (dists, idxs, jnp.int32(0)))
    return idxs


def farthest_point_sample(xyz, npoint):
    return jax.vmap(functools.partial(_fps_single, npoint=npoint))(xyz)


def query_ball_point(radius, nsample, xyz, new_xyz):
    n = xyz.shape[1]
    sqd = jnp.sum((new_xyz[:, :, None, :] - xyz[:, None, :, :]) ** 2, axis=-1)
    in_ball = sqd < radius * radius
    cand = jnp.where(in_ball, jnp.arange(n)[None, None, :], n)
    cand = jnp.sort(cand, axis=-1)[:, :, :nsample]
    first = cand[:, :, :1]
    idx = jnp.where(cand == n, first, cand)
    idx = jnp.where(idx == n, 0, idx)
    return idx.astype(jnp.int32)


def _gather_points(points, idx):
    # points: (B, N, C), idx: (B, ...) -> (B, ..., C)
    return jax.vmap(lambda p, i: p[i])(points, idx)


def sample_and_group_packed(npoint, radius, nsample, pack, center, normal, feature):
    """Grouping that directly emits the kernel layout
    (nsample//pack, B*npoint, pack*D): slab-major, neighbor-packed channels.
    No transpose of the large grouped tensor is needed."""
    B = center.shape[0]
    fps_idx = farthest_point_sample(center, npoint)               # (B, M)
    new_center = _gather_points(center, fps_idx)                  # (B, M, 3)
    new_normal = _gather_points(normal, fps_idx)                  # (B, M, 3)
    idx = query_ball_point(radius, nsample, center, new_center)   # (B, M, S)

    # Reorder only the (small) index tensor; the big gather then lands in the
    # kernel layout for free.
    idx_p = idx.reshape(B, npoint, nsample // pack, pack)
    idx_p = jnp.transpose(idx_p, (2, 0, 1, 3))                    # (S/P, B, M, P)

    def gather_b(points):
        # points: (B, N, C), idx_p batch axis at 1 -> (S/P, B, M, P, C)
        return jax.vmap(lambda p, i: p[i], in_axes=(0, 1), out_axes=1)(points, idx_p)

    g_center = gather_b(center) - new_center[None, :, :, None, :]
    g_normal = gather_b(normal)
    g_feature = gather_b(feature)
    grouped = jnp.concatenate([g_center, g_normal, g_feature], axis=-1)
    d = grouped.shape[-1]
    grouped = grouped.reshape(nsample // pack, B * npoint, pack * d)
    return new_center, new_normal, grouped


# ----------------------------------------------------------------------------
# Parameter init (deterministic, BN fused into 1x1-conv weight/bias) + packing
# into the kernel layout (fused first layer, block-diagonal neighbor packing,
# lane-tiled biases, bf16 weights).
# ----------------------------------------------------------------------------
def _conv_bn_fused(key, cin, cout, eps=1e-5):
    kw, kb, kg, kbt, km, kv = jax.random.split(key, 6)
    w = 0.1 * jax.random.normal(kw, (cin, cout), jnp.float32)
    b = 0.1 * jax.random.normal(kb, (cout,), jnp.float32)
    gamma = 1.0 + 0.1 * jax.random.normal(kg, (cout,), jnp.float32)
    beta = 0.1 * jax.random.normal(kbt, (cout,), jnp.float32)
    mean = 0.1 * jax.random.normal(km, (cout,), jnp.float32)
    var = 1.0 + jnp.abs(jax.random.normal(kv, (cout,), jnp.float32))
    scale = gamma * jax.lax.rsqrt(var + eps)
    return w * scale[None, :], ((b - mean) * scale + beta).reshape(1, cout)


def init_params(key, pos_channel, feat_channel, mlp):
    k_l0, k_f0, k_1, k_2 = jax.random.split(key, 4)
    wl, bl = _conv_bn_fused(k_l0, pos_channel, mlp[0])   # mlp_l0 + bn_l0
    wf, bf = _conv_bn_fused(k_f0, feat_channel, mlp[0])  # mlp_f0 + bn_f0
    w1, b1 = _conv_bn_fused(k_1, mlp[0], mlp[1])         # mlp_convs[0] + mlp_bns[0]
    w2, b2 = _conv_bn_fused(k_2, mlp[1], mlp[2])         # mlp_convs[1] + mlp_bns[1]
    return (wl, bl, wf, bf, w1, b1, w2, b2)


def pack_params(params, pack, lane=128):
    """Fuse pos/feat first layers, build block-diagonal neighbor-packed weights."""
    wl, bl, wf, bf, w1, b1, w2, b2 = params
    w0 = jnp.concatenate([wl, wf], axis=0)               # (D, C0)
    b0 = (bl + bf).reshape(-1)
    c2 = w2.shape[1]

    eye = jnp.eye(pack, dtype=jnp.float32)
    w0_bd = jnp.kron(eye, w0)                            # (P*D,  P*C0)
    w1_bd = jnp.kron(eye, w1)                            # (P*C0, P*C1)
    w2_bd = jnp.kron(eye, w2)                            # (P*C1, P*C2)

    b0_t = jnp.tile(b0, pack)
    b1_t = jnp.tile(b1.reshape(-1), pack)
    b2_t = jnp.tile(b2.reshape(-1), pack)
    width = _round_up(max(b0_t.size, b1_t.size, b2_t.size, lane), lane)

    def pad(b):
        return jnp.pad(b, (0, width - b.size))

    b_all = jnp.stack([pad(b0_t), pad(b1_t), pad(b2_t)]).astype(jnp.float32)
    return (w0_bd.astype(jnp.bfloat16), w1_bd.astype(jnp.bfloat16),
            w2_bd.astype(jnp.bfloat16), b_all, c2)


# ----------------------------------------------------------------------------
# Full module forward (grouping + local encoder stage).
# ----------------------------------------------------------------------------
def surface_abstraction_forward(center, normal, feature, packed_params,
                                npoint, radius, nsample, pack, tile=1024):
    feature_nlc = jnp.transpose(feature, (0, 2, 1))       # (B, C, N) -> (B, N, C)
    new_center, new_normal, grouped = sample_and_group_packed(
        npoint, radius, nsample, pack, center, normal, feature_nlc)
    B = center.shape[0]
    out = grouped_mlp_max(grouped, packed_params, tile=tile)      # (B*npoint, C2)
    new_feature_out = jnp.transpose(out.reshape(B, npoint, -1), (0, 2, 1))
    new_center_out = jnp.transpose(new_center, (0, 2, 1))
    new_normal_out = jnp.transpose(new_normal, (0, 2, 1))
    return new_center_out, new_normal_out, new_feature_out


# ----------------------------------------------------------------------------
# Pure-JAX reference for the Pallas hot path.
# ----------------------------------------------------------------------------
def _unpack_grouped(grouped, pack):
    s_slab, bm, pd = grouped.shape
    d = pd // pack
    x = grouped.reshape(s_slab, bm, pack, d)
    return jnp.transpose(x, (1, 0, 2, 3)).reshape(bm, s_slab * pack, d)


def _mlp_reference(x, params, pos_channel):
    wl, bl, wf, bf, w1, b1, w2, b2 = params
    xp = x[..., :pos_channel]
    xf = x[..., pos_channel:]
    h = jnp.maximum((xp @ wl + bl) + (xf @ wf + bf), 0.0)
    h = jnp.maximum(h @ w1 + b1, 0.0)
    h = jnp.maximum(h @ w2 + b2, 0.0)
    return jnp.max(h, axis=1)


if __name__ == "__main__":
    key = jax.random.PRNGKey(0)
    kc, kn, kf, kp = jax.random.split(key, 4)

    # Small, module-consistent shapes (B*npoint = 512 rows -> 2-step grid).
    B, N = 4, 256
    npoint, radius, nsample = 128, 0.4, 16
    C_feat = 4                       # raw per-point feature channels
    pos_channel = 3                  # group_center_norm
    feat_channel = 3 + C_feat        # group_normal (3) + grouped feature
    mlp = [32, 32, 64]

    center = jax.random.uniform(kc, (B, N, 3), jnp.float32)
    normal = jax.random.normal(kn, (B, N, 3), jnp.float32)
    feature = jax.random.normal(kf, (B, C_feat, N), jnp.float32)   # torch (B, C, N)

    pack = _default_pack(nsample)    # 8 on v6e/v7x, 4 on v5e/v4
    params = init_params(kp, pos_channel, feat_channel, mlp)
    kparams = pack_params(params, pack)

    new_center, new_normal, new_feature = jax.block_until_ready(
        surface_abstraction_forward(center, normal, feature, kparams,
                                    npoint, radius, nsample, pack))

    assert new_center.shape == (B, 3, npoint)
    assert new_normal.shape == (B, 3, npoint)
    assert new_feature.shape == (B, mlp[-1], npoint)

    # Sanity check of the Pallas hot path against a pure-f32 JAX reference
    # (bf16 matmul inputs -> looser tolerance).
    feat_nlc = jnp.transpose(feature, (0, 2, 1))
    _, _, grouped = sample_and_group_packed(npoint, radius, nsample, pack,
                                            center, normal, feat_nlc)
    ref_x = _unpack_grouped(grouped, pack)                 # (BM, S, D) f32
    ref = _mlp_reference(ref_x, params, pos_channel)
    got = jax.block_until_ready(grouped_mlp_max(grouped, kparams))
    max_err = float(jnp.max(jnp.abs(got - ref)))
    assert jnp.allclose(got, ref, rtol=2e-2, atol=2e-2), f"max abs err {max_err}"

    print("KERNEL_OK")
</pallas_src>

<mosaic_0001>
module attributes {stable_mosaic.version = 11 : i64} {
  func.func @_mlp_max_kernel(%arg0: i32, %arg1: memref<2x256x80xbf16, #tpu.memory_space<vmem>>, %arg2: memref<80x256xbf16, #tpu.memory_space<vmem>>, %arg3: memref<256x256xbf16, #tpu.memory_space<vmem>>, %arg4: memref<256x512xbf16, #tpu.memory_space<vmem>>, %arg5: memref<3x512xf32, #tpu.memory_space<vmem>>, %arg6: memref<256x128xf32, #tpu.memory_space<vmem>>) attributes {dimension_semantics = [#tpu.dimension_semantics<parallel>], iteration_bounds = array<i64: 2>, scalar_prefetch = 0 : i64, scratch_operands = 0 : i64, tpu.core_type = #tpu.core_type<tc>, window_params = [{transform_indices = @transform_0, window_bounds = array<i64: 2, 256, 80>}, {pipeline_mode = #tpu.pipeline_mode<synchronous>, transform_indices = @transform_1, window_bounds = array<i64: 80, 256>}, {pipeline_mode = #tpu.pipeline_mode<synchronous>, transform_indices = @transform_2, window_bounds = array<i64: 256, 256>}, {pipeline_mode = #tpu.pipeline_mode<synchronous>, transform_indices = @transform_3, window_bounds = array<i64: 256, 512>}, {pipeline_mode = #tpu.pipeline_mode<synchronous>, transform_indices = @transform_4, window_bounds = array<i64: 3, 512>}, {transform_indices = @transform_5, window_bounds = array<i64: 256, 128>}]} {
    %c0 = arith.constant 0 : index
    %c0_0 = arith.constant 0 : index
    %0 = vector.load %arg5[%c0, %c0_0] : memref<3x512xf32, #tpu.memory_space<vmem>>, vector<3x512xf32>
    %1 = vector.extract_strided_slice %0 {offsets = [0, 0], sizes = [1, 256], strides = [1, 1]} : vector<3x512xf32> to vector<1x256xf32>
    %2 = vector.extract_strided_slice %0 {offsets = [1, 0], sizes = [1, 256], strides = [1, 1]} : vector<3x512xf32> to vector<1x256xf32>
    %3 = vector.extract_strided_slice %0 {offsets = [2, 0], sizes = [1, 512], strides = [1, 1]} : vector<3x512xf32> to vector<1x512xf32>
    %c0_1 = arith.constant 0 : index
    %c0_2 = arith.constant 0 : index
    %c0_3 = arith.constant 0 : index
    %4 = vector.load %arg1[%c0_1, %c0_2, %c0_3] : memref<2x256x80xbf16, #tpu.memory_space<vmem>>, vector<2x256x80xbf16>
    %5 = vector.shape_cast %4 : vector<2x256x80xbf16> to vector<512x80xbf16>
    %c0_4 = arith.constant 0 : index
    %c0_5 = arith.constant 0 : index
    %6 = vector.load %arg2[%c0_4, %c0_5] : memref<80x256xbf16, #tpu.memory_space<vmem>>, vector<80x256xbf16>
    %cst = arith.constant dense<0.000000e+00> : vector<512x256xf32>
    %7 = tpu.matmul %5, %6, %cst {dimension_numbers = #tpu.dot_dimension_numbers<[1], [0], [0], [1], [0, 0, 1, 1], [], []>} : vector<512x80xbf16>, vector<80x256xbf16>, vector<512x256xf32> -> vector<512x256xf32>
    %8 = vector.broadcast %1 : vector<1x256xf32> to vector<512x256xf32>
    %9 = arith.addf %7, %8 : vector<512x256xf32>
    %cst_6 = arith.constant 0.000000e+00 : f32
    %10 = vector.broadcast %cst_6 : f32 to vector<512x256xf32>
    %11 = arith.maximumf %9, %10 : vector<512x256xf32>
    %12 = arith.truncf %11 : vector<512x256xf32> to vector<512x256xbf16>
    %c0_7 = arith.constant 0 : index
    %c0_8 = arith.constant 0 : index
    %13 = vector.load %arg3[%c0_7, %c0_8] : memref<256x256xbf16, #tpu.memory_space<vmem>>, vector<256x256xbf16>
    %cst_9 = arith.constant dense<0.000000e+00> : vector<512x256xf32>
    %14 = tpu.matmul %12, %13, %cst_9 {dimension_numbers = #tpu.dot_dimension_numbers<[1], [0], [0], [1], [0, 0, 1, 1], [], []>} : vector<512x256xbf16>, vector<256x256xbf16>, vector<512x256xf32> -> vector<512x256xf32>
    %15 = vector.broadcast %2 : vector<1x256xf32> to vector<512x256xf32>
    %16 = arith.addf %14, %15 : vector<512x256xf32>
    %cst_10 = arith.constant 0.000000e+00 : f32
    %17 = vector.broadcast %cst_10 : f32 to vector<512x256xf32>
    %18 = arith.maximumf %16, %17 : vector<512x256xf32>
    %19 = arith.truncf %18 : vector<512x256xf32> to vector<512x256xbf16>
    %c0_11 = arith.constant 0 : index
    %c0_12 = arith.constant 0 : index
    %20 = vector.load %arg4[%c0_11, %c0_12] : memref<256x512xbf16, #tpu.memory_space<vmem>>, vector<256x512xbf16>
    %cst_13 = arith.constant dense<0.000000e+00> : vector<512x512xf32>
    %21 = tpu.matmul %19, %20, %cst_13 {dimension_numbers = #tpu.dot_dimension_numbers<[1], [0], [0], [1], [0, 0, 1, 1], [], []>} : vector<512x256xbf16>, vector<256x512xbf16>, vector<512x512xf32> -> vector<512x512xf32>
    %22 = vector.broadcast %3 : vector<1x512xf32> to vector<512x512xf32>
    %23 = arith.addf %21, %22 : vector<512x512xf32>
    %cst_14 = arith.constant 0.000000e+00 : f32
    %24 = vector.broadcast %cst_14 : f32 to vector<512x512xf32>
    %25 = arith.maximumf %23, %24 : vector<512x512xf32>
    %26 = vector.extract_strided_slice %25 {offsets = [0, 0], sizes = [256, 512], strides = [1, 1]} : vector<512x512xf32> to vector<256x512xf32>
    %27 = vector.extract_strided_slice %25 {offsets = [256, 0], sizes = [256, 512], strides = [1, 1]} : vector<512x512xf32> to vector<256x512xf32>
    %28 = arith.maximumf %26, %27 : vector<256x512xf32>
    %29 = vector.extract_strided_slice %28 {offsets = [0, 0], sizes = [256, 256], strides = [1, 1]} : vector<256x512xf32> to vector<256x256xf32>
    %30 = vector.extract_strided_slice %28 {offsets = [0, 256], sizes = [256, 256], strides = [1, 1]} : vector<256x512xf32> to vector<256x256xf32>
    %31 = arith.maximumf %29, %30 : vector<256x256xf32>
    %32 = vector.extract_strided_slice %31 {offsets = [0, 0], sizes = [256, 128], strides = [1, 1]} : vector<256x256xf32> to vector<256x128xf32>
    %33 = vector.extract_strided_slice %31 {offsets = [0, 128], sizes = [256, 128], strides = [1, 1]} : vector<256x256xf32> to vector<256x128xf32>
    %34 = arith.maximumf %32, %33 : vector<256x128xf32>
    %c0_15 = arith.constant 0 : index
    %c0_16 = arith.constant 0 : index
    %35 = vector.load %arg6[%c0_15, %c0_16] : memref<256x128xf32, #tpu.memory_space<vmem>>, vector<256x128xf32>
    tpu.vector_store %arg6[%c0_15, %c0_16], %34 {strides = array<i32>} : memref<256x128xf32, #tpu.memory_space<vmem>>, vector<256x128xf32>,
    return
  }
  func.func @transform_0(%arg0: i32) -> (i32, i32, i32) {
    %c0_i32 = arith.constant 0 : i32
    %c0_i32_0 = arith.constant 0 : i32
    %c0_i32_1 = arith.constant 0 : i32
    return %c0_i32, %arg0, %c0_i32_0 : i32, i32, i32
  }
  func.func @transform_1(%arg0: i32) -> (i32, i32) {
    %c0_i32 = arith.constant 0 : i32
    %c0_i32_0 = arith.constant 0 : i32
    %c0_i32_1 = arith.constant 0 : i32
    return %c0_i32, %c0_i32_0 : i32, i32
  }
  func.func @transform_2(%arg0: i32) -> (i32, i32) {
    %c0_i32 = arith.constant 0 : i32
    %c0_i32_0 = arith.constant 0 : i32
    %c0_i32_1 = arith.constant 0 : i32
    return %c0_i32, %c0_i32_0 : i32, i32
  }
  func.func @transform_3(%arg0: i32) -> (i32, i32) {
    %c0_i32 = arith.constant 0 : i32
    %c0_i32_0 = arith.constant 0 : i32
    %c0_i32_1 = arith.constant 0 : i32
    return %c0_i32, %c0_i32_0 : i32, i32
  }
  func.func @transform_4(%arg0: i32) -> (i32, i32) {
    %c0_i32 = arith.constant 0 : i32
    %c0_i32_0 = arith.constant 0 : i32
    %c0_i32_1 = arith.constant 0 : i32
    return %c0_i32, %c0_i32_0 : i32, i32
  }
  func.func @transform_5(%arg0: i32) -> (i32, i32) {
    %c0_i32 = arith.constant 0 : i32
    %c0_i32_0 = arith.constant 0 : i32
    return %arg0, %c0_i32 : i32, i32
  }
}

</mosaic_0001>

<bundles_post_ra>
// kernel: tpu_custom_call.1
= control target key start
LH: loop header
LB: loop body
LE: loop exit
PB: predicated region body
PF: predicated region fallthrough
CT: control target
= control target key end

     0   :  { %s6782_s0 = inlined_call_operand.hbm [shape: bf16[2,512,80], index: 0, kind: input, shape index: {}]   ;;  %s6783_s1 = inlined_call_operand.hbm [shape: bf16[80,256], index: 1, kind: input, shape index: {}]   ;;  %s6784_s2 = inlined_call_operand.hbm [shape: bf16[256,256], index: 2, kind: input, shape index: {}]   ;;  %s6785_s3 = inlined_call_operand.hbm [shape: bf16[256,512], index: 3, kind: input, shape index: {}]   ;;  %s6786_s4 = inlined_call_operand.hbm [shape: f32[3,512], index: 4, kind: input, shape index: {}]   ;;  %s6787_s5 = inlined_call_operand.hbm [shape: f32[512,128], index: 5, kind: output, shape index: {}]  }
   0x1   :  { %6893 = sst [smem:[#allocation121_spill]] %s6783_s1 }
   0x2   :  { %10 = vsyncpa [#allocation3], 0 }
   0x3   :  { %12 = vsyncpa [#allocation3 + $0x1], 0 }
   0x4   :  { %13 = vsyncpa [#allocation6], 0 }
   0x5   :  { %14 = vsyncpa [#allocation9], 0 }
   0x6   :  { %15 = vsyncpa [#allocation4], 0 }
   0x7   :  { %17 = vsyncpa [#allocation4 + $0x1], 0  ;;  %s4577_s18 = smov 0   ;;  %s4579_s19 = smov 0  }
   0x8   :  { %s4581_s20 = smov 0   ;;  %s4583_s21 = smov 0  }
   0x9 LB: > { %6894 = sst [smem:[#allocation19_spill]] %s4515_s18  ;;  %s4598_s22 = sadd.s32 4294967295, %s4527_s21   ;;  %s4527_s21 = sphi %s4583_s21, %s7324_s21   ;;  %s4523_s20 = sphi %s4581_s20, %s7328_s20   ;;  %s4519_s19 = sphi %s4579_s19, %s7327_s19   ;;  %s4515_s18 = sphi %s4577_s18, %s7326_s18  }
   0xa   : > { %s3793_s23 = sadd.s32 4294967294, %s4527_s21   ;;  %s4602_s24 = sadd.s32 1, %s4527_s21  }
   0xb   : > { %6895 = sst [smem:[#allocation20_spill]] %s4602_s24  ;;  %s30_s25 = sadd.s32 1, %s4523_s20 }
   0xc   : > { %s27_s26 = ssub.s32 %s4527_s21, %s4602_s24  ;;  %p37_p0 = scmp.ne.s32.totalorder %s4523_s20, %s4519_s19 }
   0xd   : > { %p28_p1 = scmp.eq.s32.totalorder %s27_s26, 0  ;;  %p38_p2 = scmp.eq.s32.totalorder %s4527_s21, 0 }
   0xe   : > { %p43_p3 = scmp.ne.s32.totalorder %s4519_s19, %s4515_s18  ;;  %p6788_p4 = scmp.eq.s32.totalorder %s4598_s22, 0 }
   0xf   : > { %s4614_s27 = scalar_select %p28_p1, %s4523_s20, %s30_s25  }
  0x10   : > { %p4616_p5 = por %p38_p2, %p37_p0  ;;  %p4622_p6 = por %p6788_p4, %p43_p3 }
  0x11   : > { %6896 = sst [smem:[#allocation21_spill]] %s4614_s27  ;;  %p151_p7 = scmp.eq.s32.totalorder %s4598_s22, 1 }
  0x12   : > { %s6897_s28 = scalar_select %p4616_p5, 1, 0 }
  0x13   : > { %s6898_s29 = scalar_select %p4622_p6, 1, 0 }
  0x14   : > { %p157_p8 = scmp.eq.s32.totalorder %s3793_s23, 1  ;;  %p3794_p9 = scmp.ge.s32.totalorder %s4527_s21, 1 }
  0x15   : > { %p164_p10 = scmp.lt.s32.totalorder %s4527_s21, 3  ;;  %p4629_p11 = por %p151_p7, %p37_p0 }
  0x16   : > { %p4633_p12 = por %p157_p8, %p43_p3  ;;  %s4529_s8 = smov [#allocation5]  }
  0x17   : > { %s6899_s30 = scalar_select %p4629_p11, 1, 0 }
  0x18   : > { %s6900_s6 = scalar_select %p4633_p12, 1, 0 }
  0x19   : > { %p4637_p13 = pnand %p3794_p9, %p164_p10  ;;  %s176_s9 = sshll.u32 %s4529_s8, 4  ;;  %s177_s9 = int_to_ptr.vmem [resolvable:$true] %s176_s9 }
  0x1a   : > { %6901 = sst [smem:[#allocation22_spill]] %s6900_s6  ;;  %s4530_s11 = smov [#allocation8]  }
  0x1b   : > { %s6902_s7 = scalar_select %p4637_p13, 1, 0 }
  0x1c   : > { %p4048_p1 = pneg %p4637_p13  ;;  %s202_s12 = sshll.u32 %s4530_s11, 4  ;;  %s4649_s12 = int_to_ptr.vmem [resolvable:$true] %s202_s12 }
  0x1d   : > { %s6904_s1 = sld [smem:[#allocation121_spill]] }
  0x1e   : > { %p4645_p2 = pnand %p4048_p1, %p6788_p4 }
  0x20   : > { %p4659_p3 = pneg %p4645_p2 }
  0x23   : > { %s4341_s15 = scalar_lea.hbm %s6904_s1, 1280 }
  0x24   : > { %p4342_p0 = scmp.ne.s32.totalorder %s6904_s1, %s4341_s15  ;;  %p4348_p9 = scmp.lt.u32.totalorder %s4341_s15, %s6904_s1 }
  0x26   : > { %p4344_p7 = pnand %p4659_p3, %p4342_p0 }
  0x28   : > { %p4345_p8 = pneg %p4344_p7 }
  0x2a   : > { %p4350_p10 = pnand %p4348_p9, %p4345_p8 }
  0x2c   : > { %4353 = shalt.err (!%p4350_p10)
}
  0x2d   : > { %s4354_s8 = scalar_lea.vmem %s177_s9, 1280  ;;  %p4362_p11 = scmp.lt.s32.totalorder %s177_s9, %s177_s9 }
  0x2e   : > { %p4355_p1 = scmp.ne.s32.totalorder %s177_s9, %s4354_s8  ;;  %p4363_p6 = scmp.lt.s32.totalorder %s4354_s8, %s4354_s8 }
  0x30   : > { %p4357_p4 = pnand %p4355_p1, %p4659_p3  ;;  %p4364_p13 = por %p4363_p6, %p4362_p11 }
  0x32   : > { %p4358_p12 = pneg %p4357_p4 }
  0x34   : > { %p4365_p5 = pnand %p4364_p13, %p4358_p12 }
  0x36   : > { %4368 = shalt.err (!%p4365_p5)
}
  0x37   : > { %s6795_s11 = smov 128   ;;  %s6796_s13 = smov 8  }
  0x38   : > { %4051 = dma.hbm_to_vmem [thread:$0]  (!%p4645_p2), %s6904_s1, 1280, %s177_s9, [#allocation6], %s6795_s11, %s6795_s11, %s6796_s13  }
  0x39   : > { %s4369_s25 = scalar_lea.hbm %s6785_s3, 8192 }
  0x3a   : > { %p4370_p4 = scmp.ne.s32.totalorder %s6785_s3, %s4369_s25  ;;  %p4376_p11 = scmp.lt.u32.totalorder %s4369_s25, %s6785_s3 }
  0x3c   : > { %p4372_p5 = pnand %p4370_p4, %p4659_p3 }
  0x3e   : > { %p4373_p6 = pneg %p4372_p5 }
  0x40   : > { %p4378_p12 = pnand %p4376_p11, %p4373_p6 }
  0x42   : > { %4381 = shalt.err (!%p4378_p12)
}
  0x43   : > { %s4382_s9 = scalar_lea.vmem %s4649_s12, 8192  ;;  %p4390_p8 = scmp.lt.s32.totalorder %s4649_s12, %s4649_s12 }
  0x44   : > { %p4383_p13 = scmp.ne.s32.totalorder %s4649_s12, %s4382_s9  ;;  %p4391_p9 = scmp.lt.s32.totalorder %s4382_s9, %s4382_s9 }
  0x46   : > { %p4385_p0 = pnand %p4383_p13, %p4659_p3  ;;  %p4392_p10 = por %p4391_p9, %p4390_p8 }
  0x48   : > { %p4386_p7 = pneg %p4385_p0 }
  0x4a   : > { %p4393_p1 = pnand %p4392_p10, %p4386_p7 }
  0x4c   : > { %4396 = shalt.err (!%p4393_p1)
}
  0x4d   : > { %s4533_s14 = smov 256   ;;  %s4534_s24 = smov 16  }
  0x4e   : > { %4057 = dma.hbm_to_vmem [thread:$0]  (!%p4645_p2), %s6785_s3, 8192, %s4649_s12, [#allocation9], %s4533_s14, %s4533_s14, %s4534_s24  }
  0x4f   : > { %s4535_s16 = smov [#allocation7]   ;;  %s4536_s25 = smov [#allocation10]  }
  0x50   : > { %s189_s17 = sshll.u32 %s4535_s16, 4  ;;  %s216_s26 = sshll.u32 %s4536_s25, 4  ;;  %s190_s17 = int_to_ptr.vmem [resolvable:$true] %s189_s17  ;;  %s217_s26 = int_to_ptr.vmem [resolvable:$true] %s216_s26 }
  0x51   : > { %s4397_s11 = scalar_lea.hbm %s6784_s2, 4096 }
  0x52   : > { %p4398_p4 = scmp.ne.s32.totalorder %s6784_s2, %s4397_s11  ;;  %p4404_p11 = scmp.lt.u32.totalorder %s4397_s11, %s6784_s2 }
  0x54   : > { %p4400_p5 = pnand %p4398_p4, %p4659_p3 }
  0x56   : > { %p4401_p6 = pneg %p4400_p5 }
  0x58   : > { %p4406_p12 = pnand %p4404_p11, %p4401_p6 }
  0x5a   : > { %4409 = shalt.err (!%p4406_p12)
}
  0x5b   : > { %s4410_s12 = scalar_lea.vmem %s190_s17, 4096  ;;  %p4418_p8 = scmp.lt.s32.totalorder %s190_s17, %s190_s17 }
  0x5c   : > { %p4411_p13 = scmp.ne.s32.totalorder %s190_s17, %s4410_s12  ;;  %p4419_p9 = scmp.lt.s32.totalorder %s4410_s12, %s4410_s12 }
  0x5e   : > { %p4413_p0 = pnand %p4411_p13, %p4659_p3  ;;  %p4420_p10 = por %p4419_p9, %p4418_p8 }
  0x60   : > { %p4414_p7 = pneg %p4413_p0 }
  0x62   : > { %p4421_p1 = pnand %p4420_p10, %p4414_p7 }
  0x64   : > { %4424 = shalt.err (!%p4421_p1)
}
  0x65   : > { %s6906_s1 = smov 8   ;;  %s6907_s13 = smov 128  }
  0x66   : > { %4054 = dma.hbm_to_vmem [thread:$0]  (!%p4645_p2), %s6784_s2, 4096, %s190_s17, [#allocation6], %s6907_s13, %s6907_s13, %s6906_s1  }
  0x67   : > { %s4425_s24 = scalar_lea.hbm %s6786_s4, 256 }
  0x68   : > { %p4426_p4 = scmp.ne.s32.totalorder %s6786_s4, %s4425_s24  ;;  %p4432_p11 = scmp.lt.u32.totalorder %s4425_s24, %s6786_s4 }
  0x6a   : > { %p4428_p5 = pnand %p4426_p4, %p4659_p3 }
  0x6c   : > { %p4429_p6 = pneg %p4428_p5 }
  0x6e   : > { %p4434_p12 = pnand %p4432_p11, %p4429_p6 }
  0x70   : > { %4437 = shalt.err (!%p4434_p12)
}
  0x71   : > { %s4438_s8 = scalar_lea.vmem %s217_s26, 256  ;;  %p4446_p8 = scmp.lt.s32.totalorder %s217_s26, %s217_s26 }
  0x72   : > { %p4439_p13 = scmp.ne.s32.totalorder %s217_s26, %s4438_s8  ;;  %p4447_p9 = scmp.lt.s32.totalorder %s4438_s8, %s4438_s8 }
  0x74   : > { %p4441_p0 = pnand %p4439_p13, %p4659_p3  ;;  %p4448_p10 = por %p4447_p9, %p4446_p8 }
  0x76   : > { %p4442_p7 = pneg %p4441_p0 }
  0x78   : > { %p4449_p1 = pnand %p4448_p10, %p4442_p7 }
  0x7a   : > { %4452 = shalt.err (!%p4449_p1)
}
  0x7b   : > { %4060 = dma.hbm_to_vmem [thread:$0]  (!%p4645_p2), %s6786_s4, 256, %s217_s26, [#allocation9]  }
  0x7c   : > { %p3799_p4 = scmp.ge.s32.totalorder %s4527_s21, 2 }
  0x7e   : > { %223 = sbr.rel (%p3799_p4) target bundleno = 148 (0x94), region = 32 }
  0x85   : > { %s227_s23 = sand.u32 1, %s4523_s20   ;;  %s3987_s12 = sshll.u32 %s4527_s21, 11 }
  0x86   : > { %s3800_s10 = sshll.u32 %s227_s23, 8  ;;  %s237_s26 = scalar_lea.hbm %s6782_s0, %s3987_s12 }
  0x87   : > { %p6908_p2 = scmp.ne.s32.totalorder %s6897_s28, 0  ;;  %s231_s6 = scalar_lea.vmem [#allocation2], %s3800_s10 }
  0x88   : > { %s250_s11 = sshll.u32 %s231_s6, 4  ;;  %s4537_s24 = smov 4096   ;;  %s251_s11 = int_to_ptr.vmem [resolvable:$true] %s250_s11 }
  0x89   : > { %s4029_s18 = scalar_select %p6908_p2, [#allocation0], [#allocation14] }
  0x8a   : > { %4030 = sst [smem:[#allocation13]] (%p6908_p2), %s4537_s24  ;;  %s4538_s27 = smov 2048  }
  0x8b   : > { %s242_s14 = sld [smem:[%s4029_s18]]   ;;  %s4539_s15 = smov 32  }
  0x8c   : > { %4031 = sst [smem:[#allocation13 + $0x1]] (%p6908_p2), %s4538_s27  ;;  %s4540_s16 = smov 64  }
  0x8d   : > { %4032 = sst [smem:[#allocation13 + $0x2]] (%p6908_p2), %s4539_s15  ;;  %s4541_s8 = smov 4  }
  0x8e   : > { %4033 = sst [smem:[#allocation13 + $0x3]] (%p6908_p2), %s4540_s16  ;;  %s228_s9 = scalar_lea.sflag [#allocation3], %s227_s23 }
  0x8f   : > { %4034 = sst [smem:[#allocation13 + $0x4]] (%p6908_p2), %s4540_s16  ;;  %s4542_s12 = smov [#allocation12]  }
  0x90   : > { %4035 = sst [smem:[#allocation13 + $0x5]] (%p6908_p2), %s4541_s8 }
  0x91   : > { %s3803_s25 = sshll.u32 %s242_s14, 26 }
  0x92   : > { %s3804_s17 = sadd.s32 134217728, %s3803_s25 }
  0x93   : > { %4036 = dma.general (%p6908_p2), %s237_s26, 4096, %s251_s11, %s228_s9, %s4542_s12, [#allocation13], %s3804_s17, 0  }
  0x94 PF: > { %p6909_p3 = scmp.ne.s32.totalorder %s6902_s7, 0 }
  0x96   : > { %275 = sbr.rel (%p6909_p3) target bundleno = 1166 (0x48e), region = 40 }
  0x9d   : > { %s4767_s10 = sand.u32 1, %s4519_s19   ;;  %p6910_p5 = scmp.ne.s32.totalorder %s6898_s29, 0 }
  0x9e   : > { %s3806_s1 = sshll.u32 %s4767_s10, 8  ;;  %s278_s13 = scalar_lea.sflag [#allocation3], %s4767_s10 }
  0x9f   : > { %s4773_s18 = scalar_lea.vmem [#allocation2], %s3806_s1 }
  0xa0   : > { %4498 = dma.done.wait (%p6910_p5), %s278_s13, 4096  }
  0xa1   : > { %4500 = vsyncadd (%p6910_p5), %s278_s13, 4294963200  ;;  %p6911_p6 = scmp.eq.s32.totalorder %s4598_s22, 0 }
  0xa3   : > { %4502 = dma.done.wait (%p6911_p6), [#allocation6], 5376   ;;  %p6912_p11 = pmov %p6911_p6 }
  0xa4   : > { %p6913_p12 = pmov %p6911_p6 }
  0xa5   : > { %4504 = vsyncadd (%p6912_p11), [#allocation6], 4294961920 }
  0xa6   : > { %4506 = dma.done.wait (%p6913_p12), [#allocation9], 8448   ;;  %p6914_p13 = pmov %p6911_p6 }
  0xa7   : > { %v4543_v0 = vmov 0   ;;  %v4123_v1 = vld [vmem:[#allocation5 + $0x4] ss:$8 sps:$4 sm:$0xff]   ;;  %v4125_v2 = vld [vmem:[#allocation5] ss:$8 sps:$4 sm:$0xff]   ;;  %vm632_vm0 = vcmask 654336  }
  0xa8   : > { %4508 = vsyncadd (%p6914_p13), [#allocation9], 4294958848  ;;  %761 = vmatprep.mubr.bf16.mxu0 %v4543_v0  ;;  %729 = vmatprep.subr.bf16.mxu0 %v4123_v1  ;;  %v4126_v3 = vld [vmem:[#allocation5 + $0x14] ss:$8 sps:$4 sm:$0xff]   ;;  %v4128_v4 = vld [vmem:[#allocation5 + $0x10] ss:$8 sps:$4 sm:$0xff]  }
  0xa9   : > { %730 = vmatpush1.bf16.msra.mxu0 %v4125_v2  ;;  %v4129_v5 = vld [vmem:[#allocation5 + $0x24] ss:$8 sps:$4 sm:$0xff]   ;;  %v4131_v6 = vld [vmem:[#allocation5 + $0x20] ss:$8 sps:$4 sm:$0xff]   ;;  %v4132_v7 = vld [vmem:[#allocation5 + $0x34] ss:$8 sps:$4 sm:$0xff]  }
  0xaa   : > { %731 = vmatprep.subr.bf16.mxu0 %v4126_v3  ;;  %v4134_v8 = vld [vmem:[#allocation5 + $0x30] ss:$8 sps:$4 sm:$0xff]   ;;  %v4135_v9 = vld [vmem:[#allocation5 + $0x44] ss:$8 sps:$4 sm:$0xff]   ;;  %v4137_v10 = vld [vmem:[#allocation5 + $0x40] ss:$8 sps:$4 sm:$0xff]  }
  0xab   : > { %v4138_v11 = vld [vmem:[%s4773_s18] sm:$0xff]   ;;  %v4139_v12 = vld [vmem:[%s4773_s18 + $0x8] sm:$0xff]   ;;  %v4140_v13 = vld [vmem:[%s4773_s18 + $0x10] sm:$0xff]   ;;  %s6184_s28 = scalar_lea.vmem [#allocation11], %s3806_s1  ;;  %s3988_s29 = sshll.u32 %s4598_s22, 12 }
  0xac   : > { %v4141_v14 = vld [vmem:[%s4773_s18 + $0x18] sm:$0xff]   ;;  %v4142_v17 = vld [vmem:[%s4773_s18 + $0x20] sm:$0xff]   ;;  %v4143_v22 = vld [vmem:[%s4773_s18 + $0x28] sm:$0xff]   ;;  %s3682_s7 = sshll.u32 %s6184_s28, 4  ;;  %s6734_s6 = scalar_lea.hbm %s6787_s5, %s3988_s29  ;;  %s6736_s7 = int_to_ptr.vmem [resolvable:$true] %s3682_s7 }
  0xad   : > { %732 = vmatpush1.bf16.msra.mxu0 %v4128_v4  ;;  %v4158_v15 = vld [vmem:[#allocation7 + $0x4] ss:$8 sps:$4 sm:$0xff]   ;;  %v4160_v16 = vld [vmem:[#allocation7] ss:$8 sps:$4 sm:$0xff]   ;;  %v4162_v18 = vld [vmem:[#allocation7 + $0x14] ss:$8 sps:$4 sm:$0xff]  }
  0xae   : > { %733 = vmatprep.subr.bf16.mxu0 %v4129_v5  ;;  %1484 = vmatprep.subr.bf16.mxu1 %v4158_v15  ;;  %v4164_v19 = vld [vmem:[#allocation7 + $0x10] ss:$8 sps:$4 sm:$0xff]   ;;  %v4165_v20 = vld [vmem:[#allocation7 + $0x24] ss:$8 sps:$4 sm:$0xff]   ;;  %v4167_v21 = vld [vmem:[#allocation7 + $0x20] ss:$8 sps:$4 sm:$0xff]  }
  0xaf   : > { %1485 = vmatpush1.bf16.msra.mxu1 %v4160_v16  ;;  %v4169_v23 = vld [vmem:[#allocation7 + $0x34] ss:$8 sps:$4 sm:$0xff]   ;;  %v4171_v24 = vld [vmem:[#allocation7 + $0x30] ss:$8 sps:$4 sm:$0xff]   ;;  %v4172_v25 = vld [vmem:[#allocation7 + $0x44] ss:$8 sps:$4 sm:$0xff]  }
  0xb0   : > { %1486 = vmatprep.subr.bf16.mxu1 %v4162_v18  ;;  %v4174_v26 = vld [vmem:[#allocation7 + $0x40] ss:$8 sps:$4 sm:$0xff]   ;;  %v4176_v28 = vld [vmem:[#allocation7 + $0x54] ss:$8 sps:$4 sm:$0xff]   ;;  %v4178_v29 = vld [vmem:[#allocation7 + $0x50] ss:$8 sps:$4 sm:$0xff]  }
  0xb1   : > { %734 = vmatpush1.bf16.msra.mxu0 %v4131_v6  ;;  %v4144_v27 = vld [vmem:[%s4773_s18 + $0x30] sm:$0xff]   ;;  %v4145_v32 = vld [vmem:[%s4773_s18 + $0x38] sm:$0xff]   ;;  %v4183_v33 = vld [vmem:[#allocation7 + $0x74] ss:$8 sps:$4 sm:$0xff]   ;;  %s3669_s22 = scalar_lea.sflag [#allocation4], %s4767_s10  ;;  %s4453_s11 = scalar_lea.vmem %s6736_s7, 4096 }
  0xb2   : > { %735 = vmatprep.subr.bf16.mxu0 %v4132_v7  ;;  %v4179_v30 = vld [vmem:[#allocation7 + $0x64] ss:$8 sps:$4 sm:$0xff]   ;;  %v4181_v31 = vld [vmem:[#allocation7 + $0x60] ss:$8 sps:$4 sm:$0xff]   ;;  %v4185_v34 = vld [vmem:[#allocation7 + $0x70] ss:$8 sps:$4 sm:$0xff]   ;;  %p4454_p0 = scmp.ne.s32.totalorder %s6736_s7, %s4453_s11 }
  0xb3   : > { %1487 = vmatpush1.bf16.msra.mxu1 %v4164_v19  ;;  %v4186_v35 = vld [vmem:[#allocation7 + $0x84] ss:$8 sps:$4 sm:$0xff]   ;;  %v4188_v36 = vld [vmem:[#allocation8] ss:$16 sps:$4 sm:$0xff]   ;;  %v4193_v40 = vld [vmem:[#allocation7 + $0x94] ss:$8 sps:$4 sm:$0xff]  }
  0xb4   : > { %1488 = vmatprep.subr.bf16.mxu1 %v4165_v20  ;;  %v4190_v37 = vld [vmem:[#allocation8 + $0x4] ss:$16 sps:$4 sm:$0xff]   ;;  %v4191_v38 = vld [vmem:[#allocation7 + $0x80] ss:$8 sps:$4 sm:$0xff]   ;;  %v4195_v41 = vld [vmem:[#allocation7 + $0x90] ss:$8 sps:$4 sm:$0xff]  }
  0xb5   : > { %736 = vmatpush1.bf16.msra.mxu0 %v4134_v8  ;;  %v4146_v39 = vld [vmem:[%s4773_s18 + $0x40] sm:$0xff]   ;;  %v4196_v42 = vld [vmem:[#allocation7 + $0xa4] ss:$8 sps:$4 sm:$0xff]   ;;  %v4198_v43 = vld [vmem:[#allocation7 + $0xa0] ss:$8 sps:$4 sm:$0xff]   ;;  %p7320_p7 = scmp.ne.s32.totalorder %s6899_s30, 0 }
  0xb6   : > { %737 = vmatprep.subr.bf16.mxu0 %v4135_v9  ;;  %v4147_v44 = vld [vmem:[%s4773_s18 + $0x48] sm:$0xff]   ;;  %v4203_v47 = vld [vmem:[#allocation7 + $0xc4] ss:$8 sps:$4 sm:$0xff]   ;;  %v4205_v48 = vld [vmem:[#allocation8 + $0x20] ss:$16 sps:$4 sm:$0xff]   ;;  %s4544_s14 = smov [#allocation11]  }
  0xb7   : > { %1489 = vmatpush1.bf16.msra.mxu1 %v4167_v21  ;;  %v4200_v45 = vld [vmem:[#allocation7 + $0xb4] ss:$8 sps:$4 sm:$0xff]   ;;  %v4202_v46 = vld [vmem:[#allocation7 + $0xb0] ss:$8 sps:$4 sm:$0xff]   ;;  %v4208_v50 = vld [vmem:[#allocation7 + $0xc0] ss:$8 sps:$4 sm:$0xff]   ;;  %p4455_p8 = pnand %p4454_p0, %p7320_p7 }
  0xb8   : > { %1490 = vmatprep.subr.bf16.mxu1 %v4169_v23  ;;  %v4207_v49 = vld [vmem:[#allocation8 + $0x24] ss:$16 sps:$4 sm:$0xff]   ;;  %v4212_v53 = vld [vmem:[#allocation7 + $0xd0] ss:$8 sps:$4 sm:$0xff]   ;;  %v4149_v54 = vld [vmem:[%s4773_s18 + $0x58] sm:$0xff]   ;;  %s4457_s24 = sshll.u32 %s4544_s14, 4  ;;  %s4458_s24 = int_to_ptr.vmem [resolvable:$false] %s4457_s24 }
  0xb9   : > { %738 = vmatpush1.bf16.msra.mxu0 %v4137_v10  ;;  %v4148_v51 = vld [vmem:[%s4773_s18 + $0x50] sm:$0xff]   ;;  %v4210_v52 = vld [vmem:[#allocation7 + $0xd4] ss:$8 sps:$4 sm:$0xff]   ;;  %v4219_v58 = vld [vmem:[#allocation7 + $0xf0] ss:$8 sps:$4 sm:$0xff]   ;;  %p4456_p9 = pneg %p4455_p8  ;;  %s4459_s27 = scalar_lea.vmem %s4458_s24, 8192 }
  0xba   : > { %2450 = vmatprep.subr.bf16.mxu0 %v4190_v37  ;;  %v4213_v55 = vld [vmem:[#allocation7 + $0xe4] ss:$8 sps:$4 sm:$0xff]   ;;  %v4215_v56 = vld [vmem:[#allocation7 + $0xe0] ss:$8 sps:$4 sm:$0xff]   ;;  %v4217_v57 = vld [vmem:[#allocation7 + $0xf4] ss:$8 sps:$4 sm:$0xff]   ;;  %p4460_p10 = scmp.lt.s32.totalorder %s6736_s7, %s4458_s24  ;;  %p4461_p1 = scmp.lt.s32.totalorder %s4459_s27, %s4453_s11 }
  0xbb   : > { %1491 = vmatpush1.bf16.msra.mxu1 %v4171_v24  ;;  %v4150_v59 = vld [vmem:[%s4773_s18 + $0x60] sm:$0xff]   ;;  %v4827_v62 = vld [vmem:[#allocation8 + $0xc] ss:$16 sps:$4 sm:$0xff]   ;;  %v4152_v1 = vld [vmem:[%s4773_s18 + $0x70] sm:$0xff]  }
  0xbc   : > { %3854 = vmatmul.mubr.msk.bf16.vlgmr.msra.gmra.mrb[0].mxu0 %vm632_vm0, %v4138_v11  ;;  %1492 = vmatprep.subr.bf16.mxu1 %v4172_v25  ;;  %v4220_v60 = vld [vmem:[#allocation8 + $0x40] ss:$16 sps:$4 sm:$0xff]   ;;  %v4222_v61 = vld [vmem:[#allocation8 + $0x44] ss:$16 sps:$4 sm:$0xff]   ;;  %v4151_v63 = vld [vmem:[%s4773_s18 + $0x68] sm:$0xff]   ;;  %p4462_p2 = por %p4461_p1, %p4460_p10 }
  0xbd   : > { %771 = vmatprep.mubr.bf16.mxu0 %v4543_v0  ;;  %2451 = vmatpush1.bf16.msra.mxu0 %v4188_v36  ;;  %v4228_v2 = vld [vmem:[#allocation8 + $0x60] ss:$16 sps:$4 sm:$0xff]   ;;  %v4230_v3 = vld [vmem:[#allocation8 + $0x64] ss:$16 sps:$4 sm:$0xff]   ;;  %v4153_v4 = vld [vmem:[%s4773_s18 + $0x78] sm:$0xff]  }
  0xbe   : > { %2452 = vmatprep.subr.bf16.mxu0 %v4207_v49  ;;  %v4154_v5 = vld [vmem:[%s4773_s18 + $0x80] sm:$0xff]   ;;  %v4155_v8 = vld [vmem:[%s4773_s18 + $0x88] sm:$0xff]   ;;  %v4156_v9 = vld [vmem:[%s4773_s18 + $0x90] sm:$0xff]   ;;  %p4463_p3 = pnand %p4462_p2, %p4456_p9 }
  0xbf   : > { %1493 = vmatpush1.bf16.msra.mxu1 %v4174_v26  ;;  %v4236_v6 = vld [vmem:[#allocation8 + $0x80] ss:$16 sps:$4 sm:$0xff]   ;;  %v4238_v7 = vld [vmem:[#allocation8 + $0x84] ss:$16 sps:$4 sm:$0xff]   ;;  %v4168_v16 = vld [vmem:[%s4773_s18 + $0xa8] sm:$0xff]  }
  0xc0   : > { %1494 = vmatprep.subr.bf16.mxu1 %v4176_v28  ;;  %v4242_v10 = vld [vmem:[#allocation8 + $0xa0] ss:$16 sps:$4 sm:$0xff]   ;;  %v4244_v11 = vld [vmem:[#allocation8 + $0xa4] ss:$16 sps:$4 sm:$0xff]   ;;  %v4182_v20 = vld [vmem:[%s4773_s18 + $0xb8] sm:$0xff]  }
  0xc1   : > { %2453 = vmatpush1.bf16.msra.mxu0 %v4205_v48  ;;  %v4250_v15 = vld [vmem:[#allocation8 + $0xc4] ss:$16 sps:$4 sm:$0xff]   ;;  %v4254_v18 = vld [vmem:[#allocation8 + $0xe0] ss:$16 sps:$4 sm:$0xff]   ;;  %v4199_v25 = vld [vmem:[%s4773_s18 + $0xc8] sm:$0xff]  }
  0xc2   : > { %2454 = vmatprep.subr.bf16.mxu0 %v4222_v61  ;;  %v4256_v19 = vld [vmem:[#allocation8 + $0xe4] ss:$16 sps:$4 sm:$0xff]   ;;  %v4260_v23 = vld [vmem:[#allocation8 + $0x100] ss:$16 sps:$4 sm:$0xff]  }
  0xc3   : > { %1495 = vmatpush1.bf16.msra.mxu1 %v4178_v29  ;;  %v4192_v21 = vld [vmem:[%s4773_s18 + $0xc0] sm:$0xff]   ;;  %v327_v28 = vld [vmem:[#allocation10] sm:$0x77] }
  0xc4   : > { %3855 = vmatmul.mubr.msk.bf16.gmra.mrb[4].mxu0 %vm632_vm0, %v4139_v12  ;;  %1496 = vmatprep.subr.bf16.mxu1 %v4179_v30  ;;  %v4157_v12 = vld [vmem:[%s4773_s18 + $0x98] sm:$0xff]   ;;  %v4262_v24 = vld [vmem:[#allocation8 + $0x104] ss:$16 sps:$4 sm:$0xff]  }
  0xc5   : > { %781 = vmatprep.mubr.bf16.mxu0 %v4543_v0  ;;  %2455 = vmatpush1.bf16.msra.mxu0 %v4220_v60  ;;  %v4209_v30 = vld [vmem:[%s4773_s18 + $0xd0] sm:$0xff]  }
  0xc6   : > { %2456 = vmatprep.subr.bf16.mxu0 %v4230_v3  ;;  %v4268_v36 = vld [vmem:[#allocation8 + $0x124] ss:$16 sps:$4 sm:$0xff]  }
  0xc7   : > { %1497 = vmatpush1.bf16.msra.mxu1 %v4181_v31 }
  0xc8   : > { %1498 = vmatprep.subr.bf16.mxu1 %v4183_v33 }
  0xc9   : > { %2457 = vmatpush1.bf16.msra.mxu0 %v4228_v2 }
  0xca   : > { %2458 = vmatprep.subr.bf16.mxu0 %v4238_v7 }
  0xcb   : > { %1499 = vmatpush1.bf16.msra.mxu1 %v4185_v34 }
  0xcc   : > { %3856 = vmatmul.mubr.msk.bf16.gmra.mrb[8].mxu0 %vm632_vm0, %v4140_v13  ;;  %1500 = vmatprep.subr.bf16.mxu1 %v4186_v35  ;;  %v4161_v13 = vld [vmem:[%s4773_s18 + $0xa0] sm:$0xff]  }
  0xcd   : > { %791 = vmatprep.mubr.bf16.mxu0 %v4543_v0  ;;  %2459 = vmatpush1.bf16.msra.mxu0 %v4236_v6  ;;  %v4266_v35 = vld [vmem:[#allocation8 + $0x120] ss:$16 sps:$4 sm:$0xff]  }
  0xce   : > { %2460 = vmatprep.subr.bf16.mxu0 %v4244_v11 }
  0xcf   : > { %1501 = vmatpush1.bf16.msra.mxu1 %v4191_v38 }
  0xd0   : > { %1502 = vmatprep.subr.bf16.mxu1 %v4193_v40  ;;  %v4216_v40 = vld [vmem:[%s4773_s18 + $0xd8] sm:$0xff]  }
  0xd1   : > { %2461 = vmatpush1.bf16.msra.mxu0 %v4242_v10 }
  0xd2   : > { %2462 = vmatprep.subr.bf16.mxu0 %v4250_v15  ;;  %v4227_v15 = vld [vmem:[%s4773_s18 + $0xe8] sm:$0xff]  }
  0xd3   : > { %1503 = vmatpush1.bf16.msra.mxu1 %v4195_v41 }
  0xd4   : > { %3857 = vmatmul.mubr.msk.bf16.gmra.mrb[12].mxu0 %vm632_vm0, %v4141_v14  ;;  %1504 = vmatprep.subr.bf16.mxu1 %v4196_v42  ;;  %v4248_v14 = vld [vmem:[#allocation8 + $0xc0] ss:$16 sps:$4 sm:$0xff]  }
  0xd5   : > { %801 = vmatprep.mubr.bf16.mxu0 %v4543_v0  ;;  %2463 = vmatpush1.bf16.msra.mxu0 %v4248_v14 }
  0xd6   : > { %2464 = vmatprep.subr.bf16.mxu0 %v4256_v19 }
  0xd7   : > { %1505 = vmatpush1.bf16.msra.mxu1 %v4198_v43 }
  0xd8   : > { %1506 = vmatprep.subr.bf16.mxu1 %v4200_v45 }
  0xd9   : > { %2465 = vmatpush1.bf16.msra.mxu0 %v4254_v18 }
  0xda   : > { %2466 = vmatprep.subr.bf16.mxu0 %v4262_v24 }
  0xdb   : > { %1507 = vmatpush1.bf16.msra.mxu1 %v4202_v46 }
  0xdc   : > { %3858 = vmatmul.mubr.msk.bf16.gmra.mrb[16].mxu0 %vm632_vm0, %v4142_v17  ;;  %1508 = vmatprep.subr.bf16.mxu1 %v4203_v47  ;;  %v4175_v17 = vld [vmem:[%s4773_s18 + $0xb0] sm:$0xff]  }
  0xdd   : > { %811 = vmatprep.mubr.bf16.mxu0 %v4543_v0  ;;  %2467 = vmatpush1.bf16.msra.mxu0 %v4260_v23 }
  0xde   : > { %2468 = vmatprep.subr.bf16.mxu0 %v4268_v36 }
  0xdf   : > { %1509 = vmatpush1.bf16.msra.mxu1 %v4208_v50 }
  0xe0   : > { %1510 = vmatprep.subr.bf16.mxu1 %v4210_v52 }
  0xe1   : > { %2469 = vmatpush1.bf16.msra.mxu0 %v4266_v35 }
  0xe3   : > { %1511 = vmatpush1.bf16.msra.mxu1 %v4212_v53  ;;  %v4223_v53 = vld [vmem:[#allocation8 + $0x8] ss:$16 sps:$4 sm:$0xff]  }
  0xe4   : > { %3859 = vmatmul.mubr.msk.bf16.gmra.mrb[20].mxu0 %vm632_vm0, %v4143_v22  ;;  %1512 = vmatprep.subr.bf16.mxu1 %v4213_v55  ;;  %v404_v22 = vlaneseq }
  0xe5   : > { %821 = vmatprep.mubr.bf16.mxu0 %v4543_v0 }
  0xe6   : > { %v4867_v26 = vshrl.u32 %v404_v22, 7  ;;  %v4245_v22 = vld [vmem:[#allocation8 + $0x68] ss:$16 sps:$4 sm:$0xff]  }
  0xe7   : > { %1513 = vmatpush1.bf16.msra.mxu1 %v4215_v56  ;;  %v4226_v56 = vld [vmem:[%s4773_s18 + $0xe0] sm:$0xff]  }
  0xe8   : > { %1514 = vmatprep.subr.bf16.mxu1 %v4217_v57  ;;  %v410_v29 = vsub.s32 4, %v4867_v26  ;;  %v4233_v57 = vld [vmem:[#allocation8 + $0x2c] ss:$16 sps:$4 sm:$0xff]  }
  0xeb   : > { %1515 = vmatpush1.bf16.msra.mxu1 %v4219_v58 }
  0xec   : > { %3860 = vmatmul.mubr.msk.bf16.gmra.mrb[24].mxu0 %vm632_vm0, %v4144_v27  ;;  %3989 = vmatprep.subr.bf16.mxu1 %v4827_v62  ;;  %v406_v27 = vsub.s32 0, %v4867_v26 }
  0xed   : > { %831 = vmatprep.mubr.bf16.mxu0 %v4543_v0 }
  0xee   : > { %v407_v31 = vrot.slane %v327_v28, %v406_v27 }
  0xf0   : > { %v4875_v33 = vrot.slane %v407_v31, %v406_v27 }
  0xf4   : > { %3861 = vmatmul.mubr.msk.bf16.gmra.mrb[28].mxu0 %vm632_vm0, %v4145_v32  ;;  %v411_v32 = vrot.slane %v327_v28, %v410_v29 }
  0xf5   : > { %841 = vmatprep.mubr.bf16.mxu0 %v4543_v0 }
  0xf6   : > { %v4878_v34 = vrot.slane %v411_v32, %v406_v27  ;;  %v4251_v32 = vld [vmem:[#allocation8 + $0x88] ss:$16 sps:$4 sm:$0xff]  }
  0xfc   : > { %3862 = vmatmul.mubr.msk.bf16.gmra.mrb[32].mxu0 %vm632_vm0, %v4146_v39 }
  0xfd   : > { %851 = vmatprep.mubr.bf16.mxu0 %v4543_v0 }
 0x104   : > { %3863 = vmatmul.mubr.msk.bf16.gmra.mrb[36].mxu0 %vm632_vm0, %v4147_v44 }
 0x105   : > { %861 = vmatprep.mubr.bf16.mxu0 %v4543_v0 }
 0x10c   : > { %3864 = vmatmul.mubr.msk.bf16.gmra.mrb[40].mxu0 %vm632_vm0, %v4148_v51 }
 0x10d   : > { %871 = vmatprep.mubr.bf16.mxu0 %v4543_v0 }
 0x114   : > { %3865 = vmatmul.mubr.msk.bf16.gmra.mrb[44].mxu0 %vm632_vm0, %v4149_v54 }
 0x115   : > { %881 = vmatprep.mubr.bf16.mxu0 %v4543_v0 }
 0x11c   : > { %3866 = vmatmul.mubr.msk.bf16.gmra.mrb[48].mxu0 %vm632_vm0, %v4150_v59 }
 0x11d   : > { %891 = vmatprep.mubr.bf16.mxu0 %v4543_v0 }
 0x124   : > { %3867 = vmatmul.mubr.msk.bf16.gmra.mrb[52].mxu0 %vm632_vm0, %v4151_v63 }
 0x125   : > { %901 = vmatprep.mubr.bf16.mxu0 %v4543_v0 }
 0x12c   : > { %3868 = vmatmul.mubr.msk.bf16.gmra.mrb[56].mxu0 %vm632_vm0, %v4152_v1  ;;  %v4231_v1 = vld [vmem:[#allocation8 + $0x28] ss:$16 sps:$4 sm:$0xff]  }
 0x12d   : > { %911 = vmatprep.mubr.bf16.mxu0 %v4543_v0 }
 0x134   : > { %3869 = vmatmul.mubr.msk.bf16.gmra.mrb[60].mxu0 %vm632_vm0, %v4153_v4  ;;  %v4241_v4 = vld [vmem:[#allocation8 + $0x4c] ss:$16 sps:$4 sm:$0xff]  }
 0x135   : > { %921 = vmatprep.mubr.bf16.mxu0 %v4543_v0 }
 0x13c   : > { %3870 = vmatmul.mubr.msk.bf16.gmra.mrb[64].mxu0 %vm632_vm0, %v4154_v5 }
 0x13d   : > { %931 = vmatprep.mubr.bf16.mxu0 %v4543_v0 }
 0x144   : > { %3871 = vmatmul.mubr.msk.bf16.gmra.mrb[68].mxu0 %vm632_vm0, %v4155_v8  ;;  %v4272_v8 = vld [vmem:[#allocation8 + $0x140] ss:$16 sps:$4 sm:$0xff]  }
 0x145   : > { %941 = vmatprep.mubr.bf16.mxu0 %v4543_v0 }
 0x14c   : > { %3872 = vmatmul.mubr.msk.bf16.gmra.mrb[72].mxu0 %vm632_vm0, %v4156_v9  ;;  %v4274_v9 = vld [vmem:[#allocation8 + $0x144] ss:$16 sps:$4 sm:$0xff]  }
 0x14d   : > { %951 = vmatprep.mubr.bf16.mxu0 %v4543_v0  ;;  %2470 = vmatprep.subr.bf16.mxu0 %v4274_v9 }
 0x14e   : > { %2471 = vmatpush1.bf16.msra.mxu0 %v4272_v8 }
 0x154   : > { %3873 = vmatmul.mubr.msk.bf16.gmra.mrb[76].mxu0 %vm632_vm0, %v4157_v12  ;;  %v4239_v12 = vld [vmem:[#allocation8 + $0x48] ss:$16 sps:$4 sm:$0xff]  }
 0x155   : > { %961 = vmatprep.mubr.bf16.mxu0 %v4543_v0 }
 0x15c   : > { %3874 = vmatmul.mubr.msk.bf16.gmra.mrb[80].mxu0 %vm632_vm0, %v4161_v13 }
 0x15d   : > { %971 = vmatprep.mubr.bf16.mxu0 %v4543_v0 }
 0x164   : > { %3875 = vmatmul.mubr.msk.bf16.gmra.mrb[84].mxu0 %vm632_vm0, %v4168_v16  ;;  %v4247_v16 = vld [vmem:[#allocation8 + $0x6c] ss:$16 sps:$4 sm:$0xff]  }
 0x165   : > { %981 = vmatprep.mubr.bf16.mxu0 %v4543_v0 }
 0x16c   : > { %3876 = vmatmul.mubr.msk.bf16.gmra.mrb[88].mxu0 %vm632_vm0, %v4175_v17 }
 0x16d   : > { %991 = vmatprep.mubr.bf16.mxu0 %v4543_v0 }
 0x174   : > { %3877 = vmatmul.mubr.msk.bf16.gmra.mrb[92].mxu0 %vm632_vm0, %v4182_v20 }
 0x175   : > { %1001 = vmatprep.mubr.bf16.mxu0 %v4543_v0 }
 0x17c   : > { %3878 = vmatmul.mubr.msk.bf16.gmra.mrb[96].mxu0 %vm632_vm0, %v4192_v21 }
 0x17d   : > { %1011 = vmatprep.mubr.bf16.mxu0 %v4543_v0 }
 0x184   : > { %3879 = vmatmul.mubr.msk.bf16.gmra.mrb[100].mxu0 %vm632_vm0, %v4199_v25  ;;  %v4253_v25 = vld [vmem:[#allocation8 + $0x8c] ss:$16 sps:$4 sm:$0xff]  }
 0x185   : > { %1021 = vmatprep.mubr.bf16.mxu0 %v4543_v0 }
 0x18c   : > { %3880 = vmatmul.mubr.msk.bf16.gmra.mrb[104].mxu0 %vm632_vm0, %v4209_v30 }
 0x18d   : > { %1031 = vmatprep.mubr.bf16.mxu0 %v4543_v0 }
 0x18f   : > { %v763_v37 = vpop.f32.mrb[0].mxu0 }
 0x190   : > { %v764_v38 = vadd.f32 %v763_v37, %v4875_v33  ;;  %v765_v39 = vpop.f32.mrb[1].mxu0  ;;  %v4234_v37 = vld [vmem:[%s4773_s18 + $0xf0] sm:$0xff]  }
 0x191   : > { %v767_v41 = vpop.f32.mrb[2].mxu0  ;;  %v766_v42 = vadd.f32 %v765_v39, %v4878_v34 }
 0x192   : > { %v768_v43 = vadd.f32 %v767_v41, %v4875_v33  ;;  %v769_v44 = vpop.f32.mrb[3].mxu0  ;;  %v1082_v46 = vmax.f32 %v764_v38, 0.0  ;;  %v4259_v38 = vld [vmem:[#allocation8 + $0xac] ss:$16 sps:$4 sm:$0xff]  }
 0x193   : > { %v770_v45 = vadd.f32 %v769_v44, %v4878_v34  ;;  %v1083_v48 = vmax.f32 %v766_v42, 0.0  ;;  %v4257_v44 = vld [vmem:[#allocation8 + $0xa8] ss:$16 sps:$4 sm:$0xff]  }
 0x194   : > { %v1084_v47 = vmax.f32 %v768_v43, 0.0  ;;  %3881 = vmatmul.mubr.msk.bf16.gmra.mrb[108].mxu0 %vm632_vm0, %v4216_v40 }
 0x195   : > { %v1085_v49 = vmax.f32 %v770_v45, 0.0  ;;  %1041 = vmatprep.mubr.bf16.mxu0 %v4543_v0 }
 0x196   : > { %v1210_v50 = vpack.c.bf16 %v1084_v47, %v1082_v46  ;;  %v4265_v47 = vld [vmem:[#allocation8 + $0xcc] ss:$16 sps:$4 sm:$0xff]  }
 0x197   : > { %v773_v51 = vpop.f32.mrb[4].mxu0  ;;  %v1211_v52 = vpack.c.bf16 %v1085_v49, %v1083_v48 }
 0x198   : > { %v774_v54 = vadd.f32 %v773_v51, %v4875_v33  ;;  %v775_v55 = vpop.f32.mrb[5].mxu0  ;;  %v4278_v51 = vld [vmem:[#allocation8 + $0x160] ss:$16 sps:$4 sm:$0xff]  }
 0x199   : > { %v776_v58 = vadd.f32 %v775_v55, %v4878_v34  ;;  %v777_v59 = vpop.f32.mrb[6].mxu0  ;;  %1516 = vmatprep.mubr.bf16.mxu1 %v1211_v52  ;;  %v4280_v52 = vld [vmem:[#allocation8 + $0x164] ss:$16 sps:$4 sm:$0xff]   ;;  %v4263_v55 = vld [vmem:[#allocation8 + $0xc8] ss:$16 sps:$4 sm:$0xff]  }
 0x19a   : > { %v778_v60 = vadd.f32 %v777_v59, %v4875_v33  ;;  %v779_v61 = vpop.f32.mrb[7].mxu0  ;;  %1517 = vmatmul.mubr.bf16.vlgmr.msra.gmra.mrb[0].mxu1 %v1210_v50  ;;  %v1086_v2 = vmax.f32 %v774_v54, 0.0  ;;  %v4271_v59 = vld [vmem:[#allocation8 + $0xec] ss:$16 sps:$4 sm:$0xff]   ;;  %2472 = vmatprep.subr.bf16.mxu0 %v4280_v52 }
 0x19b   : > { %v780_v63 = vadd.f32 %v779_v61, %v4878_v34  ;;  %4005 = vmatpush1.bf16.msra.mxu1 %v4223_v53  ;;  %v1087_v5 = vmax.f32 %v776_v58, 0.0  ;;  %v4235_v58 = vld [vmem:[%s4773_s18 + $0xf8] sm:$0xff]   ;;  %2473 = vmatpush1.bf16.msra.mxu0 %v4278_v51 }
 0x19c   : > { %v1088_v3 = vmax.f32 %v778_v60, 0.0  ;;  %3882 = vmatmul.mubr.msk.bf16.gmra.mrb[112].mxu0 %vm632_vm0, %v4226_v56  ;;  %3990 = vmatprep.subr.bf16.mxu1 %v4233_v57 }
 0x19d   : > { %v1089_v6 = vmax.f32 %v780_v63, 0.0  ;;  %1051 = vmatprep.mubr.bf16.mxu0 %v4543_v0 }
 0x19e   : > { %v1212_v7 = vpack.c.bf16 %v1088_v3, %v1086_v2  ;;  %v4269_v2 = vld [vmem:[#allocation8 + $0xe8] ss:$16 sps:$4 sm:$0xff]  }
 0x19f   : > { %v783_v10 = vpop.f32.mrb[8].mxu0  ;;  %v1213_v11 = vpack.c.bf16 %v1089_v6, %v1087_v5  ;;  %4006 = vmatpush1.bf16.msra.mxu1 %v4231_v1  ;;  %v4277_v5 = vld [vmem:[#allocation8 + $0x10c] ss:$16 sps:$4 sm:$0xff]  }
 0x1a0   : > { %v784_v13 = vadd.f32 %v783_v10, %v4875_v33  ;;  %v785_v14 = vpop.f32.mrb[9].mxu0  ;;  %3991 = vmatprep.subr.bf16.mxu1 %v4241_v4 }
 0x1a1   : > { %v786_v17 = vadd.f32 %v785_v14, %v4878_v34  ;;  %v787_v18 = vpop.f32.mrb[10].mxu0  ;;  %1526 = vmatprep.mubr.bf16.mxu1 %v1213_v11  ;;  %v4275_v11 = vld [vmem:[#allocation8 + $0x108] ss:$16 sps:$4 sm:$0xff]   ;;  %v4283_v14 = vld [vmem:[#allocation8 + $0x12c] ss:$16 sps:$4 sm:$0xff]  }
 0x1a2   : > { %v788_v19 = vadd.f32 %v787_v18, %v4875_v33  ;;  %v789_v20 = vpop.f32.mrb[11].mxu0  ;;  %1527 = vmatmul.mubr.bf16.gmra.mrb[4].mxu1 %v1212_v7  ;;  %v1090_v23 = vmax.f32 %v784_v13, 0.0 }
 0x1a3   : > { %v790_v21 = vadd.f32 %v789_v20, %v4878_v34  ;;  %4007 = vmatpush1.bf16.msra.mxu1 %v4239_v12  ;;  %v1091_v27 = vmax.f32 %v786_v17, 0.0  ;;  %v4281_v20 = vld [vmem:[#allocation8 + $0x128] ss:$16 sps:$4 sm:$0xff]  }
 0x1a4   : > { %v1092_v24 = vmax.f32 %v788_v19, 0.0  ;;  %3883 = vmatmul.mubr.msk.bf16.gmra.mrb[116].mxu0 %vm632_vm0, %v4227_v15  ;;  %3992 = vmatprep.subr.bf16.mxu1 %v4247_v16 }
 0x1a5   : > { %v1093_v28 = vmax.f32 %v790_v21, 0.0  ;;  %1061 = vmatprep.mubr.bf16.mxu0 %v4543_v0 }
 0x1a6   : > { %v1214_v29 = vpack.c.bf16 %v1092_v24, %v1090_v23 }
 0x1a7   : > { %v1215_v30 = vpack.c.bf16 %v1093_v28, %v1091_v27  ;;  %v793_v31 = vpop.f32.mrb[12].mxu0  ;;  %4008 = vmatpush1.bf16.msra.mxu1 %v4245_v22  ;;  %v4284_v27 = vld [vmem:[#allocation8 + $0x180] ss:$16 sps:$4 sm:$0xff]   ;;  %v4286_v28 = vld [vmem:[#allocation8 + $0x184] ss:$16 sps:$4 sm:$0xff]  }
 0x1a8   : > { %v794_v35 = vadd.f32 %v793_v31, %v4875_v33  ;;  %v795_v36 = vpop.f32.mrb[13].mxu0  ;;  %3993 = vmatprep.subr.bf16.mxu1 %v4253_v25  ;;  %v4287_v31 = vld [vmem:[#allocation8 + $0x148] ss:$16 sps:$4 sm:$0xff]   ;;  %2474 = vmatprep.subr.bf16.mxu0 %v4286_v28 }
 0x1a9   : > { %v796_v39 = vadd.f32 %v795_v36, %v4878_v34  ;;  %v797_v40 = vpop.f32.mrb[14].mxu0  ;;  %1536 = vmatprep.mubr.bf16.mxu1 %v1215_v30  ;;  %2475 = vmatpush1.bf16.msra.mxu0 %v4284_v27 }
 0x1aa   : > { %v798_v41 = vadd.f32 %v797_v40, %v4875_v33  ;;  %v799_v42 = vpop.f32.mrb[15].mxu0  ;;  %1537 = vmatmul.mubr.bf16.gmra.mrb[8].mxu1 %v1214_v29  ;;  %v1094_v45 = vmax.f32 %v794_v35, 0.0 }
 0x1ab   : > { %v800_v43 = vadd.f32 %v799_v42, %v4878_v34  ;;  %4009 = vmatpush1.bf16.msra.mxu1 %v4251_v32  ;;  %v1095_v48 = vmax.f32 %v796_v39, 0.0  ;;  %v4289_v32 = vld [vmem:[#allocation8 + $0x14c] ss:$16 sps:$4 sm:$0xff]  }
 0x1ac   : > { %v1096_v46 = vmax.f32 %v798_v41, 0.0  ;;  %3884 = vmatmul.mubr.msk.bf16.gmra.mrb[120].mxu0 %vm632_vm0, %v4234_v37  ;;  %3994 = vmatprep.subr.bf16.mxu1 %v4259_v38 }
 0x1ad   : > { %v1097_v49 = vmax.f32 %v800_v43, 0.0  ;;  %1071 = vmatprep.mubr.bf16.mxu0 %v4543_v0 }
 0x1ae   : > { %v1216_v50 = vpack.c.bf16 %v1096_v46, %v1094_v45 }
 0x1af   : > { %v1217_v53 = vpack.c.bf16 %v1097_v49, %v1095_v48  ;;  %v803_v54 = vpop.f32.mrb[16].mxu0  ;;  %4010 = vmatpush1.bf16.msra.mxu1 %v4257_v44 }
 0x1b0   : > { %v804_v56 = vadd.f32 %v803_v54, %v4875_v33  ;;  %v805_v57 = vpop.f32.mrb[17].mxu0  ;;  %3995 = vmatprep.subr.bf16.mxu1 %v4265_v47 }
 0x1b1   : > { %v806_v60 = vadd.f32 %v805_v57, %v4878_v34  ;;  %v807_v61 = vpop.f32.mrb[18].mxu0  ;;  %1546 = vmatprep.mubr.bf16.mxu1 %v1217_v53 }
 0x1b2   : > { %v808_v0 = vadd.f32 %v807_v61, %v4875_v33  ;;  %v809_v63 = vpop.f32.mrb[19].mxu0  ;;  %1547 = vmatmul.mubr.bf16.gmra.mrb[12].mxu1 %v1216_v50  ;;  %v1098_v3 = vmax.f32 %v804_v56, 0.0  ;;  %v4290_v61 = vld [vmem:[#allocation8 + $0x1a0] ss:$16 sps:$4 sm:$0xff]  }
 0x1b3   : > { %v810_v1 = vadd.f32 %v809_v63, %v4878_v34  ;;  %4011 = vmatpush1.bf16.msra.mxu1 %v4263_v55  ;;  %v1099_v6 = vmax.f32 %v806_v60, 0.0 }
 0x1b4   : > { %v1100_v4 = vmax.f32 %v808_v0, 0.0  ;;  %3885 = vmatmul.mubr.msk.bf16.gmra.mrb[124].mxu0 %vm632_vm0, %v4235_v58  ;;  %3996 = vmatprep.subr.bf16.mxu1 %v4271_v59  ;;  %v4292_v0 = vld [vmem:[#allocation8 + $0x1a4] ss:$16 sps:$4 sm:$0xff]  }
 0x1b5   : > { %v1101_v7 = vmax.f32 %v810_v1, 0.0  ;;  %2476 = vmatprep.subr.bf16.mxu0 %v4292_v0 }
 0x1b6   : > { %v1218_v8 = vpack.c.bf16 %v1100_v4, %v1098_v3  ;;  %v4295_v3 = vld [vmem:[#allocation8 + $0x16c] ss:$16 sps:$4 sm:$0xff]   ;;  %2477 = vmatpush1.bf16.msra.mxu0 %v4290_v61 }
 0x1b7   : > { %v1219_v9 = vpack.c.bf16 %v1101_v7, %v1099_v6  ;;  %v813_v10 = vpop.f32.mrb[20].mxu0  ;;  %4012 = vmatpush1.bf16.msra.mxu1 %v4269_v2  ;;  %v4293_v2 = vld [vmem:[#allocation8 + $0x168] ss:$16 sps:$4 sm:$0xff]  }
 0x1b8   : > { %v814_v12 = vadd.f32 %v813_v10, %v4875_v33  ;;  %v815_v13 = vpop.f32.mrb[21].mxu0  ;;  %3997 = vmatprep.subr.bf16.mxu1 %v4277_v5 }
 0x1b9   : > { %v816_v15 = vadd.f32 %v815_v13, %v4878_v34  ;;  %v817_v16 = vpop.f32.mrb[22].mxu0  ;;  %1556 = vmatprep.mubr.bf16.mxu1 %v1219_v9 }
 0x1ba   : > { %v818_v17 = vadd.f32 %v817_v16, %v4875_v33  ;;  %v819_v18 = vpop.f32.mrb[23].mxu0  ;;  %1557 = vmatmul.mubr.bf16.gmra.mrb[16].mxu1 %v1218_v8  ;;  %v1102_v21 = vmax.f32 %v814_v12, 0.0 }
 0x1bb   : > { %v820_v19 = vadd.f32 %v819_v18, %v4878_v34  ;;  %4013 = vmatpush1.bf16.msra.mxu1 %v4275_v11  ;;  %v1103_v23 = vmax.f32 %v816_v15, 0.0 }
 0x1bc   : > { %v1104_v22 = vmax.f32 %v818_v17, 0.0  ;;  %3998 = vmatprep.subr.bf16.mxu1 %v4283_v14 }
 0x1bd   : > { %v1105_v24 = vmax.f32 %v820_v19, 0.0 }
 0x1be   : > { %v1220_v25 = vpack.c.bf16 %v1104_v22, %v1102_v21 }
 0x1bf   : > { %v1221_v29 = vpack.c.bf16 %v1105_v24, %v1103_v23  ;;  %v823_v30 = vpop.f32.mrb[24].mxu0  ;;  %4014 = vmatpush1.bf16.msra.mxu1 %v4281_v20 }
 0x1c0   : > { %v824_v35 = vadd.f32 %v823_v30, %v4875_v33  ;;  %v825_v36 = vpop.f32.mrb[25].mxu0  ;;  %3999 = vmatprep.subr.bf16.mxu1 %v4289_v32  ;;  %v4298_v32 = vld [vmem:[#allocation8 + $0x1c4] ss:$16 sps:$4 sm:$0xff]  }
 0x1c1   : > { %v826_v37 = vadd.f32 %v825_v36, %v4878_v34  ;;  %v827_v38 = vpop.f32.mrb[26].mxu0  ;;  %1566 = vmatprep.mubr.bf16.mxu1 %v1221_v29  ;;  %2478 = vmatprep.subr.bf16.mxu0 %v4298_v32 }
 0x1c2   : > { %v828_v39 = vadd.f32 %v827_v38, %v4875_v33  ;;  %v829_v40 = vpop.f32.mrb[27].mxu0  ;;  %1567 = vmatmul.mubr.bf16.gmra.mrb[20].mxu1 %v1220_v25  ;;  %v1106_v42 = vmax.f32 %v824_v35, 0.0  ;;  %v4301_v38 = vld [vmem:[#allocation8 + $0x18c] ss:$16 sps:$4 sm:$0xff]  }
 0x1c3   : > { %v830_v41 = vadd.f32 %v829_v40, %v4878_v34  ;;  %4015 = vmatpush1.bf16.msra.mxu1 %v4287_v31  ;;  %v1107_v44 = vmax.f32 %v826_v37, 0.0  ;;  %v4296_v31 = vld [vmem:[#allocation8 + $0x1c0] ss:$16 sps:$4 sm:$0xff]   ;;  %v4299_v37 = vld [vmem:[#allocation8 + $0x188] ss:$16 sps:$4 sm:$0xff]  }
 0x1c4   : > { %v1108_v43 = vmax.f32 %v828_v39, 0.0  ;;  %4000 = vmatprep.subr.bf16.mxu1 %v4295_v3  ;;  %2479 = vmatpush1.bf16.msra.mxu0 %v4296_v31  ;;  %v4304_v3 = vld [vmem:[#allocation8 + $0x1e4] ss:$16 sps:$4 sm:$0xff]  }
 0x1c5   : > { %v1109_v45 = vmax.f32 %v830_v41, 0.0  ;;  %2480 = vmatprep.subr.bf16.mxu0 %v4304_v3  ;;  %v4971_v3 = vld [vmem:[#allocation8 + $0x1e8] ss:$16 sps:$4 sm:$0xff]  }
 0x1c6   : > { %v1222_v46 = vpack.c.bf16 %v1108_v43, %v1106_v42 }
 0x1c7   : > { %v1223_v47 = vpack.c.bf16 %v1109_v45, %v1107_v44  ;;  %v833_v48 = vpop.f32.mrb[28].mxu0  ;;  %4016 = vmatpush1.bf16.msra.mxu1 %v4293_v2  ;;  %v4302_v2 = vld [vmem:[#allocation8 + $0x1e0] ss:$16 sps:$4 sm:$0xff]  }
 0x1c8   : > { %v834_v49 = vadd.f32 %v833_v48, %v4875_v33  ;;  %v835_v50 = vpop.f32.mrb[29].mxu0  ;;  %4001 = vmatprep.subr.bf16.mxu1 %v4301_v38  ;;  %2481 = vmatpush1.bf16.msra.mxu0 %v4302_v2 }
 0x1c9   : > { %v836_v51 = vadd.f32 %v835_v50, %v4878_v34  ;;  %v837_v52 = vpop.f32.mrb[30].mxu0  ;;  %1576 = vmatprep.mubr.bf16.mxu1 %v1223_v47  ;;  %2803 = vmatprep.subr.bf16.mxu0 %v4827_v62 }
 0x1ca   : > { %v838_v53 = vadd.f32 %v837_v52, %v4875_v33  ;;  %v839_v54 = vpop.f32.mrb[31].mxu0  ;;  %1577 = vmatmul.mubr.bf16.gmra.mrb[24].mxu1 %v1222_v46  ;;  %v1110_v56 = vmax.f32 %v834_v49, 0.0 }
 0x1cb   : > { %v840_v55 = vadd.f32 %v839_v54, %v4878_v34  ;;  %v1111_v58 = vmax.f32 %v836_v51, 0.0  ;;  %4017 = vmatpush1.bf16.msra.mxu1 %v4299_v37  ;;  %v4959_v37 = vld [vmem:[#allocation8 + $0x1cc] ss:$16 sps:$4 sm:$0xff]  }
 0x1cc   : > { %v1112_v57 = vmax.f32 %v838_v53, 0.0 }
 0x1cd   : > { %v1113_v59 = vmax.f32 %v840_v55, 0.0 }
 0x1ce   : > { %v1224_v60 = vpack.c.bf16 %v1112_v57, %v1110_v56 }
 0x1cf   : > { %v1225_v63 = vpack.c.bf16 %v1113_v59, %v1111_v58  ;;  %v843_v1 = vpop.f32.mrb[32].mxu0 }
 0x1d0   : > { %v844_v4 = vadd.f32 %v843_v1, %v4875_v33  ;;  %v845_v5 = vpop.f32.mrb[33].mxu0 }
 0x1d1   : > { %v846_v6 = vadd.f32 %v845_v5, %v4878_v34  ;;  %v847_v7 = vpop.f32.mrb[34].mxu0  ;;  %1586 = vmatprep.mubr.bf16.mxu1 %v1225_v63 }
 0x1d2   : > { %v848_v8 = vadd.f32 %v847_v7, %v4875_v33  ;;  %v849_v9 = vpop.f32.mrb[35].mxu0  ;;  %1587 = vmatmul.mubr.bf16.gmra.mrb[28].mxu1 %v1224_v60  ;;  %v1114_v11 = vmax.f32 %v844_v4, 0.0  ;;  %v4944_v7 = vld [vmem:[#allocation8 + $0x1ac] ss:$16 sps:$4 sm:$0xff]  }
 0x1d3   : > { %v850_v10 = vadd.f32 %v849_v9, %v4878_v34  ;;  %v1115_v13 = vmax.f32 %v846_v6, 0.0  ;;  %v4942_v6 = vld [vmem:[#allocation8 + $0x1a8] ss:$16 sps:$4 sm:$0xff]   ;;  %4002 = vmatprep.subr.bf16.mxu1 %v4944_v7 }
 0x1d4   : > { %v1116_v12 = vmax.f32 %v848_v8, 0.0  ;;  %4018 = vmatpush1.bf16.msra.mxu1 %v4942_v6 }
 0x1d5   : > { %v1117_v14 = vmax.f32 %v850_v10, 0.0  ;;  %4003 = vmatprep.subr.bf16.mxu1 %v4959_v37 }
 0x1d6   : > { %v1226_v15 = vpack.c.bf16 %v1116_v12, %v1114_v11 }
 0x1d7   : > { %v1227_v16 = vpack.c.bf16 %v1117_v14, %v1115_v13  ;;  %v853_v17 = vpop.f32.mrb[36].mxu0 }
 0x1d8   : > { %v854_v18 = vadd.f32 %v853_v17, %v4875_v33  ;;  %v855_v19 = vpop.f32.mrb[37].mxu0 }
 0x1d9   : > { %v856_v20 = vadd.f32 %v855_v19, %v4878_v34  ;;  %v857_v21 = vpop.f32.mrb[38].mxu0  ;;  %1596 = vmatprep.mubr.bf16.mxu1 %v1227_v16 }
 0x1da   : > { %v858_v22 = vadd.f32 %v857_v21, %v4875_v33  ;;  %v859_v23 = vpop.f32.mrb[39].mxu0  ;;  %1597 = vmatmul.mubr.bf16.gmra.mrb[32].mxu1 %v1226_v15  ;;  %v1118_v25 = vmax.f32 %v854_v18, 0.0 }
 0x1db   : > { %v860_v24 = vadd.f32 %v859_v23, %v4878_v34  ;;  %v1119_v28 = vmax.f32 %v856_v20, 0.0 }
 0x1dc   : > { %v1120_v27 = vmax.f32 %v858_v22, 0.0 }
 0x1dd   : > { %v1121_v29 = vmax.f32 %v860_v24, 0.0 }
 0x1de   : > { %v1228_v30 = vpack.c.bf16 %v1120_v27, %v1118_v25 }
 0x1df   : > { %v1229_v35 = vpack.c.bf16 %v1121_v29, %v1119_v28  ;;  %v863_v36 = vpop.f32.mrb[40].mxu0 }
 0x1e0   : > { %v864_v39 = vadd.f32 %v863_v36, %v4875_v33  ;;  %v865_v40 = vpop.f32.mrb[41].mxu0  ;;  %v4957_v36 = vld [vmem:[#allocation8 + $0x1c8] ss:$16 sps:$4 sm:$0xff]  }
 0x1e1   : > { %v866_v41 = vadd.f32 %v865_v40, %v4878_v34  ;;  %v867_v42 = vpop.f32.mrb[42].mxu0  ;;  %1606 = vmatprep.mubr.bf16.mxu1 %v1229_v35  ;;  %4019 = vmatpush1.bf16.msra.mxu1 %v4957_v36 }
 0x1e2   : > { %v868_v43 = vadd.f32 %v867_v42, %v4875_v33  ;;  %v869_v44 = vpop.f32.mrb[43].mxu0  ;;  %1607 = vmatmul.mubr.bf16.gmra.mrb[36].mxu1 %v1228_v30  ;;  %v1122_v46 = vmax.f32 %v864_v39, 0.0 }
 0x1e3   : > { %v870_v45 = vadd.f32 %v869_v44, %v4878_v34  ;;  %v1123_v48 = vmax.f32 %v866_v41, 0.0 }
 0x1e4   : > { %v1124_v47 = vmax.f32 %v868_v43, 0.0 }
 0x1e5   : > { %v1125_v49 = vmax.f32 %v870_v45, 0.0 }
 0x1e6   : > { %v1230_v50 = vpack.c.bf16 %v1124_v47, %v1122_v46 }
 0x1e7   : > { %v1231_v51 = vpack.c.bf16 %v1125_v49, %v1123_v48  ;;  %v873_v52 = vpop.f32.mrb[44].mxu0 }
 0x1e8   : > { %v874_v53 = vadd.f32 %v873_v52, %v4875_v33  ;;  %v875_v54 = vpop.f32.mrb[45].mxu0 }
 0x1e9   : > { %v876_v55 = vadd.f32 %v875_v54, %v4878_v34  ;;  %v877_v56 = vpop.f32.mrb[46].mxu0  ;;  %1616 = vmatprep.mubr.bf16.mxu1 %v1231_v51 }
 0x1ea   : > { %v878_v57 = vadd.f32 %v877_v56, %v4875_v33  ;;  %v879_v58 = vpop.f32.mrb[47].mxu0  ;;  %1617 = vmatmul.mubr.bf16.gmra.mrb[40].mxu1 %v1230_v50  ;;  %v1126_v60 = vmax.f32 %v874_v53, 0.0 }
 0x1eb   : > { %v880_v59 = vadd.f32 %v879_v58, %v4878_v34  ;;  %v1127_v0 = vmax.f32 %v876_v55, 0.0 }
 0x1ec   : > { %v1128_v61 = vmax.f32 %v878_v57, 0.0 }
 0x1ed   : > { %v1129_v63 = vmax.f32 %v880_v59, 0.0 }
 0x1ee   : > { %v1232_v1 = vpack.c.bf16 %v1128_v61, %v1126_v60 }
 0x1ef   : > { %v1233_v4 = vpack.c.bf16 %v1129_v63, %v1127_v0  ;;  %v883_v5 = vpop.f32.mrb[48].mxu0 }
 0x1f0   : > { %v884_v8 = vadd.f32 %v883_v5, %v4875_v33  ;;  %v885_v9 = vpop.f32.mrb[49].mxu0 }
 0x1f1   : > { %v886_v10 = vadd.f32 %v885_v9, %v4878_v34  ;;  %v887_v11 = vpop.f32.mrb[50].mxu0  ;;  %1626 = vmatprep.mubr.bf16.mxu1 %v1233_v4  ;;  %v4973_v4 = vld [vmem:[#allocation8 + $0x1ec] ss:$16 sps:$4 sm:$0xff]  }
 0x1f2   : > { %v888_v12 = vadd.f32 %v887_v11, %v4875_v33  ;;  %v889_v13 = vpop.f32.mrb[51].mxu0  ;;  %1627 = vmatmul.mubr.bf16.gmra.mrb[44].mxu1 %v1232_v1  ;;  %v1130_v15 = vmax.f32 %v884_v8, 0.0  ;;  %4004 = vmatprep.subr.bf16.mxu1 %v4973_v4 }
 0x1f3   : > { %v890_v14 = vadd.f32 %v889_v13, %v4878_v34  ;;  %v1131_v17 = vmax.f32 %v886_v10, 0.0  ;;  %4020 = vmatpush1.bf16.msra.mxu1 %v4971_v3 }
 0x1f4   : > { %v1132_v16 = vmax.f32 %v888_v12, 0.0 }
 0x1f5   : > { %v1133_v18 = vmax.f32 %v890_v14, 0.0 }
 0x1f6   : > { %v1234_v19 = vpack.c.bf16 %v1132_v16, %v1130_v15 }
 0x1f7   : > { %v1235_v20 = vpack.c.bf16 %v1133_v18, %v1131_v17  ;;  %v893_v21 = vpop.f32.mrb[52].mxu0 }
 0x1f8   : > { %v894_v22 = vadd.f32 %v893_v21, %v4875_v33  ;;  %v895_v23 = vpop.f32.mrb[53].mxu0 }
 0x1f9   : > { %v896_v24 = vadd.f32 %v895_v23, %v4878_v34  ;;  %v897_v25 = vpop.f32.mrb[54].mxu0  ;;  %1636 = vmatprep.mubr.bf16.mxu1 %v1235_v20 }
 0x1fa   : > { %v898_v27 = vadd.f32 %v897_v25, %v4875_v33  ;;  %v899_v28 = vpop.f32.mrb[55].mxu0  ;;  %1637 = vmatmul.mubr.bf16.gmra.mrb[48].mxu1 %v1234_v19  ;;  %v1134_v29 = vmax.f32 %v894_v22, 0.0 }
 0x1fb   : > { %v900_v62 = vadd.f32 %v899_v28, %v4878_v34  ;;  %v1135_v31 = vmax.f32 %v896_v24, 0.0 }
 0x1fc   : > { %v1136_v30 = vmax.f32 %v898_v27, 0.0 }
 0x1fd   : > { %v1137_v32 = vmax.f32 %v900_v62, 0.0 }
 0x1fe   : > { %v1236_v35 = vpack.c.bf16 %v1136_v30, %v1134_v29 }
 0x1ff   : > { %v1237_v38 = vpack.c.bf16 %v1137_v32, %v1135_v31  ;;  %v903_v39 = vpop.f32.mrb[56].mxu0 }
 0x200   : > { %v904_v40 = vadd.f32 %v903_v39, %v4875_v33  ;;  %v905_v41 = vpop.f32.mrb[57].mxu0 }
 0x201   : > { %v906_v42 = vadd.f32 %v905_v41, %v4878_v34  ;;  %v907_v43 = vpop.f32.mrb[58].mxu0  ;;  %1646 = vmatprep.mubr.bf16.mxu1 %v1237_v38 }
 0x202   : > { %v908_v44 = vadd.f32 %v907_v43, %v4875_v33  ;;  %v909_v45 = vpop.f32.mrb[59].mxu0  ;;  %1647 = vmatmul.mubr.bf16.gmra.mrb[52].mxu1 %v1236_v35  ;;  %v1138_v47 = vmax.f32 %v904_v40, 0.0 }
 0x203   : > { %v910_v46 = vadd.f32 %v909_v45, %v4878_v34  ;;  %v1139_v49 = vmax.f32 %v906_v42, 0.0 }
 0x204   : > { %v1140_v48 = vmax.f32 %v908_v44, 0.0 }
 0x205   : > { %v1141_v50 = vmax.f32 %v910_v46, 0.0 }
 0x206   : > { %v1238_v51 = vpack.c.bf16 %v1140_v48, %v1138_v47 }
 0x207   : > { %v1239_v52 = vpack.c.bf16 %v1141_v50, %v1139_v49  ;;  %v913_v53 = vpop.f32.mrb[60].mxu0 }
 0x208   : > { %v914_v54 = vadd.f32 %v913_v53, %v4875_v33  ;;  %v915_v55 = vpop.f32.mrb[61].mxu0 }
 0x209   : > { %v916_v56 = vadd.f32 %v915_v55, %v4878_v34  ;;  %v917_v57 = vpop.f32.mrb[62].mxu0  ;;  %1656 = vmatprep.mubr.bf16.mxu1 %v1239_v52 }
 0x20a   : > { %v918_v58 = vadd.f32 %v917_v57, %v4875_v33  ;;  %v919_v59 = vpop.f32.mrb[63].mxu0  ;;  %1657 = vmatmul.mubr.bf16.gmra.mrb[56].mxu1 %v1238_v51  ;;  %v1142_v61 = vmax.f32 %v914_v54, 0.0 }
 0x20b   : > { %v920_v60 = vadd.f32 %v919_v59, %v4878_v34  ;;  %v1143_v63 = vmax.f32 %v916_v56, 0.0 }
 0x20c   : > { %v1144_v0 = vmax.f32 %v918_v58, 0.0 }
 0x20d   : > { %v1145_v1 = vmax.f32 %v920_v60, 0.0 }
 0x20e   : > { %v1240_v2 = vpack.c.bf16 %v1144_v0, %v1142_v61 }
 0x20f   : > { %v1241_v5 = vpack.c.bf16 %v1145_v1, %v1143_v63  ;;  %v923_v8 = vpop.f32.mrb[64].mxu0 }
 0x210   : > { %v924_v9 = vadd.f32 %v923_v8, %v4875_v33  ;;  %v925_v10 = vpop.f32.mrb[65].mxu0 }
 0x211   : > { %v926_v11 = vadd.f32 %v925_v10, %v4878_v34  ;;  %v927_v12 = vpop.f32.mrb[66].mxu0  ;;  %1666 = vmatprep.mubr.bf16.mxu1 %v1241_v5 }
 0x212   : > { %v928_v13 = vadd.f32 %v927_v12, %v4875_v33  ;;  %v929_v14 = vpop.f32.mrb[67].mxu0  ;;  %1667 = vmatmul.mubr.bf16.gmra.mrb[60].mxu1 %v1240_v2  ;;  %v1146_v16 = vmax.f32 %v924_v9, 0.0 }
 0x213   : > { %v930_v15 = vadd.f32 %v929_v14, %v4878_v34  ;;  %v1147_v18 = vmax.f32 %v926_v11, 0.0 }
 0x214   : > { %v1148_v17 = vmax.f32 %v928_v13, 0.0 }
 0x215   : > { %v1149_v19 = vmax.f32 %v930_v15, 0.0 }
 0x216   : > { %v1242_v20 = vpack.c.bf16 %v1148_v17, %v1146_v16 }
 0x217   : > { %v1243_v21 = vpack.c.bf16 %v1149_v19, %v1147_v18  ;;  %v933_v22 = vpop.f32.mrb[68].mxu0 }
 0x218   : > { %v934_v23 = vadd.f32 %v933_v22, %v4875_v33  ;;  %v935_v24 = vpop.f32.mrb[69].mxu0 }
 0x219   : > { %v936_v25 = vadd.f32 %v935_v24, %v4878_v34  ;;  %v937_v27 = vpop.f32.mrb[70].mxu0  ;;  %1676 = vmatprep.mubr.bf16.mxu1 %v1243_v21 }
 0x21a   : > { %v938_v28 = vadd.f32 %v937_v27, %v4875_v33  ;;  %v939_v62 = vpop.f32.mrb[71].mxu0  ;;  %1677 = vmatmul.mubr.bf16.gmra.mrb[64].mxu1 %v1242_v20  ;;  %v1150_v30 = vmax.f32 %v934_v23, 0.0 }
 0x21b   : > { %v940_v29 = vadd.f32 %v939_v62, %v4878_v34  ;;  %v1151_v32 = vmax.f32 %v936_v25, 0.0 }
 0x21c   : > { %v1152_v31 = vmax.f32 %v938_v28, 0.0 }
 0x21d   : > { %v1153_v35 = vmax.f32 %v940_v29, 0.0 }
 0x21e   : > { %v1244_v38 = vpack.c.bf16 %v1152_v31, %v1150_v30 }
 0x21f   : > { %v1245_v39 = vpack.c.bf16 %v1153_v35, %v1151_v32  ;;  %v943_v40 = vpop.f32.mrb[72].mxu0 }
 0x220   : > { %v944_v41 = vadd.f32 %v943_v40, %v4875_v33  ;;  %v945_v42 = vpop.f32.mrb[73].mxu0 }
 0x221   : > { %v946_v43 = vadd.f32 %v945_v42, %v4878_v34  ;;  %v947_v44 = vpop.f32.mrb[74].mxu0  ;;  %1686 = vmatprep.mubr.bf16.mxu1 %v1245_v39 }
 0x222   : > { %v948_v45 = vadd.f32 %v947_v44, %v4875_v33  ;;  %v949_v46 = vpop.f32.mrb[75].mxu0  ;;  %1687 = vmatmul.mubr.bf16.gmra.mrb[68].mxu1 %v1244_v38  ;;  %v1154_v48 = vmax.f32 %v944_v41, 0.0 }
 0x223   : > { %v950_v47 = vadd.f32 %v949_v46, %v4878_v34  ;;  %v1155_v50 = vmax.f32 %v946_v43, 0.0 }
 0x224   : > { %v1156_v49 = vmax.f32 %v948_v45, 0.0 }
 0x225   : > { %v1157_v51 = vmax.f32 %v950_v47, 0.0 }
 0x226   : > { %v1246_v52 = vpack.c.bf16 %v1156_v49, %v1154_v48 }
 0x227   : > { %v1247_v53 = vpack.c.bf16 %v1157_v51, %v1155_v50  ;;  %v953_v54 = vpop.f32.mrb[76].mxu0 }
 0x228   : > { %v954_v55 = vadd.f32 %v953_v54, %v4875_v33  ;;  %v955_v56 = vpop.f32.mrb[77].mxu0 }
 0x229   : > { %v956_v57 = vadd.f32 %v955_v56, %v4878_v34  ;;  %v957_v58 = vpop.f32.mrb[78].mxu0  ;;  %1696 = vmatprep.mubr.bf16.mxu1 %v1247_v53 }
 0x22a   : > { %v958_v59 = vadd.f32 %v957_v58, %v4875_v33  ;;  %v959_v60 = vpop.f32.mrb[79].mxu0  ;;  %1697 = vmatmul.mubr.bf16.gmra.mrb[72].mxu1 %v1246_v52  ;;  %v1158_v0 = vmax.f32 %v954_v55, 0.0 }
 0x22b   : > { %v960_v61 = vadd.f32 %v959_v60, %v4878_v34  ;;  %v1159_v1 = vmax.f32 %v956_v57, 0.0 }
 0x22c   : > { %v1160_v63 = vmax.f32 %v958_v59, 0.0 }
 0x22d   : > { %v1161_v2 = vmax.f32 %v960_v61, 0.0 }
 0x22e   : > { %v1248_v5 = vpack.c.bf16 %v1160_v63, %v1158_v0 }
 0x22f   : > { %v1249_v8 = vpack.c.bf16 %v1161_v2, %v1159_v1  ;;  %v963_v9 = vpop.f32.mrb[80].mxu0 }
 0x230   : > { %v964_v10 = vadd.f32 %v963_v9, %v4875_v33  ;;  %v965_v11 = vpop.f32.mrb[81].mxu0 }
 0x231   : > { %v966_v12 = vadd.f32 %v965_v11, %v4878_v34  ;;  %v967_v13 = vpop.f32.mrb[82].mxu0  ;;  %1706 = vmatprep.mubr.bf16.mxu1 %v1249_v8 }
 0x232   : > { %v968_v14 = vadd.f32 %v967_v13, %v4875_v33  ;;  %v969_v15 = vpop.f32.mrb[83].mxu0  ;;  %1707 = vmatmul.mubr.bf16.gmra.mrb[76].mxu1 %v1248_v5  ;;  %v1162_v17 = vmax.f32 %v964_v10, 0.0 }
 0x233   : > { %v970_v16 = vadd.f32 %v969_v15, %v4878_v34  ;;  %v1163_v19 = vmax.f32 %v966_v12, 0.0 }
 0x234   : > { %v1164_v18 = vmax.f32 %v968_v14, 0.0 }
 0x235   : > { %v1165_v20 = vmax.f32 %v970_v16, 0.0 }
 0x236   : > { %v1250_v21 = vpack.c.bf16 %v1164_v18, %v1162_v17 }
 0x237   : > { %v1251_v22 = vpack.c.bf16 %v1165_v20, %v1163_v19  ;;  %v973_v23 = vpop.f32.mrb[84].mxu0 }
 0x238   : > { %v974_v24 = vadd.f32 %v973_v23, %v4875_v33  ;;  %v975_v25 = vpop.f32.mrb[85].mxu0 }
 0x239   : > { %v976_v27 = vadd.f32 %v975_v25, %v4878_v34  ;;  %v977_v28 = vpop.f32.mrb[86].mxu0  ;;  %1716 = vmatprep.mubr.bf16.mxu1 %v1251_v22 }
 0x23a   : > { %v978_v62 = vadd.f32 %v977_v28, %v4875_v33  ;;  %v979_v29 = vpop.f32.mrb[87].mxu0  ;;  %1717 = vmatmul.mubr.bf16.gmra.mrb[80].mxu1 %v1250_v21  ;;  %v1166_v31 = vmax.f32 %v974_v24, 0.0 }
 0x23b   : > { %v980_v30 = vadd.f32 %v979_v29, %v4878_v34  ;;  %v1167_v35 = vmax.f32 %v976_v27, 0.0 }
 0x23c   : > { %v1168_v32 = vmax.f32 %v978_v62, 0.0 }
 0x23d   : > { %v1169_v38 = vmax.f32 %v980_v30, 0.0 }
 0x23e   : > { %v1252_v39 = vpack.c.bf16 %v1168_v32, %v1166_v31 }
 0x23f   : > { %v1253_v40 = vpack.c.bf16 %v1169_v38, %v1167_v35  ;;  %v983_v41 = vpop.f32.mrb[88].mxu0 }
 0x240   : > { %v984_v42 = vadd.f32 %v983_v41, %v4875_v33  ;;  %v985_v43 = vpop.f32.mrb[89].mxu0 }
 0x241   : > { %v986_v44 = vadd.f32 %v985_v43, %v4878_v34  ;;  %v987_v45 = vpop.f32.mrb[90].mxu0  ;;  %1726 = vmatprep.mubr.bf16.mxu1 %v1253_v40 }
 0x242   : > { %v988_v46 = vadd.f32 %v987_v45, %v4875_v33  ;;  %v989_v47 = vpop.f32.mrb[91].mxu0  ;;  %1727 = vmatmul.mubr.bf16.gmra.mrb[84].mxu1 %v1252_v39  ;;  %v1170_v49 = vmax.f32 %v984_v42, 0.0 }
 0x243   : > { %v990_v48 = vadd.f32 %v989_v47, %v4878_v34  ;;  %v1171_v51 = vmax.f32 %v986_v44, 0.0 }
 0x244   : > { %v1172_v50 = vmax.f32 %v988_v46, 0.0 }
 0x245   : > { %v1173_v52 = vmax.f32 %v990_v48, 0.0 }
 0x246   : > { %v1254_v53 = vpack.c.bf16 %v1172_v50, %v1170_v49  ;;  %v1308_v49 = vsub.s32 1, %v4867_v26 }
 0x247   : > { %v1255_v54 = vpack.c.bf16 %v1173_v52, %v1171_v51  ;;  %v993_v55 = vpop.f32.mrb[92].mxu0  ;;  %v1312_v51 = vsub.s32 5, %v4867_v26 }
 0x248   : > { %v994_v56 = vadd.f32 %v993_v55, %v4875_v33  ;;  %v995_v57 = vpop.f32.mrb[93].mxu0 }
 0x249   : > { %v996_v58 = vadd.f32 %v995_v57, %v4878_v34  ;;  %v997_v59 = vpop.f32.mrb[94].mxu0  ;;  %1736 = vmatprep.mubr.bf16.mxu1 %v1255_v54  ;;  %v4314_v57 = vld [vmem:[#allocation10] sm:$0x77] }
 0x24a   : > { %v998_v60 = vadd.f32 %v997_v59, %v4875_v33  ;;  %v999_v61 = vpop.f32.mrb[95].mxu0  ;;  %1737 = vmatmul.mubr.bf16.gmra.mrb[88].mxu1 %v1254_v53  ;;  %v1174_v63 = vmax.f32 %v994_v56, 0.0 }
 0x24b   : > { %v1000_v0 = vadd.f32 %v999_v61, %v4878_v34  ;;  %v1175_v2 = vmax.f32 %v996_v58, 0.0  ;;  %v1309_v58 = vrot.slane %v4314_v57, %v1308_v49  ;;  %v1313_v61 = vrot.slane %v4314_v57, %v1312_v51 }
 0x24c   : > { %v1176_v1 = vmax.f32 %v998_v60, 0.0 }
 0x24d   : > { %v1177_v5 = vmax.f32 %v1000_v0, 0.0 }
 0x24e   : > { %v1256_v8 = vpack.c.bf16 %v1176_v1, %v1174_v63 }
 0x24f   : > { %v1257_v9 = vpack.c.bf16 %v1177_v5, %v1175_v2  ;;  %v1003_v10 = vpop.f32.mrb[96].mxu0 }
 0x250   : > { %v1004_v11 = vadd.f32 %v1003_v10, %v4875_v33  ;;  %v1005_v12 = vpop.f32.mrb[97].mxu0 }
 0x251   : > { %v1006_v13 = vadd.f32 %v1005_v12, %v4878_v34  ;;  %v1007_v14 = vpop.f32.mrb[98].mxu0  ;;  %1746 = vmatprep.mubr.bf16.mxu1 %v1257_v9  ;;  %v5026_v9 = vrot.slane %v1309_v58, %v1308_v49 }
 0x252   : > { %v1008_v15 = vadd.f32 %v1007_v14, %v4875_v33  ;;  %v1009_v16 = vpop.f32.mrb[99].mxu0  ;;  %1747 = vmatmul.mubr.bf16.gmra.mrb[92].mxu1 %v1256_v8  ;;  %v1178_v18 = vmax.f32 %v1004_v11, 0.0  ;;  %v5029_v11 = vrot.slane %v1313_v61, %v1308_v49 }
 0x253   : > { %v1010_v17 = vadd.f32 %v1009_v16, %v4878_v34  ;;  %v1179_v20 = vmax.f32 %v1006_v13, 0.0 }
 0x254   : > { %v1180_v19 = vmax.f32 %v1008_v15, 0.0 }
 0x255   : > { %v1181_v21 = vmax.f32 %v1010_v17, 0.0 }
 0x256   : > { %v1258_v22 = vpack.c.bf16 %v1180_v19, %v1178_v18 }
 0x257   : > { %v1259_v23 = vpack.c.bf16 %v1181_v21, %v1179_v20  ;;  %v1013_v24 = vpop.f32.mrb[100].mxu0 }
 0x258   : > { %v1014_v25 = vadd.f32 %v1013_v24, %v4875_v33  ;;  %v1015_v27 = vpop.f32.mrb[101].mxu0 }
 0x259   : > { %v1016_v28 = vadd.f32 %v1015_v27, %v4878_v34  ;;  %v1017_v62 = vpop.f32.mrb[102].mxu0  ;;  %1756 = vmatprep.mubr.bf16.mxu1 %v1259_v23 }
 0x25a   : > { %v1018_v29 = vadd.f32 %v1017_v62, %v4875_v33  ;;  %v1019_v30 = vpop.f32.mrb[103].mxu0  ;;  %1757 = vmatmul.mubr.bf16.gmra.mrb[96].mxu1 %v1258_v22  ;;  %v1182_v32 = vmax.f32 %v1014_v25, 0.0 }
 0x25b   : > { %v1020_v31 = vadd.f32 %v1019_v30, %v4878_v34  ;;  %v1183_v38 = vmax.f32 %v1016_v28, 0.0 }
 0x25c   : > { %v1184_v35 = vmax.f32 %v1018_v29, 0.0 }
 0x25d   : > { %v1185_v39 = vmax.f32 %v1020_v31, 0.0 }
 0x25e   : > { %v1260_v40 = vpack.c.bf16 %v1184_v35, %v1182_v32 }
 0x25f   : > { %v1261_v41 = vpack.c.bf16 %v1185_v39, %v1183_v38  ;;  %v1023_v42 = vpop.f32.mrb[104].mxu0 }
 0x260   : > { %v1024_v43 = vadd.f32 %v1023_v42, %v4875_v33  ;;  %v1025_v44 = vpop.f32.mrb[105].mxu0 }
 0x261   : > { %v1026_v45 = vadd.f32 %v1025_v44, %v4878_v34  ;;  %v1027_v46 = vpop.f32.mrb[106].mxu0  ;;  %1766 = vmatprep.mubr.bf16.mxu1 %v1261_v41 }
 0x262   : > { %v1028_v47 = vadd.f32 %v1027_v46, %v4875_v33  ;;  %v1029_v48 = vpop.f32.mrb[107].mxu0  ;;  %1767 = vmatmul.mubr.bf16.gmra.mrb[100].mxu1 %v1260_v40  ;;  %v1186_v52 = vmax.f32 %v1024_v43, 0.0 }
 0x263   : > { %v1030_v50 = vadd.f32 %v1029_v48, %v4878_v34  ;;  %v1187_v54 = vmax.f32 %v1026_v45, 0.0 }
 0x264   : > { %v1188_v53 = vmax.f32 %v1028_v47, 0.0 }
 0x265   : > { %v1189_v55 = vmax.f32 %v1030_v50, 0.0 }
 0x266   : > { %v1262_v56 = vpack.c.bf16 %v1188_v53, %v1186_v52 }
 0x267   : > { %v1263_v59 = vpack.c.bf16 %v1189_v55, %v1187_v54  ;;  %v1033_v60 = vpop.f32.mrb[108].mxu0 }
 0x268   : > { %v1034_v0 = vadd.f32 %v1033_v60, %v4875_v33  ;;  %v1035_v63 = vpop.f32.mrb[109].mxu0 }
 0x269   : > { %v1036_v1 = vadd.f32 %v1035_v63, %v4878_v34  ;;  %v1037_v2 = vpop.f32.mrb[110].mxu0  ;;  %1776 = vmatprep.mubr.bf16.mxu1 %v1263_v59  ;;  %v4315_v63 = vld [vmem:[#allocation8 + $0x8] ss:$16 sps:$4 sm:$0xff]  }
 0x26a   : > { %v1038_v5 = vadd.f32 %v1037_v2, %v4875_v33  ;;  %v1039_v8 = vpop.f32.mrb[111].mxu0  ;;  %1777 = vmatmul.mubr.bf16.gmra.mrb[104].mxu1 %v1262_v56  ;;  %v1190_v12 = vmax.f32 %v1034_v0, 0.0 }
 0x26b   : > { %v1040_v10 = vadd.f32 %v1039_v8, %v4878_v34  ;;  %v1191_v14 = vmax.f32 %v1036_v1, 0.0 }
 0x26c   : > { %v1192_v13 = vmax.f32 %v1038_v5, 0.0 }
 0x26d   : > { %v1193_v15 = vmax.f32 %v1040_v10, 0.0  ;;  %v1518_v16 = vpop.f32.mrb[0].mxu1  ;;  %v4316_v10 = vld [vmem:[#allocation8 + $0x2c] ss:$16 sps:$4 sm:$0xff]  }
 0x26e   : > { %v1264_v17 = vpack.c.bf16 %v1192_v13, %v1190_v12  ;;  %v1519_v18 = vadd.f32 %v1518_v16, %v5026_v9  ;;  %v1520_v19 = vpop.f32.mrb[1].mxu1 }
 0x26f   : > { %v1265_v20 = vpack.c.bf16 %v1193_v15, %v1191_v14  ;;  %v1521_v21 = vadd.f32 %v1520_v19, %v5029_v11  ;;  %v1043_v22 = vpop.f32.mrb[112].mxu0  ;;  %v1522_v23 = vpop.f32.mrb[2].mxu1 }
 0x270   : > { %v1044_v24 = vadd.f32 %v1043_v22, %v4875_v33  ;;  %v1523_v25 = vadd.f32 %v1522_v23, %v5026_v9  ;;  %v1045_v27 = vpop.f32.mrb[113].mxu0  ;;  %v1524_v28 = vpop.f32.mrb[3].mxu1  ;;  %v1837_v31 = vmax.f32 %v1519_v18, 0.0  ;;  %v4317_v22 = vld [vmem:[#allocation8 + $0x28] ss:$16 sps:$4 sm:$0xff]  }
 0x271   : > { %v1046_v62 = vadd.f32 %v1045_v27, %v4878_v34  ;;  %v1525_v29 = vadd.f32 %v1524_v28, %v5029_v11  ;;  %v1047_v30 = vpop.f32.mrb[114].mxu0  ;;  %1786 = vmatprep.mubr.bf16.mxu1 %v1265_v20  ;;  %v1838_v39 = vmax.f32 %v1521_v21, 0.0  ;;  %v4318_v27 = vld [vmem:[#allocation8 + $0x4c] ss:$16 sps:$4 sm:$0xff]  }
 0x272   : > { %v1839_v32 = vmax.f32 %v1523_v25, 0.0  ;;  %v1048_v35 = vadd.f32 %v1047_v30, %v4875_v33  ;;  %v1049_v38 = vpop.f32.mrb[115].mxu0  ;;  %1787 = vmatmul.mubr.bf16.gmra.mrb[108].mxu1 %v1264_v17  ;;  %v1194_v42 = vmax.f32 %v1044_v24, 0.0 }
 0x273   : > { %v1840_v40 = vmax.f32 %v1525_v29, 0.0  ;;  %v1050_v41 = vadd.f32 %v1049_v38, %v4878_v34  ;;  %v1195_v45 = vmax.f32 %v1046_v62, 0.0 }
 0x274   : > { %v5039_v43 = vpack.c.bf16 %v1839_v32, %v1837_v31  ;;  %v1196_v44 = vmax.f32 %v1048_v35, 0.0 }
 0x275   : > { %v5041_v46 = vpack.c.bf16 %v1840_v40, %v1838_v39  ;;  %v1197_v47 = vmax.f32 %v1050_v41, 0.0  ;;  %v1528_v48 = vpop.f32.mrb[4].mxu1 }
 0x276   : > { %v1266_v49 = vpack.c.bf16 %v1196_v44, %v1194_v42  ;;  %v1529_v50 = vadd.f32 %v1528_v48, %v5026_v9  ;;  %v1530_v51 = vpop.f32.mrb[5].mxu1  ;;  %v4319_v42 = vld [vmem:[#allocation8 + $0x48] ss:$16 sps:$4 sm:$0xff]  }
 0x277   : > { %v1267_v52 = vpack.c.bf16 %v1197_v47, %v1195_v45  ;;  %v1531_v53 = vadd.f32 %v1530_v51, %v5029_v11  ;;  %v1053_v54 = vpop.f32.mrb[116].mxu0  ;;  %v1532_v55 = vpop.f32.mrb[6].mxu1  ;;  %2482 = vmatprep.mubr.bf16.mxu0 %v5041_v46 }
 0x278   : > { %v1054_v56 = vadd.f32 %v1053_v54, %v4875_v33  ;;  %v1533_v57 = vadd.f32 %v1532_v55, %v5026_v9  ;;  %v1055_v58 = vpop.f32.mrb[117].mxu0  ;;  %v1534_v59 = vpop.f32.mrb[7].mxu1  ;;  %2483 = vmatmul.mubr.bf16.vlgmr.msra.gmra.mrb[128].mxu0 %v5039_v43  ;;  %v1841_v1 = vmax.f32 %v1529_v50, 0.0 }
 0x279   : > { %v1056_v60 = vadd.f32 %v1055_v58, %v4878_v34  ;;  %v1535_v61 = vadd.f32 %v1534_v59, %v5029_v11  ;;  %v1057_v0 = vpop.f32.mrb[118].mxu0  ;;  %1796 = vmatprep.mubr.bf16.mxu1 %v1267_v52  ;;  %2804 = vmatpush1.bf16.msra.mxu0 %v4315_v63  ;;  %v1842_v12 = vmax.f32 %v1531_v53, 0.0 }
 0x27a   : > { %v1843_v2 = vmax.f32 %v1533_v57, 0.0  ;;  %v1058_v5 = vadd.f32 %v1057_v0, %v4875_v33  ;;  %v1059_v8 = vpop.f32.mrb[119].mxu0  ;;  %1797 = vmatmul.mubr.bf16.gmra.mrb[112].mxu1 %v1266_v49  ;;  %2805 = vmatprep.subr.bf16.mxu0 %v4316_v10  ;;  %v1198_v15 = vmax.f32 %v1054_v56, 0.0  ;;  %v4320_v49 = vld [vmem:[#allocation8 + $0x6c] ss:$16 sps:$4 sm:$0xff]  }
 0x27b   : > { %v1844_v13 = vmax.f32 %v1535_v61, 0.0  ;;  %v1060_v14 = vadd.f32 %v1059_v8, %v4878_v34  ;;  %v1199_v18 = vmax.f32 %v1056_v60, 0.0  ;;  %v4321_v60 = vld [vmem:[#allocation8 + $0x68] ss:$16 sps:$4 sm:$0xff]  }
 0x27c   : > { %v5053_v16 = vpack.c.bf16 %v1843_v2, %v1841_v1  ;;  %v1200_v17 = vmax.f32 %v1058_v5, 0.0  ;;  %v4322_v1 = vld [vmem:[#allocation8 + $0x8c] ss:$16 sps:$4 sm:$0xff]  }
 0x27d   : > { %v5055_v19 = vpack.c.bf16 %v1844_v13, %v1842_v12  ;;  %v1201_v20 = vmax.f32 %v1060_v14, 0.0  ;;  %v1538_v21 = vpop.f32.mrb[8].mxu1  ;;  %2806 = vmatpush1.bf16.msra.mxu0 %v4317_v22 }
 0x27e   : > { %v1268_v23 = vpack.c.bf16 %v1200_v17, %v1198_v15  ;;  %v1539_v24 = vadd.f32 %v1538_v21, %v5026_v9  ;;  %v1540_v25 = vpop.f32.mrb[9].mxu1  ;;  %2807 = vmatprep.subr.bf16.mxu0 %v4318_v27  ;;  %v4323_v21 = vld [vmem:[#allocation8 + $0x88] ss:$16 sps:$4 sm:$0xff]   ;;  %v4324_v27 = vld [vmem:[#allocation8 + $0xac] ss:$16 sps:$4 sm:$0xff]  }
 0x27f   : > { %v1269_v28 = vpack.c.bf16 %v1201_v20, %v1199_v18  ;;  %v1541_v62 = vadd.f32 %v1540_v25, %v5029_v11  ;;  %v1063_v29 = vpop.f32.mrb[120].mxu0  ;;  %v1542_v30 = vpop.f32.mrb[10].mxu1  ;;  %2492 = vmatprep.mubr.bf16.mxu0 %v5055_v19 }
 0x280   : > { %v1064_v31 = vadd.f32 %v1063_v29, %v4875_v33  ;;  %v1543_v32 = vadd.f32 %v1542_v30, %v5026_v9  ;;  %v1065_v35 = vpop.f32.mrb[121].mxu0  ;;  %v1544_v38 = vpop.f32.mrb[11].mxu1  ;;  %2493 = vmatmul.mubr.bf16.gmra.mrb[132].mxu0 %v5053_v16  ;;  %v1845_v44 = vmax.f32 %v1539_v24, 0.0 }
 0x281   : > { %v1066_v39 = vadd.f32 %v1065_v35, %v4878_v34  ;;  %v1545_v40 = vadd.f32 %v1544_v38, %v5029_v11  ;;  %v1067_v41 = vpop.f32.mrb[122].mxu0  ;;  %1806 = vmatprep.mubr.bf16.mxu1 %v1269_v28  ;;  %2808 = vmatpush1.bf16.msra.mxu0 %v4319_v42  ;;  %v1846_v50 = vmax.f32 %v1541_v62, 0.0 }
 0x282   : > { %v1847_v45 = vmax.f32 %v1543_v32, 0.0  ;;  %v1068_v47 = vadd.f32 %v1067_v41, %v4875_v33  ;;  %v1069_v48 = vpop.f32.mrb[123].mxu0  ;;  %1807 = vmatmul.mubr.bf16.gmra.mrb[116].mxu1 %v1268_v23  ;;  %2809 = vmatprep.subr.bf16.mxu0 %v4320_v49  ;;  %v1202_v53 = vmax.f32 %v1064_v31, 0.0  ;;  %v4325_v41 = vld [vmem:[#allocation8 + $0xa8] ss:$16 sps:$4 sm:$0xff]  }
 0x283   : > { %v1848_v51 = vmax.f32 %v1545_v40, 0.0  ;;  %v1070_v52 = vadd.f32 %v1069_v48, %v4878_v34  ;;  %v1203_v56 = vmax.f32 %v1066_v39, 0.0 }
 0x284   : > { %v5067_v54 = vpack.c.bf16 %v1847_v45, %v1845_v44  ;;  %v1204_v55 = vmax.f32 %v1068_v47, 0.0  ;;  %v4326_v45 = vld [vmem:[#allocation8 + $0xcc] ss:$16 sps:$4 sm:$0xff]  }
 0x285   : > { %v5069_v57 = vpack.c.bf16 %v1848_v51, %v1846_v50  ;;  %v1205_v58 = vmax.f32 %v1070_v52, 0.0  ;;  %v1548_v59 = vpop.f32.mrb[12].mxu1  ;;  %2810 = vmatpush1.bf16.msra.mxu0 %v4321_v60  ;;  %v4327_v52 = vld [vmem:[#allocation8 + $0xc8] ss:$16 sps:$4 sm:$0xff]  }
 0x286   : > { %v1270_v61 = vpack.c.bf16 %v1204_v55, %v1202_v53  ;;  %v1549_v0 = vadd.f32 %v1548_v59, %v5026_v9  ;;  %v1550_v63 = vpop.f32.mrb[13].mxu1  ;;  %2811 = vmatprep.subr.bf16.mxu0 %v4322_v1 }
 0x287   : > { %v1271_v2 = vpack.c.bf16 %v1205_v58, %v1203_v56  ;;  %v1551_v5 = vadd.f32 %v1550_v63, %v5029_v11  ;;  %v1073_v8 = vpop.f32.mrb[124].mxu0  ;;  %v1552_v10 = vpop.f32.mrb[14].mxu1  ;;  %2502 = vmatprep.mubr.bf16.mxu0 %v5069_v57  ;;  %v4328_v56 = vld [vmem:[#allocation8 + $0xec] ss:$16 sps:$4 sm:$0xff]   ;;  %v4329_v63 = vld [vmem:[#allocation8 + $0xe8] ss:$16 sps:$4 sm:$0xff]  }
 0x288   : > { %v1074_v12 = vadd.f32 %v1073_v8, %v4875_v33  ;;  %v1553_v13 = vadd.f32 %v1552_v10, %v5026_v9  ;;  %v1075_v14 = vpop.f32.mrb[125].mxu0  ;;  %v1554_v15 = vpop.f32.mrb[15].mxu1  ;;  %2503 = vmatmul.mubr.bf16.gmra.mrb[136].mxu0 %v5067_v54  ;;  %v1849_v22 = vmax.f32 %v1549_v0, 0.0 }
 0x289   : > { %v1076_v17 = vadd.f32 %v1075_v14, %v4878_v34  ;;  %v1555_v18 = vadd.f32 %v1554_v15, %v5029_v11  ;;  %v1077_v20 = vpop.f32.mrb[126].mxu0  ;;  %1816 = vmatprep.mubr.bf16.mxu1 %v1271_v2  ;;  %2812 = vmatpush1.bf16.msra.mxu0 %v4323_v21  ;;  %v1850_v28 = vmax.f32 %v1551_v5, 0.0  ;;  %v4330_v5 = vld [vmem:[#allocation8 + $0x10c] ss:$16 sps:$4 sm:$0xff]   ;;  %v4331_v14 = vld [vmem:[#allocation8 + $0x108] ss:$16 sps:$4 sm:$0xff]  }
 0x28a   : > { %v1851_v23 = vmax.f32 %v1553_v13, 0.0  ;;  %v1078_v24 = vadd.f32 %v1077_v20, %v4875_v33  ;;  %v1079_v25 = vpop.f32.mrb[127].mxu0  ;;  %1817 = vmatmul.mubr.bf16.gmra.mrb[120].mxu1 %v1270_v61  ;;  %2813 = vmatprep.subr.bf16.mxu0 %v4324_v27  ;;  %v1206_v30 = vmax.f32 %v1074_v12, 0.0 }
 0x28b   : > { %v1852_v62 = vmax.f32 %v1555_v18, 0.0  ;;  %v1080_v29 = vadd.f32 %v1079_v25, %v4878_v34  ;;  %v1207_v35 = vmax.f32 %v1076_v17, 0.0  ;;  %v4332_v18 = vld [vmem:[#allocation8 + $0x12c] ss:$16 sps:$4 sm:$0xff]   ;;  %v4333_v25 = vld [vmem:[#allocation8 + $0x128] ss:$16 sps:$4 sm:$0xff]  }
 0x28c   : > { %v5081_v31 = vpack.c.bf16 %v1851_v23, %v1849_v22  ;;  %v1208_v32 = vmax.f32 %v1078_v24, 0.0 }
 0x28d   : > { %v1972_v38 = vpack.c.bf16 %v1852_v62, %v1850_v28  ;;  %v1209_v39 = vmax.f32 %v1080_v29, 0.0  ;;  %v1558_v40 = vpop.f32.mrb[16].mxu1  ;;  %2814 = vmatpush1.bf16.msra.mxu0 %v4325_v41  ;;  %v4334_v62 = vld [vmem:[#allocation8 + $0x14c] ss:$16 sps:$4 sm:$0xff]  }
 0x28e   : > { %v1272_v42 = vpack.c.bf16 %v1208_v32, %v1206_v30  ;;  %v1559_v33 = vadd.f32 %v1558_v40, %v5026_v9  ;;  %v1560_v44 = vpop.f32.mrb[17].mxu1  ;;  %2815 = vmatprep.subr.bf16.mxu0 %v4326_v45  ;;  %v4336_v41 = vld [vmem:[#allocation8 + $0x16c] ss:$16 sps:$4 sm:$0xff]  }
 0x28f   : > { %v1273_v47 = vpack.c.bf16 %v1209_v39, %v1207_v35  ;;  %v1561_v48 = vadd.f32 %v1560_v44, %v5029_v11  ;;  %v1562_v34 = vpop.f32.mrb[18].mxu1  ;;  %2512 = vmatprep.mubr.bf16.mxu0 %v1972_v38 }
 0x290   : > { %v1563_v49 = vadd.f32 %v1562_v34, %v5026_v9  ;;  %v1564_v50 = vpop.f32.mrb[19].mxu1  ;;  %2513 = vmatmul.mubr.bf16.gmra.mrb[140].mxu0 %v5081_v31  ;;  %v1853_v53 = vmax.f32 %v1559_v33, 0.0 }
 0x291   : > { %v1565_v51 = vadd.f32 %v1564_v50, %v5029_v11  ;;  %1826 = vmatprep.mubr.bf16.mxu1 %v1273_v47  ;;  %2816 = vmatpush1.bf16.msra.mxu0 %v4327_v52  ;;  %v1854_v58 = vmax.f32 %v1561_v48, 0.0  ;;  %v4337_v48 = vld [vmem:[#allocation8 + $0x168] ss:$16 sps:$4 sm:$0xff]   ;;  %v4338_v50 = vld [vmem:[#allocation8 + $0x18c] ss:$16 sps:$4 sm:$0xff]  }
 0x292   : > { %v1855_v55 = vmax.f32 %v1563_v49, 0.0  ;;  %1827 = vmatmul.mubr.bf16.gmra.mrb[124].mxu1 %v1272_v42  ;;  %2817 = vmatprep.subr.bf16.mxu0 %v4328_v56  ;;  %v4339_v56 = vld [vmem:[#allocation8 + $0x188] ss:$16 sps:$4 sm:$0xff]  }
 0x293   : > { %v1856_v59 = vmax.f32 %v1565_v51, 0.0  ;;  %2855 = vmatprep.mubr.bf16.mxu1 %v5069_v57 }
 0x294   : > { %v5089_v60 = vpack.c.bf16 %v1855_v55, %v1853_v53 }
 0x295   : > { %v1974_v61 = vpack.c.bf16 %v1856_v59, %v1854_v58  ;;  %v1568_v0 = vpop.f32.mrb[20].mxu1  ;;  %2818 = vmatpush1.bf16.msra.mxu0 %v4329_v63 }
 0x296   : > { %v1569_v1 = vadd.f32 %v1568_v0, %v5026_v9  ;;  %v1570_v2 = vpop.f32.mrb[21].mxu1  ;;  %2819 = vmatprep.subr.bf16.mxu0 %v4330_v5 }
 0x297   : > { %v1571_v8 = vadd.f32 %v1570_v2, %v5029_v11  ;;  %v1572_v10 = vpop.f32.mrb[22].mxu1  ;;  %2522 = vmatprep.mubr.bf16.mxu0 %v1974_v61 }
 0x298   : > { %v1573_v12 = vadd.f32 %v1572_v10, %v5026_v9  ;;  %v1574_v13 = vpop.f32.mrb[23].mxu1  ;;  %2523 = vmatmul.mubr.bf16.gmra.mrb[144].mxu0 %v5089_v60  ;;  %v1857_v15 = vmax.f32 %v1569_v1, 0.0 }
 0x299   : > { %v1575_v57 = vadd.f32 %v1574_v13, %v5029_v11  ;;  %2820 = vmatpush1.bf16.msra.mxu0 %v4331_v14  ;;  %v1858_v20 = vmax.f32 %v1571_v8, 0.0 }
 0x29a   : > { %v1859_v17 = vmax.f32 %v1573_v12, 0.0  ;;  %2856 = vmatmul.mubr.bf16.vlgmr.msra.gmra.mrb[128].mxu1 %v5067_v54  ;;  %2821 = vmatprep.subr.bf16.mxu0 %v4332_v18 }
 0x29b   : > { %v1860_v21 = vmax.f32 %v1575_v57, 0.0  ;;  %2865 = vmatprep.mubr.bf16.mxu1 %v1972_v38  ;;  %v4335_v38 = vld [vmem:[#allocation8 + $0x148] ss:$16 sps:$4 sm:$0xff]  }
 0x29c   : > { %v5097_v22 = vpack.c.bf16 %v1859_v17, %v1857_v15 }
 0x29d   : > { %v1976_v23 = vpack.c.bf16 %v1860_v21, %v1858_v20  ;;  %v1578_v24 = vpop.f32.mrb[24].mxu1  ;;  %2822 = vmatpush1.bf16.msra.mxu0 %v4333_v25 }
 0x29e   : > { %v1579_v27 = vadd.f32 %v1578_v24, %v5026_v9  ;;  %v1580_v28 = vpop.f32.mrb[25].mxu1  ;;  %2823 = vmatprep.subr.bf16.mxu0 %v4334_v62 }
 0x29f   : > { %v1581_v29 = vadd.f32 %v1580_v28, %v5029_v11  ;;  %v1582_v30 = vpop.f32.mrb[26].mxu1  ;;  %2532 = vmatprep.mubr.bf16.mxu0 %v1976_v23 }
 0x2a0   : > { %v1583_v54 = vadd.f32 %v1582_v30, %v5026_v9  ;;  %v1584_v32 = vpop.f32.mrb[27].mxu1  ;;  %2533 = vmatmul.mubr.bf16.gmra.mrb[148].mxu0 %v5097_v22  ;;  %v1861_v39 = vmax.f32 %v1579_v27, 0.0 }
 0x2a1   : > { %v1585_v35 = vadd.f32 %v1584_v32, %v5029_v11  ;;  %2824 = vmatpush1.bf16.msra.mxu0 %v4335_v38  ;;  %v1862_v42 = vmax.f32 %v1581_v29, 0.0 }
 0x2a2   : > { %v1863_v40 = vmax.f32 %v1583_v54, 0.0  ;;  %2866 = vmatmul.mubr.bf16.gmra.mrb[132].mxu1 %v5081_v31  ;;  %2825 = vmatprep.subr.bf16.mxu0 %v4336_v41 }
 0x2a3   : > { %v1864_v33 = vmax.f32 %v1585_v35, 0.0  ;;  %2875 = vmatprep.mubr.bf16.mxu1 %v1974_v61 }
 0x2a4   : > { %v1977_v44 = vpack.c.bf16 %v1863_v40, %v1861_v39 }
 0x2a5   : > { %v1978_v45 = vpack.c.bf16 %v1864_v33, %v1862_v42  ;;  %v1588_v47 = vpop.f32.mrb[28].mxu1  ;;  %2826 = vmatpush1.bf16.msra.mxu0 %v4337_v48 }
 0x2a6   : > { %v1589_v34 = vadd.f32 %v1588_v47, %v5026_v9  ;;  %v1590_v49 = vpop.f32.mrb[29].mxu1  ;;  %2827 = vmatprep.subr.bf16.mxu0 %v4338_v50 }
 0x2a7   : > { %v1591_v51 = vadd.f32 %v1590_v49, %v5029_v11  ;;  %v1592_v52 = vpop.f32.mrb[30].mxu1  ;;  %2542 = vmatprep.mubr.bf16.mxu0 %v1978_v45 }
 0x2a8   : > { %v1593_v31 = vadd.f32 %v1592_v52, %v5026_v9  ;;  %v1594_v53 = vpop.f32.mrb[31].mxu1  ;;  %2543 = vmatmul.mubr.bf16.gmra.mrb[152].mxu0 %v1977_v44  ;;  %v1865_v58 = vmax.f32 %v1589_v34, 0.0 }
 0x2a9   : > { %v1595_v55 = vadd.f32 %v1594_v53, %v5029_v11  ;;  %2828 = vmatpush1.bf16.msra.mxu0 %v4339_v56  ;;  %v1866_v61 = vmax.f32 %v1591_v51, 0.0 }
 0x2aa   : > { %v1867_v59 = vmax.f32 %v1593_v31, 0.0  ;;  %2876 = vmatmul.mubr.bf16.gmra.mrb[136].mxu1 %v5089_v60  ;;  %2829 = vmatprep.subr.bf16.mxu0 %v4944_v7 }
 0x2ab   : > { %v1868_v0 = vmax.f32 %v1595_v55, 0.0  ;;  %2885 = vmatprep.mubr.bf16.mxu1 %v1976_v23 }
 0x2ac   : > { %v1979_v63 = vpack.c.bf16 %v1867_v59, %v1865_v58 }
 0x2ad   : > { %v1980_v1 = vpack.c.bf16 %v1868_v0, %v1866_v61  ;;  %v1598_v2 = vpop.f32.mrb[32].mxu1  ;;  %2830 = vmatpush1.bf16.msra.mxu0 %v4942_v6 }
 0x2ae   : > { %v1599_v5 = vadd.f32 %v1598_v2, %v5026_v9  ;;  %v1600_v8 = vpop.f32.mrb[33].mxu1  ;;  %2831 = vmatprep.subr.bf16.mxu0 %v4959_v37 }
 0x2af   : > { %v1601_v10 = vadd.f32 %v1600_v8, %v5029_v11  ;;  %v1602_v12 = vpop.f32.mrb[34].mxu1  ;;  %2552 = vmatprep.mubr.bf16.mxu0 %v1980_v1 }
 0x2b0   : > { %v1603_v60 = vadd.f32 %v1602_v12, %v5026_v9  ;;  %v1604_v7 = vpop.f32.mrb[35].mxu1  ;;  %2553 = vmatmul.mubr.bf16.gmra.mrb[156].mxu0 %v1979_v63  ;;  %v1869_v57 = vmax.f32 %v1599_v5, 0.0 }
 0x2b1   : > { %v1605_v13 = vadd.f32 %v1604_v7, %v5029_v11  ;;  %2832 = vmatpush1.bf16.msra.mxu0 %v4957_v36  ;;  %v1870_v6 = vmax.f32 %v1601_v10, 0.0 }
 0x2b2   : > { %v1871_v14 = vmax.f32 %v1603_v60, 0.0  ;;  %2886 = vmatmul.mubr.bf16.gmra.mrb[140].mxu1 %v5097_v22  ;;  %2833 = vmatprep.subr.bf16.mxu0 %v4973_v4 }
 0x2b3   : > { %v1872_v37 = vmax.f32 %v1605_v13, 0.0  ;;  %2895 = vmatprep.mubr.bf16.mxu1 %v1978_v45 }
 0x2b4   : > { %v1981_v15 = vpack.c.bf16 %v1871_v14, %v1869_v57 }
 0x2b5   : > { %v1982_v17 = vpack.c.bf16 %v1872_v37, %v1870_v6  ;;  %v1608_v18 = vpop.f32.mrb[36].mxu1  ;;  %2834 = vmatpush1.bf16.msra.mxu0 %v4971_v3 }
 0x2b6   : > { %v1609_v20 = vadd.f32 %v1608_v18, %v5026_v9  ;;  %v1610_v21 = vpop.f32.mrb[37].mxu1 }
 0x2b7   : > { %v1611_v23 = vadd.f32 %v1610_v21, %v5029_v11  ;;  %v1612_v36 = vpop.f32.mrb[38].mxu1  ;;  %2562 = vmatprep.mubr.bf16.mxu0 %v1982_v17 }
 0x2b8   : > { %v1613_v24 = vadd.f32 %v1612_v36, %v5026_v9  ;;  %v1614_v22 = vpop.f32.mrb[39].mxu1  ;;  %2563 = vmatmul.mubr.bf16.gmra.mrb[160].mxu0 %v1981_v15  ;;  %v1873_v25 = vmax.f32 %v1609_v20, 0.0 }
 0x2b9   : > { %v1615_v4 = vadd.f32 %v1614_v22, %v5029_v11  ;;  %v1874_v28 = vmax.f32 %v1611_v23, 0.0 }
 0x2ba   : > { %v1875_v27 = vmax.f32 %v1613_v24, 0.0  ;;  %2896 = vmatmul.mubr.bf16.gmra.mrb[144].mxu1 %v1977_v44 }
 0x2bb   : > { %v1876_v62 = vmax.f32 %v1615_v4, 0.0  ;;  %2905 = vmatprep.mubr.bf16.mxu1 %v1980_v1 }
 0x2bc   : > { %v1983_v3 = vpack.c.bf16 %v1875_v27, %v1873_v25 }
 0x2bd   : > { %v1984_v29 = vpack.c.bf16 %v1876_v62, %v1874_v28  ;;  %v1618_v30 = vpop.f32.mrb[40].mxu1 }
 0x2be   : > { %v1619_v54 = vadd.f32 %v1618_v30, %v5026_v9  ;;  %v1620_v32 = vpop.f32.mrb[41].mxu1 }
 0x2bf   : > { %v1621_v35 = vadd.f32 %v1620_v32, %v5029_v11  ;;  %v1622_v38 = vpop.f32.mrb[42].mxu1  ;;  %2572 = vmatprep.mubr.bf16.mxu0 %v1984_v29 }
 0x2c0   : > { %v1623_v39 = vadd.f32 %v1622_v38, %v5026_v9  ;;  %v1624_v40 = vpop.f32.mrb[43].mxu1  ;;  %2573 = vmatmul.mubr.bf16.gmra.mrb[164].mxu0 %v1983_v3  ;;  %v1877_v42 = vmax.f32 %v1619_v54, 0.0 }
 0x2c1   : > { %v1625_v41 = vadd.f32 %v1624_v40, %v5029_v11  ;;  %v1878_v44 = vmax.f32 %v1621_v35, 0.0 }
 0x2c2   : > { %v1879_v33 = vmax.f32 %v1623_v39, 0.0  ;;  %2906 = vmatmul.mubr.bf16.gmra.mrb[148].mxu1 %v1979_v63 }
 0x2c3   : > { %v1880_v45 = vmax.f32 %v1625_v41, 0.0  ;;  %2915 = vmatprep.mubr.bf16.mxu1 %v1982_v17 }
 0x2c4   : > { %v1985_v47 = vpack.c.bf16 %v1879_v33, %v1877_v42 }
 0x2c5   : > { %v1986_v48 = vpack.c.bf16 %v1880_v45, %v1878_v44  ;;  %v1628_v34 = vpop.f32.mrb[44].mxu1 }
 0x2c6   : > { %v1629_v49 = vadd.f32 %v1628_v34, %v5026_v9  ;;  %v1630_v50 = vpop.f32.mrb[45].mxu1 }
 0x2c7   : > { %v1631_v51 = vadd.f32 %v1630_v50, %v5029_v11  ;;  %v1632_v52 = vpop.f32.mrb[46].mxu1  ;;  %2582 = vmatprep.mubr.bf16.mxu0 %v1986_v48 }
 0x2c8   : > { %v1633_v31 = vadd.f32 %v1632_v52, %v5026_v9  ;;  %v1634_v53 = vpop.f32.mrb[47].mxu1  ;;  %2583 = vmatmul.mubr.bf16.gmra.mrb[168].mxu0 %v1985_v47  ;;  %v1881_v56 = vmax.f32 %v1629_v49, 0.0 }
 0x2c9   : > { %v1635_v55 = vadd.f32 %v1634_v53, %v5029_v11  ;;  %v1882_v59 = vmax.f32 %v1631_v51, 0.0 }
 0x2ca   : > { %v1883_v58 = vmax.f32 %v1633_v31, 0.0  ;;  %2916 = vmatmul.mubr.bf16.gmra.mrb[152].mxu1 %v1981_v15 }
 0x2cb   : > { %v1884_v61 = vmax.f32 %v1635_v55, 0.0  ;;  %2925 = vmatprep.mubr.bf16.mxu1 %v1984_v29 }
 0x2cc   : > { %v1987_v0 = vpack.c.bf16 %v1883_v58, %v1881_v56 }
 0x2cd   : > { %v1988_v63 = vpack.c.bf16 %v1884_v61, %v1882_v59  ;;  %v1638_v1 = vpop.f32.mrb[48].mxu1 }
 0x2ce   : > { %v1639_v2 = vadd.f32 %v1638_v1, %v5026_v9  ;;  %v1640_v5 = vpop.f32.mrb[49].mxu1 }
 0x2cf   : > { %v1641_v8 = vadd.f32 %v1640_v5, %v5029_v11  ;;  %v1642_v10 = vpop.f32.mrb[50].mxu1  ;;  %2592 = vmatprep.mubr.bf16.mxu0 %v1988_v63 }
 0x2d0   : > { %v1643_v12 = vadd.f32 %v1642_v10, %v5026_v9  ;;  %v1644_v60 = vpop.f32.mrb[51].mxu1  ;;  %2593 = vmatmul.mubr.bf16.gmra.mrb[172].mxu0 %v1987_v0  ;;  %v1885_v13 = vmax.f32 %v1639_v2, 0.0 }
 0x2d1   : > { %v1645_v7 = vadd.f32 %v1644_v60, %v5029_v11  ;;  %v1886_v14 = vmax.f32 %v1641_v8, 0.0 }
 0x2d2   : > { %v1887_v57 = vmax.f32 %v1643_v12, 0.0  ;;  %2926 = vmatmul.mubr.bf16.gmra.mrb[156].mxu1 %v1983_v3 }
 0x2d3   : > { %v1888_v6 = vmax.f32 %v1645_v7, 0.0  ;;  %2935 = vmatprep.mubr.bf16.mxu1 %v1986_v48 }
 0x2d4   : > { %v1989_v37 = vpack.c.bf16 %v1887_v57, %v1885_v13 }
 0x2d5   : > { %v1990_v15 = vpack.c.bf16 %v1888_v6, %v1886_v14  ;;  %v1648_v17 = vpop.f32.mrb[52].mxu1 }
 0x2d6   : > { %v1649_v18 = vadd.f32 %v1648_v17, %v5026_v9  ;;  %v1650_v20 = vpop.f32.mrb[53].mxu1 }
 0x2d7   : > { %v1651_v21 = vadd.f32 %v1650_v20, %v5029_v11  ;;  %v1652_v23 = vpop.f32.mrb[54].mxu1  ;;  %2602 = vmatprep.mubr.bf16.mxu0 %v1990_v15 }
 0x2d8   : > { %v1653_v36 = vadd.f32 %v1652_v23, %v5026_v9  ;;  %v1654_v24 = vpop.f32.mrb[55].mxu1  ;;  %2603 = vmatmul.mubr.bf16.gmra.mrb[176].mxu0 %v1989_v37  ;;  %v1889_v4 = vmax.f32 %v1649_v18, 0.0 }
 0x2d9   : > { %v1655_v22 = vadd.f32 %v1654_v24, %v5029_v11  ;;  %v1890_v27 = vmax.f32 %v1651_v21, 0.0 }
 0x2da   : > { %v1891_v25 = vmax.f32 %v1653_v36, 0.0  ;;  %2936 = vmatmul.mubr.bf16.gmra.mrb[160].mxu1 %v1985_v47 }
 0x2db   : > { %v1892_v28 = vmax.f32 %v1655_v22, 0.0  ;;  %2945 = vmatprep.mubr.bf16.mxu1 %v1988_v63 }
 0x2dc   : > { %v1991_v62 = vpack.c.bf16 %v1891_v25, %v1889_v4 }
 0x2dd   : > { %v1992_v3 = vpack.c.bf16 %v1892_v28, %v1890_v27  ;;  %v1658_v29 = vpop.f32.mrb[56].mxu1 }
 0x2de   : > { %v1659_v30 = vadd.f32 %v1658_v29, %v5026_v9  ;;  %v1660_v54 = vpop.f32.mrb[57].mxu1 }
 0x2df   : > { %v1661_v32 = vadd.f32 %v1660_v54, %v5029_v11  ;;  %v1662_v35 = vpop.f32.mrb[58].mxu1  ;;  %2612 = vmatprep.mubr.bf16.mxu0 %v1992_v3 }
 0x2e0   : > { %v1663_v38 = vadd.f32 %v1662_v35, %v5026_v9  ;;  %v1664_v39 = vpop.f32.mrb[59].mxu1  ;;  %2613 = vmatmul.mubr.bf16.gmra.mrb[180].mxu0 %v1991_v62  ;;  %v1893_v41 = vmax.f32 %v1659_v30, 0.0 }
 0x2e1   : > { %v1665_v40 = vadd.f32 %v1664_v39, %v5029_v11  ;;  %v1894_v33 = vmax.f32 %v1661_v32, 0.0 }
 0x2e2   : > { %v1895_v42 = vmax.f32 %v1663_v38, 0.0  ;;  %2946 = vmatmul.mubr.bf16.gmra.mrb[164].mxu1 %v1987_v0 }
 0x2e3   : > { %v1896_v44 = vmax.f32 %v1665_v40, 0.0  ;;  %2955 = vmatprep.mubr.bf16.mxu1 %v1990_v15 }
 0x2e4   : > { %v1993_v45 = vpack.c.bf16 %v1895_v42, %v1893_v41 }
 0x2e5   : > { %v1994_v47 = vpack.c.bf16 %v1896_v44, %v1894_v33  ;;  %v1668_v48 = vpop.f32.mrb[60].mxu1 }
 0x2e6   : > { %v1669_v34 = vadd.f32 %v1668_v48, %v5026_v9  ;;  %v1670_v49 = vpop.f32.mrb[61].mxu1 }
 0x2e7   : > { %v1671_v50 = vadd.f32 %v1670_v49, %v5029_v11  ;;  %v1672_v51 = vpop.f32.mrb[62].mxu1  ;;  %2622 = vmatprep.mubr.bf16.mxu0 %v1994_v47 }
 0x2e8   : > { %v1673_v52 = vadd.f32 %v1672_v51, %v5026_v9  ;;  %v1674_v31 = vpop.f32.mrb[63].mxu1  ;;  %2623 = vmatmul.mubr.bf16.gmra.mrb[184].mxu0 %v1993_v45  ;;  %v1897_v55 = vmax.f32 %v1669_v34, 0.0 }
 0x2e9   : > { %v1675_v53 = vadd.f32 %v1674_v31, %v5029_v11  ;;  %v1898_v58 = vmax.f32 %v1671_v50, 0.0 }
 0x2ea   : > { %v1899_v56 = vmax.f32 %v1673_v52, 0.0  ;;  %2956 = vmatmul.mubr.bf16.gmra.mrb[168].mxu1 %v1989_v37 }
 0x2eb   : > { %v1900_v59 = vmax.f32 %v1675_v53, 0.0  ;;  %2965 = vmatprep.mubr.bf16.mxu1 %v1992_v3 }
 0x2ec   : > { %v1995_v61 = vpack.c.bf16 %v1899_v56, %v1897_v55 }
 0x2ed   : > { %v1996_v0 = vpack.c.bf16 %v1900_v59, %v1898_v58  ;;  %v1678_v63 = vpop.f32.mrb[64].mxu1 }
 0x2ee   : > { %v1679_v1 = vadd.f32 %v1678_v63, %v5026_v9  ;;  %v1680_v2 = vpop.f32.mrb[65].mxu1 }
 0x2ef   : > { %v1681_v5 = vadd.f32 %v1680_v2, %v5029_v11  ;;  %v1682_v8 = vpop.f32.mrb[66].mxu1  ;;  %2632 = vmatprep.mubr.bf16.mxu0 %v1996_v0 }
 0x2f0   : > { %v1683_v10 = vadd.f32 %v1682_v8, %v5026_v9  ;;  %v1684_v12 = vpop.f32.mrb[67].mxu1  ;;  %2633 = vmatmul.mubr.bf16.gmra.mrb[188].mxu0 %v1995_v61  ;;  %v1901_v7 = vmax.f32 %v1679_v1, 0.0 }
 0x2f1   : > { %v1685_v60 = vadd.f32 %v1684_v12, %v5029_v11  ;;  %v1902_v57 = vmax.f32 %v1681_v5, 0.0 }
 0x2f2   : > { %v1903_v13 = vmax.f32 %v1683_v10, 0.0  ;;  %2966 = vmatmul.mubr.bf16.gmra.mrb[172].mxu1 %v1991_v62 }
 0x2f3   : > { %v1904_v14 = vmax.f32 %v1685_v60, 0.0  ;;  %2975 = vmatprep.mubr.bf16.mxu1 %v1994_v47 }
 0x2f4   : > { %v1997_v6 = vpack.c.bf16 %v1903_v13, %v1901_v7 }
 0x2f5   : > { %v1998_v37 = vpack.c.bf16 %v1904_v14, %v1902_v57  ;;  %v1688_v15 = vpop.f32.mrb[68].mxu1 }
 0x2f6   : > { %v1689_v17 = vadd.f32 %v1688_v15, %v5026_v9  ;;  %v1690_v18 = vpop.f32.mrb[69].mxu1 }
 0x2f7   : > { %v1691_v20 = vadd.f32 %v1690_v18, %v5029_v11  ;;  %v1692_v21 = vpop.f32.mrb[70].mxu1  ;;  %2642 = vmatprep.mubr.bf16.mxu0 %v1998_v37 }
 0x2f8   : > { %v1693_v23 = vadd.f32 %v1692_v21, %v5026_v9  ;;  %v1694_v36 = vpop.f32.mrb[71].mxu1  ;;  %2643 = vmatmul.mubr.bf16.gmra.mrb[192].mxu0 %v1997_v6  ;;  %v1905_v22 = vmax.f32 %v1689_v17, 0.0 }
 0x2f9   : > { %v1695_v24 = vadd.f32 %v1694_v36, %v5029_v11  ;;  %v1906_v25 = vmax.f32 %v1691_v20, 0.0 }
 0x2fa   : > { %v1907_v4 = vmax.f32 %v1693_v23, 0.0  ;;  %2976 = vmatmul.mubr.bf16.gmra.mrb[176].mxu1 %v1993_v45 }
 0x2fb   : > { %v1908_v27 = vmax.f32 %v1695_v24, 0.0  ;;  %2985 = vmatprep.mubr.bf16.mxu1 %v1996_v0 }
 0x2fc   : > { %v1999_v28 = vpack.c.bf16 %v1907_v4, %v1905_v22 }
 0x2fd   : > { %v2000_v62 = vpack.c.bf16 %v1908_v27, %v1906_v25  ;;  %v1698_v3 = vpop.f32.mrb[72].mxu1 }
 0x2fe   : > { %v1699_v29 = vadd.f32 %v1698_v3, %v5026_v9  ;;  %v1700_v30 = vpop.f32.mrb[73].mxu1 }
 0x2ff   : > { %v1701_v54 = vadd.f32 %v1700_v30, %v5029_v11  ;;  %v1702_v32 = vpop.f32.mrb[74].mxu1  ;;  %2652 = vmatprep.mubr.bf16.mxu0 %v2000_v62 }
 0x300   : > { %v1703_v35 = vadd.f32 %v1702_v32, %v5026_v9  ;;  %v1704_v38 = vpop.f32.mrb[75].mxu1  ;;  %2653 = vmatmul.mubr.bf16.gmra.mrb[196].mxu0 %v1999_v28  ;;  %v1909_v40 = vmax.f32 %v1699_v29, 0.0 }
 0x301   : > { %v1705_v39 = vadd.f32 %v1704_v38, %v5029_v11  ;;  %v1910_v42 = vmax.f32 %v1701_v54, 0.0 }
 0x302   : > { %v1911_v41 = vmax.f32 %v1703_v35, 0.0  ;;  %2986 = vmatmul.mubr.bf16.gmra.mrb[180].mxu1 %v1995_v61 }
 0x303   : > { %v1912_v33 = vmax.f32 %v1705_v39, 0.0  ;;  %2995 = vmatprep.mubr.bf16.mxu1 %v1998_v37 }
 0x304   : > { %v2001_v44 = vpack.c.bf16 %v1911_v41, %v1909_v40 }
 0x305   : > { %v2002_v45 = vpack.c.bf16 %v1912_v33, %v1910_v42  ;;  %v1708_v47 = vpop.f32.mrb[76].mxu1 }
 0x306   : > { %v1709_v48 = vadd.f32 %v1708_v47, %v5026_v9  ;;  %v1710_v34 = vpop.f32.mrb[77].mxu1 }
 0x307   : > { %v1711_v49 = vadd.f32 %v1710_v34, %v5029_v11  ;;  %v1712_v50 = vpop.f32.mrb[78].mxu1  ;;  %2662 = vmatprep.mubr.bf16.mxu0 %v2002_v45 }
 0x308   : > { %v1713_v51 = vadd.f32 %v1712_v50, %v5026_v9  ;;  %v1714_v52 = vpop.f32.mrb[79].mxu1  ;;  %2663 = vmatmul.mubr.bf16.gmra.mrb[200].mxu0 %v2001_v44  ;;  %v1913_v53 = vmax.f32 %v1709_v48, 0.0 }
 0x309   : > { %v1715_v31 = vadd.f32 %v1714_v52, %v5029_v11  ;;  %v1914_v56 = vmax.f32 %v1711_v49, 0.0 }
 0x30a   : > { %v1915_v55 = vmax.f32 %v1713_v51, 0.0  ;;  %2996 = vmatmul.mubr.bf16.gmra.mrb[184].mxu1 %v1997_v6 }
 0x30b   : > { %v1916_v58 = vmax.f32 %v1715_v31, 0.0  ;;  %3005 = vmatprep.mubr.bf16.mxu1 %v2000_v62 }
 0x30c   : > { %v2003_v59 = vpack.c.bf16 %v1915_v55, %v1913_v53 }
 0x30d   : > { %v2004_v61 = vpack.c.bf16 %v1916_v58, %v1914_v56  ;;  %v1718_v0 = vpop.f32.mrb[80].mxu1 }
 0x30e   : > { %v1719_v63 = vadd.f32 %v1718_v0, %v5026_v9  ;;  %v1720_v1 = vpop.f32.mrb[81].mxu1 }
 0x30f   : > { %v1721_v2 = vadd.f32 %v1720_v1, %v5029_v11  ;;  %v1722_v5 = vpop.f32.mrb[82].mxu1  ;;  %2672 = vmatprep.mubr.bf16.mxu0 %v2004_v61 }
 0x310   : > { %v1723_v8 = vadd.f32 %v1722_v5, %v5026_v9  ;;  %v1724_v10 = vpop.f32.mrb[83].mxu1  ;;  %2673 = vmatmul.mubr.bf16.gmra.mrb[204].mxu0 %v2003_v59  ;;  %v1917_v60 = vmax.f32 %v1719_v63, 0.0 }
 0x311   : > { %v1725_v12 = vadd.f32 %v1724_v10, %v5029_v11  ;;  %v1918_v13 = vmax.f32 %v1721_v2, 0.0 }
 0x312   : > { %v1919_v7 = vmax.f32 %v1723_v8, 0.0  ;;  %3006 = vmatmul.mubr.bf16.gmra.mrb[188].mxu1 %v1999_v28 }
 0x313   : > { %v1920_v57 = vmax.f32 %v1725_v12, 0.0  ;;  %3015 = vmatprep.mubr.bf16.mxu1 %v2002_v45 }
 0x314   : > { %v2005_v14 = vpack.c.bf16 %v1919_v7, %v1917_v60 }
 0x315   : > { %v2006_v6 = vpack.c.bf16 %v1920_v57, %v1918_v13  ;;  %v1728_v37 = vpop.f32.mrb[84].mxu1 }
 0x316   : > { %v1729_v15 = vadd.f32 %v1728_v37, %v5026_v9  ;;  %v1730_v17 = vpop.f32.mrb[85].mxu1 }
 0x317   : > { %v1731_v18 = vadd.f32 %v1730_v17, %v5029_v11  ;;  %v1732_v20 = vpop.f32.mrb[86].mxu1  ;;  %2682 = vmatprep.mubr.bf16.mxu0 %v2006_v6 }
 0x318   : > { %v1733_v21 = vadd.f32 %v1732_v20, %v5026_v9  ;;  %v1734_v23 = vpop.f32.mrb[87].mxu1  ;;  %2683 = vmatmul.mubr.bf16.gmra.mrb[208].mxu0 %v2005_v14  ;;  %v1921_v24 = vmax.f32 %v1729_v15, 0.0 }
 0x319   : > { %v1735_v36 = vadd.f32 %v1734_v23, %v5029_v11  ;;  %v1922_v4 = vmax.f32 %v1731_v18, 0.0 }
 0x31a   : > { %v1923_v22 = vmax.f32 %v1733_v21, 0.0  ;;  %3016 = vmatmul.mubr.bf16.gmra.mrb[192].mxu1 %v2001_v44 }
 0x31b   : > { %v1924_v25 = vmax.f32 %v1735_v36, 0.0  ;;  %3025 = vmatprep.mubr.bf16.mxu1 %v2004_v61 }
 0x31c   : > { %v2007_v27 = vpack.c.bf16 %v1923_v22, %v1921_v24 }
 0x31d   : > { %v2008_v28 = vpack.c.bf16 %v1924_v25, %v1922_v4  ;;  %v1738_v62 = vpop.f32.mrb[88].mxu1 }
 0x31e   : > { %v1739_v3 = vadd.f32 %v1738_v62, %v5026_v9  ;;  %v1740_v29 = vpop.f32.mrb[89].mxu1 }
 0x31f   : > { %v1741_v30 = vadd.f32 %v1740_v29, %v5029_v11  ;;  %v1742_v54 = vpop.f32.mrb[90].mxu1  ;;  %2692 = vmatprep.mubr.bf16.mxu0 %v2008_v28 }
 0x320   : > { %v1743_v32 = vadd.f32 %v1742_v54, %v5026_v9  ;;  %v1744_v35 = vpop.f32.mrb[91].mxu1  ;;  %2693 = vmatmul.mubr.bf16.gmra.mrb[212].mxu0 %v2007_v27  ;;  %v1925_v39 = vmax.f32 %v1739_v3, 0.0 }
 0x321   : > { %v1745_v38 = vadd.f32 %v1744_v35, %v5029_v11  ;;  %v1926_v41 = vmax.f32 %v1741_v30, 0.0 }
 0x322   : > { %v1927_v40 = vmax.f32 %v1743_v32, 0.0  ;;  %3026 = vmatmul.mubr.bf16.gmra.mrb[196].mxu1 %v2003_v59 }
 0x323   : > { %v1928_v42 = vmax.f32 %v1745_v38, 0.0  ;;  %3035 = vmatprep.mubr.bf16.mxu1 %v2006_v6 }
 0x324   : > { %v2009_v33 = vpack.c.bf16 %v1927_v40, %v1925_v39 }
 0x325   : > { %v2010_v44 = vpack.c.bf16 %v1928_v42, %v1926_v41  ;;  %v1748_v45 = vpop.f32.mrb[92].mxu1 }
 0x326   : > { %v1749_v47 = vadd.f32 %v1748_v45, %v5026_v9  ;;  %v1750_v48 = vpop.f32.mrb[93].mxu1 }
 0x327   : > { %v1751_v34 = vadd.f32 %v1750_v48, %v5029_v11  ;;  %v1752_v49 = vpop.f32.mrb[94].mxu1  ;;  %2702 = vmatprep.mubr.bf16.mxu0 %v2010_v44 }
 0x328   : > { %v1753_v50 = vadd.f32 %v1752_v49, %v5026_v9  ;;  %v1754_v51 = vpop.f32.mrb[95].mxu1  ;;  %2703 = vmatmul.mubr.bf16.gmra.mrb[216].mxu0 %v2009_v33  ;;  %v1929_v31 = vmax.f32 %v1749_v47, 0.0 }
 0x329   : > { %v1755_v52 = vadd.f32 %v1754_v51, %v5029_v11  ;;  %v1930_v55 = vmax.f32 %v1751_v34, 0.0 }
 0x32a   : > { %v1931_v53 = vmax.f32 %v1753_v50, 0.0  ;;  %3036 = vmatmul.mubr.bf16.gmra.mrb[200].mxu1 %v2005_v14 }
 0x32b   : > { %v1932_v56 = vmax.f32 %v1755_v52, 0.0  ;;  %3045 = vmatprep.mubr.bf16.mxu1 %v2008_v28 }
 0x32c   : > { %v2011_v58 = vpack.c.bf16 %v1931_v53, %v1929_v31 }
 0x32d   : > { %v2012_v59 = vpack.c.bf16 %v1932_v56, %v1930_v55  ;;  %v1758_v61 = vpop.f32.mrb[96].mxu1 }
 0x32e   : > { %v1759_v0 = vadd.f32 %v1758_v61, %v5026_v9  ;;  %v1760_v63 = vpop.f32.mrb[97].mxu1 }
 0x32f   : > { %v1761_v1 = vadd.f32 %v1760_v63, %v5029_v11  ;;  %v1762_v2 = vpop.f32.mrb[98].mxu1  ;;  %2712 = vmatprep.mubr.bf16.mxu0 %v2012_v59 }
 0x330   : > { %v1763_v5 = vadd.f32 %v1762_v2, %v5026_v9  ;;  %v1764_v8 = vpop.f32.mrb[99].mxu1  ;;  %2713 = vmatmul.mubr.bf16.gmra.mrb[220].mxu0 %v2011_v58  ;;  %v1933_v12 = vmax.f32 %v1759_v0, 0.0 }
 0x331   : > { %v1765_v10 = vadd.f32 %v1764_v8, %v5029_v11  ;;  %v1934_v7 = vmax.f32 %v1761_v1, 0.0 }
 0x332   : > { %v1935_v60 = vmax.f32 %v1763_v5, 0.0  ;;  %3046 = vmatmul.mubr.bf16.gmra.mrb[204].mxu1 %v2007_v27 }
 0x333   : > { %v1936_v13 = vmax.f32 %v1765_v10, 0.0  ;;  %3055 = vmatprep.mubr.bf16.mxu1 %v2010_v44 }
 0x334   : > { %v2013_v57 = vpack.c.bf16 %v1935_v60, %v1933_v12 }
 0x335   : > { %v2014_v14 = vpack.c.bf16 %v1936_v13, %v1934_v7  ;;  %v1768_v6 = vpop.f32.mrb[100].mxu1 }
 0x336   : > { %v1769_v37 = vadd.f32 %v1768_v6, %v5026_v9  ;;  %v1770_v15 = vpop.f32.mrb[101].mxu1 }
 0x337   : > { %v1771_v17 = vadd.f32 %v1770_v15, %v5029_v11  ;;  %v1772_v18 = vpop.f32.mrb[102].mxu1  ;;  %2722 = vmatprep.mubr.bf16.mxu0 %v2014_v14 }
 0x338   : > { %v1773_v20 = vadd.f32 %v1772_v18, %v5026_v9  ;;  %v1774_v21 = vpop.f32.mrb[103].mxu1  ;;  %2723 = vmatmul.mubr.bf16.gmra.mrb[224].mxu0 %v2013_v57  ;;  %v1937_v36 = vmax.f32 %v1769_v37, 0.0 }
 0x339   : > { %v1775_v23 = vadd.f32 %v1774_v21, %v5029_v11  ;;  %v1938_v22 = vmax.f32 %v1771_v17, 0.0 }
 0x33a   : > { %v1939_v24 = vmax.f32 %v1773_v20, 0.0  ;;  %3056 = vmatmul.mubr.bf16.gmra.mrb[208].mxu1 %v2009_v33 }
 0x33b   : > { %v1940_v4 = vmax.f32 %v1775_v23, 0.0  ;;  %3065 = vmatprep.mubr.bf16.mxu1 %v2012_v59 }
 0x33c   : > { %v2015_v25 = vpack.c.bf16 %v1939_v24, %v1937_v36 }
 0x33d   : > { %v2016_v27 = vpack.c.bf16 %v1940_v4, %v1938_v22  ;;  %v1778_v28 = vpop.f32.mrb[104].mxu1 }
 0x33e   : > { %v1779_v62 = vadd.f32 %v1778_v28, %v5026_v9  ;;  %v1780_v3 = vpop.f32.mrb[105].mxu1 }
 0x33f   : > { %v1781_v29 = vadd.f32 %v1780_v3, %v5029_v11  ;;  %v1782_v30 = vpop.f32.mrb[106].mxu1  ;;  %2732 = vmatprep.mubr.bf16.mxu0 %v2016_v27 }
 0x340   : > { %v1783_v54 = vadd.f32 %v1782_v30, %v5026_v9  ;;  %v1784_v32 = vpop.f32.mrb[107].mxu1  ;;  %2733 = vmatmul.mubr.bf16.gmra.mrb[228].mxu0 %v2015_v25  ;;  %v1941_v38 = vmax.f32 %v1779_v62, 0.0 }
 0x341   : > { %v1785_v35 = vadd.f32 %v1784_v32, %v5029_v11  ;;  %v1942_v40 = vmax.f32 %v1781_v29, 0.0 }
 0x342   : > { %v1943_v39 = vmax.f32 %v1783_v54, 0.0  ;;  %3066 = vmatmul.mubr.bf16.gmra.mrb[212].mxu1 %v2011_v58 }
 0x343   : > { %v1944_v41 = vmax.f32 %v1785_v35, 0.0  ;;  %3075 = vmatprep.mubr.bf16.mxu1 %v2014_v14 }
 0x344   : > { %v2017_v42 = vpack.c.bf16 %v1943_v39, %v1941_v38 }
 0x345   : > { %v2018_v33 = vpack.c.bf16 %v1944_v41, %v1942_v40  ;;  %v1788_v44 = vpop.f32.mrb[108].mxu1 }
 0x346   : > { %v1789_v45 = vadd.f32 %v1788_v44, %v5026_v9  ;;  %v1790_v47 = vpop.f32.mrb[109].mxu1 }
 0x347   : > { %v1791_v48 = vadd.f32 %v1790_v47, %v5029_v11  ;;  %v1792_v34 = vpop.f32.mrb[110].mxu1  ;;  %2742 = vmatprep.mubr.bf16.mxu0 %v2018_v33 }
 0x348   : > { %v1793_v49 = vadd.f32 %v1792_v34, %v5026_v9  ;;  %v1794_v50 = vpop.f32.mrb[111].mxu1  ;;  %2743 = vmatmul.mubr.bf16.gmra.mrb[232].mxu0 %v2017_v42  ;;  %v1945_v52 = vmax.f32 %v1789_v45, 0.0 }
 0x349   : > { %v1795_v51 = vadd.f32 %v1794_v50, %v5029_v11  ;;  %v1946_v53 = vmax.f32 %v1791_v48, 0.0 }
 0x34a   : > { %v1947_v31 = vmax.f32 %v1793_v49, 0.0  ;;  %3076 = vmatmul.mubr.bf16.gmra.mrb[216].mxu1 %v2013_v57 }
 0x34b   : > { %v1948_v55 = vmax.f32 %v1795_v51, 0.0  ;;  %v5197_v56 = vpop.f32.mrb[128].mxu0  ;;  %3085 = vmatprep.mubr.bf16.mxu1 %v2016_v27 }
 0x34c   : > { %v2019_v58 = vpack.c.bf16 %v1947_v31, %v1945_v52  ;;  %v5199_v59 = vpop.f32.mrb[129].mxu0 }
 0x34d   : > { %v2020_v61 = vpack.c.bf16 %v1948_v55, %v1946_v53  ;;  %v1798_v0 = vpop.f32.mrb[112].mxu1  ;;  %v5201_v63 = vpop.f32.mrb[130].mxu0 }
 0x34e   : > { %v1799_v1 = vadd.f32 %v1798_v0, %v5026_v9  ;;  %v1800_v2 = vpop.f32.mrb[113].mxu1  ;;  %v5204_v5 = vpop.f32.mrb[131].mxu0 }
 0x34f   : > { %v1801_v8 = vadd.f32 %v1800_v2, %v5029_v11  ;;  %v1802_v10 = vpop.f32.mrb[114].mxu1  ;;  %2752 = vmatprep.mubr.bf16.mxu0 %v2020_v61 }
 0x350   : > { %v1803_v12 = vadd.f32 %v1802_v10, %v5026_v9  ;;  %v1804_v60 = vpop.f32.mrb[115].mxu1  ;;  %2753 = vmatmul.mubr.bf16.gmra.mrb[236].mxu0 %v2019_v58  ;;  %v1949_v13 = vmax.f32 %v1799_v1, 0.0 }
 0x351   : > { %v1805_v7 = vadd.f32 %v1804_v60, %v5029_v11  ;;  %v1950_v14 = vmax.f32 %v1801_v8, 0.0 }
 0x352   : > { %v1951_v57 = vmax.f32 %v1803_v12, 0.0  ;;  %3086 = vmatmul.mubr.bf16.gmra.mrb[220].mxu1 %v2015_v25 }
 0x353   : > { %v1952_v6 = vmax.f32 %v1805_v7, 0.0  ;;  %v5209_v37 = vpop.f32.mrb[132].mxu0  ;;  %3095 = vmatprep.mubr.bf16.mxu1 %v2018_v33 }
 0x354   : > { %v2021_v15 = vpack.c.bf16 %v1951_v57, %v1949_v13  ;;  %v5211_v17 = vpop.f32.mrb[133].mxu0 }
 0x355   : > { %v2022_v18 = vpack.c.bf16 %v1952_v6, %v1950_v14  ;;  %v1808_v20 = vpop.f32.mrb[116].mxu1  ;;  %v5213_v21 = vpop.f32.mrb[134].mxu0 }
 0x356   : > { %v1809_v23 = vadd.f32 %v1808_v20, %v5026_v9  ;;  %v1810_v36 = vpop.f32.mrb[117].mxu1  ;;  %v5216_v24 = vpop.f32.mrb[135].mxu0 }
 0x357   : > { %v1811_v22 = vadd.f32 %v1810_v36, %v5029_v11  ;;  %v1812_v4 = vpop.f32.mrb[118].mxu1  ;;  %2762 = vmatprep.mubr.bf16.mxu0 %v2022_v18 }
 0x358   : > { %v1813_v25 = vadd.f32 %v1812_v4, %v5026_v9  ;;  %v1814_v27 = vpop.f32.mrb[119].mxu1  ;;  %2763 = vmatmul.mubr.bf16.gmra.mrb[240].mxu0 %v2021_v15  ;;  %v1953_v62 = vmax.f32 %v1809_v23, 0.0 }
 0x359   : > { %v1815_v28 = vadd.f32 %v1814_v27, %v5029_v11  ;;  %v1954_v29 = vmax.f32 %v1811_v22, 0.0 }
 0x35a   : > { %v1955_v3 = vmax.f32 %v1813_v25, 0.0  ;;  %3096 = vmatmul.mubr.bf16.gmra.mrb[224].mxu1 %v2017_v42 }
 0x35b   : > { %v1956_v30 = vmax.f32 %v1815_v28, 0.0  ;;  %v5221_v54 = vpop.f32.mrb[136].mxu0  ;;  %3105 = vmatprep.mubr.bf16.mxu1 %v2020_v61 }
 0x35c   : > { %v2023_v32 = vpack.c.bf16 %v1955_v3, %v1953_v62  ;;  %v5223_v35 = vpop.f32.mrb[137].mxu0 }
 0x35d   : > { %v2024_v38 = vpack.c.bf16 %v1956_v30, %v1954_v29  ;;  %v1818_v39 = vpop.f32.mrb[120].mxu1  ;;  %v5225_v40 = vpop.f32.mrb[138].mxu0 }
 0x35e   : > { %v1819_v41 = vadd.f32 %v1818_v39, %v5026_v9  ;;  %v1820_v33 = vpop.f32.mrb[121].mxu1  ;;  %v5228_v44 = vpop.f32.mrb[139].mxu0 }
 0x35f   : > { %v1821_v45 = vadd.f32 %v1820_v33, %v5029_v11  ;;  %v1822_v42 = vpop.f32.mrb[122].mxu1  ;;  %2772 = vmatprep.mubr.bf16.mxu0 %v2024_v38 }
 0x360   : > { %v1823_v47 = vadd.f32 %v1822_v42, %v5026_v9  ;;  %v1824_v48 = vpop.f32.mrb[123].mxu1  ;;  %2773 = vmatmul.mubr.bf16.gmra.mrb[244].mxu0 %v2023_v32  ;;  %v1957_v49 = vmax.f32 %v1819_v41, 0.0 }
 0x361   : > { %v1825_v34 = vadd.f32 %v1824_v48, %v5029_v11  ;;  %v1958_v51 = vmax.f32 %v1821_v45, 0.0 }
 0x362   : > { %v1959_v50 = vmax.f32 %v1823_v47, 0.0  ;;  %3106 = vmatmul.mubr.bf16.gmra.mrb[228].mxu1 %v2019_v58 }
 0x363   : > { %v1960_v52 = vmax.f32 %v1825_v34, 0.0  ;;  %v5233_v31 = vpop.f32.mrb[140].mxu0  ;;  %3115 = vmatprep.mubr.bf16.mxu1 %v2022_v18 }
 0x364   : > { %v2025_v53 = vpack.c.bf16 %v1959_v50, %v1957_v49  ;;  %v5235_v55 = vpop.f32.mrb[141].mxu0 }
 0x365   : > { %v2026_v61 = vpack.c.bf16 %v1960_v52, %v1958_v51  ;;  %v1828_v0 = vpop.f32.mrb[124].mxu1  ;;  %v5237_v1 = vpop.f32.mrb[142].mxu0 }
 0x366   : > { %v1829_v2 = vadd.f32 %v1828_v0, %v5026_v9  ;;  %v1830_v8 = vpop.f32.mrb[125].mxu1  ;;  %v5240_v10 = vpop.f32.mrb[143].mxu0 }
 0x367   : > { %v1831_v12 = vadd.f32 %v1830_v8, %v5029_v11  ;;  %v1832_v58 = vpop.f32.mrb[126].mxu1  ;;  %2782 = vmatprep.mubr.bf16.mxu0 %v2026_v61 }
 0x368   : > { %v1833_v60 = vadd.f32 %v1832_v58, %v5026_v9  ;;  %v1834_v7 = vpop.f32.mrb[127].mxu1  ;;  %2783 = vmatmul.mubr.bf16.gmra.mrb[248].mxu0 %v2025_v53  ;;  %v1961_v57 = vmax.f32 %v1829_v2, 0.0 }
 0x369   : > { %v1835_v13 = vadd.f32 %v1834_v7, %v5029_v11  ;;  %v1962_v6 = vmax.f32 %v1831_v12, 0.0 }
 0x36a   : > { %v1963_v14 = vmax.f32 %v1833_v60, 0.0  ;;  %3116 = vmatmul.mubr.bf16.gmra.mrb[232].mxu1 %v2021_v15 }
 0x36b   : > { %v1964_v18 = vmax.f32 %v1835_v13, 0.0  ;;  %v5245_v20 = vpop.f32.mrb[144].mxu0  ;;  %3125 = vmatprep.mubr.bf16.mxu1 %v2024_v38 }
 0x36c   : > { %v2027_v23 = vpack.c.bf16 %v1963_v14, %v1961_v57  ;;  %v5247_v36 = vpop.f32.mrb[145].mxu0 }
 0x36d   : > { %v2028_v22 = vpack.c.bf16 %v1964_v18, %v1962_v6  ;;  %v5249_v4 = vpop.f32.mrb[146].mxu0  ;;  %v5251_v25 = vpop.f32.mrb[128].mxu1 }
 0x36e   : > { %v5253_v9 = vpop.f32.mrb[147].mxu0  ;;  %v5255_v27 = vpop.f32.mrb[129].mxu1 }
 0x36f   : > { %2792 = vmatprep.mubr.bf16.mxu0 %v2028_v22  ;;  %v5257_v11 = vpop.f32.mrb[130].mxu1 }
 0x370   : > { %2793 = vmatmul.mubr.bf16.gmra.mrb[252].mxu0 %v2027_v23  ;;  %v5259_v15 = vpop.f32.mrb[131].mxu1 }
 0x371   : > { %2835 = vmatprep.mubr.bf16.mxu0 %v5041_v46 }
 0x372   : > { %3126 = vmatmul.mubr.bf16.gmra.mrb[236].mxu1 %v2023_v32 }
 0x373   : > { %v5262_v28 = vpop.f32.mrb[148].mxu0  ;;  %3135 = vmatprep.mubr.bf16.mxu1 %v2026_v61 }
 0x374   : > { %v5264_v62 = vpop.f32.mrb[149].mxu0 }
 0x375   : > { %v5266_v3 = vpop.f32.mrb[150].mxu0  ;;  %v5268_v29 = vpop.f32.mrb[132].mxu1 }
 0x376   : > { %v5270_v30 = vpop.f32.mrb[151].mxu0  ;;  %v5272_v38 = vpop.f32.mrb[133].mxu1 }
 0x377   : > { %v5274_v39 = vpop.f32.mrb[134].mxu1 }
 0x378   : > { %2836 = vmatmul.mubr.bf16.vlgmr.msra.gmra.mrb[0].mxu0 %v5039_v43  ;;  %v5277_v41 = vpop.f32.mrb[135].mxu1 }
 0x379   : > { %2845 = vmatprep.mubr.bf16.mxu0 %v5055_v19 }
 0x37a   : > { %3136 = vmatmul.mubr.bf16.gmra.mrb[240].mxu1 %v2025_v53 }
 0x37b   : > { %v5280_v46 = vpop.f32.mrb[152].mxu0  ;;  %3145 = vmatprep.mubr.bf16.mxu1 %v2028_v22 }
 0x37c   : > { %v5282_v32 = vpop.f32.mrb[153].mxu0 }
 0x37d   : > { %v5284_v33 = vpop.f32.mrb[154].mxu0  ;;  %v5286_v45 = vpop.f32.mrb[136].mxu1 }
 0x37e   : > { %v5288_v42 = vpop.f32.mrb[155].mxu0  ;;  %v5290_v47 = vpop.f32.mrb[137].mxu1 }
 0x37f   : > { %v5292_v48 = vpop.f32.mrb[138].mxu1 }
 0x380   : > { %2846 = vmatmul.mubr.bf16.gmra.mrb[4].mxu0 %v5053_v16  ;;  %v5295_v43 = vpop.f32.mrb[139].mxu1 }
 0x382   : > { %3146 = vmatmul.mubr.bf16.gmra.mrb[244].mxu1 %v2027_v23 }
 0x383   : > { %v5297_v19 = vpop.f32.mrb[156].mxu0 }
 0x384   : > { %v5299_v34 = vpop.f32.mrb[157].mxu0 }
 0x385   : > { %v5301_v49 = vpop.f32.mrb[158].mxu0  ;;  %v5303_v50 = vpop.f32.mrb[140].mxu1 }
 0x386   : > { %v5305_v51 = vpop.f32.mrb[159].mxu0  ;;  %v5307_v52 = vpop.f32.mrb[141].mxu1 }
 0x387   : > { %v5309_v53 = vpop.f32.mrb[142].mxu1 }
 0x388   : > { %v5311_v61 = vpop.f32.mrb[143].mxu1 }
 0x38b   : > { %v5313_v16 = vpop.f32.mrb[160].mxu0 }
 0x38c   : > { %6915 = vst [vmem:[#allocation23_spill] sm:$0xff] %v5313_v16  ;;  %v5315_v0 = vpop.f32.mrb[161].mxu0 }
 0x38d   : > { %6916 = vst [vmem:[#allocation24_spill] sm:$0xff] %v5315_v0  ;;  %v5317_v2 = vpop.f32.mrb[162].mxu0  ;;  %v5319_v8 = vpop.f32.mrb[144].mxu1 }
 0x38e   : > { %6917 = vst [vmem:[#allocation25_spill] sm:$0xff] %v5317_v2  ;;  %6918 = vst [vmem:[#allocation26_spill] sm:$0xff] %v5319_v8  ;;  %v5321_v12 = vpop.f32.mrb[163].mxu0  ;;  %v5323_v58 = vpop.f32.mrb[145].mxu1 }
 0x38f   : > { %6919 = vst [vmem:[#allocation27_spill] sm:$0xff] %v5321_v12  ;;  %6920 = vst [vmem:[#allocation28_spill] sm:$0xff] %v5323_v58  ;;  %v5325_v60 = vpop.f32.mrb[146].mxu1 }
 0x390   : > { %6921 = vst [vmem:[#allocation29_spill] sm:$0xff] %v5325_v60  ;;  %v5327_v7 = vpop.f32.mrb[147].mxu1  ;;  %v2096_v60 = vsub.s32 2, %v4867_v26 }
 0x391   : > { %6922 = vst [vmem:[#allocation30_spill] sm:$0xff] %v5327_v7  ;;  %v2100_v7 = vsub.s32 6, %v4867_v26  ;;  %v328_v26 = vld [vmem:[#allocation10 + $0x8] sm:$0x77] }
 0x393   : > { %v5329_v13 = vpop.f32.mrb[164].mxu0 }
 0x394   : > { %6923 = vst [vmem:[#allocation31_spill] sm:$0xff] %v5329_v13  ;;  %v5331_v57 = vpop.f32.mrb[165].mxu0 }
 0x395   : > { %6924 = vst [vmem:[#allocation32_spill] sm:$0xff] %v5331_v57  ;;  %v5333_v14 = vpop.f32.mrb[166].mxu0  ;;  %v5335_v6 = vpop.f32.mrb[148].mxu1 }
 0x396   : > { %6925 = vst [vmem:[#allocation33_spill] sm:$0xff] %v5333_v14  ;;  %6926 = vst [vmem:[#allocation34_spill] sm:$0xff] %v5335_v6  ;;  %v5337_v18 = vpop.f32.mrb[167].mxu0  ;;  %v5339_v23 = vpop.f32.mrb[149].mxu1 }
 0x397   : > { %6927 = vst [vmem:[#allocation35_spill] sm:$0xff] %v5337_v18  ;;  %6928 = vst [vmem:[#allocation36_spill] sm:$0xff] %v5339_v23  ;;  %v5341_v22 = vpop.f32.mrb[150].mxu1  ;;  %v4340_v23 = vld [vmem:[#allocation10] sm:$0x77] }
 0x398   : > { %6929 = vst [vmem:[#allocation37_spill] sm:$0xff] %v5341_v22  ;;  %v5343_v12 = vpop.f32.mrb[151].mxu1  ;;  %v2097_v22 = vrot.slane %v4340_v23, %v2096_v60  ;;  %v2101_v8 = vrot.slane %v4340_v23, %v2100_v7 }
 0x399   : > { %6930 = vst [vmem:[#allocation38_spill] sm:$0xff] %v5343_v12 }
 0x39a   : > { %v5363_v0 = vrot.slane %v2097_v22, %v2096_v60 }
 0x39b   : > { %v5347_v58 = vpop.f32.mrb[168].mxu0 }
 0x39c   : > { %6931 = vst [vmem:[#allocation39_spill] sm:$0xff] %v5347_v58  ;;  %v5349_v13 = vpop.f32.mrb[169].mxu0  ;;  %v5365_v58 = vrot.slane %v2101_v8, %v2096_v60  ;;  %v5381_v22 = vadd.f32 %v5197_v56, %v5363_v0  ;;  %v5401_v56 = vadd.f32 %v5209_v37, %v5363_v0  ;;  %v5419_v37 = vadd.f32 %v5213_v21, %v5363_v0 }
 0x39d   : > { %6932 = vst [vmem:[#allocation40_spill] sm:$0xff] %v5349_v13  ;;  %v5351_v57 = vpop.f32.mrb[170].mxu0  ;;  %v5353_v14 = vpop.f32.mrb[152].mxu1  ;;  %v5438_v21 = vadd.f32 %v5225_v40, %v5363_v0  ;;  %v5458_v40 = vadd.f32 %v5237_v1, %v5363_v0 }
 0x39e   : > { %6933 = vst [vmem:[#allocation41_spill] sm:$0xff] %v5351_v57  ;;  %6934 = vst [vmem:[#allocation42_spill] sm:$0xff] %v5353_v14  ;;  %v5355_v6 = vpop.f32.mrb[171].mxu0  ;;  %v5357_v18 = vpop.f32.mrb[153].mxu1  ;;  %v5385_v8 = vadd.f32 %v5199_v59, %v5365_v58 }
 0x39f   : > { %6935 = vst [vmem:[#allocation43_spill] sm:$0xff] %v5355_v6  ;;  %6936 = vst [vmem:[#allocation44_spill] sm:$0xff] %v5357_v18  ;;  %v5359_v12 = vpop.f32.mrb[154].mxu1  ;;  %v2105_v18 = vrot.slane %v328_v26, %v2096_v60 }
 0x3a0   : > { %6937 = vst [vmem:[#allocation45_spill] sm:$0xff] %v5359_v12  ;;  %v5361_v2 = vpop.f32.mrb[155].mxu1  ;;  %v2109_v12 = vrot.slane %v328_v26, %v2100_v7  ;;  %6945 = vst [vmem:[#allocation53_spill] sm:$0xff] %v5401_v56  ;;  %v5483_v56 = vadd.f32 %v5249_v4, %v5363_v0 }
 0x3a1   : > { %v5403_v7 = vrot.slane %v2105_v18, %v2096_v60  ;;  %6947 = vst [vmem:[#allocation55_spill] sm:$0xff] %v5419_v37  ;;  %v5423_v18 = vadd.f32 %v5216_v24, %v5365_v58  ;;  %6950 = vst [vmem:[#allocation58_spill] sm:$0xff] %v5458_v40 }
 0x3a2   : > { %6957 = vst [vmem:[#allocation65_spill] sm:$0xff] %v5483_v56  ;;  %v5592_v56 = vadd.f32 %v5288_v42, %v5365_v58 }
 0x3a3   : > { %v5367_v13 = vpop.f32.mrb[172].mxu0  ;;  %6948 = vst [vmem:[#allocation56_spill] sm:$0xff] %v5423_v18  ;;  %v5515_v18 = vadd.f32 %v5257_v11, %v5403_v7  ;;  %v5534_v11 = vadd.f32 %v5266_v3, %v5363_v0  ;;  %v5554_v3 = vadd.f32 %v5274_v39, %v5403_v7 }
 0x3a4   : > { %6938 = vst [vmem:[#allocation46_spill] sm:$0xff] %v5367_v13  ;;  %v5369_v57 = vpop.f32.mrb[173].mxu0  ;;  %6975 = vst [vmem:[#allocation83_spill] sm:$0xff] %v5592_v56 }
 0x3a5   : > { %v5371_v14 = vpop.f32.mrb[174].mxu0  ;;  %v5373_v6 = vpop.f32.mrb[156].mxu1  ;;  %6961 = vst [vmem:[#allocation69_spill] sm:$0xff] %v5515_v18  ;;  %6965 = vst [vmem:[#allocation73_spill] sm:$0xff] %v5534_v11 }
 0x3a6   : > { %6939 = vst [vmem:[#allocation47_spill] sm:$0xff] %v5371_v14  ;;  %6940 = vst [vmem:[#allocation48_spill] sm:$0xff] %v5373_v6  ;;  %v5375_v16 = vpop.f32.mrb[175].mxu0  ;;  %v5377_v23 = vpop.f32.mrb[157].mxu1  ;;  %v5391_v14 = vadd.f32 %v5201_v63, %v5363_v0  ;;  %v5409_v63 = vadd.f32 %v5211_v17, %v5365_v58 }
 0x3a7   : > { %6941 = vst [vmem:[#allocation49_spill] sm:$0xff] %v5375_v16  ;;  %6942 = vst [vmem:[#allocation50_spill] sm:$0xff] %v5377_v23  ;;  %v5387_v13 = vpop.f32.mrb[158].mxu1  ;;  %v5395_v16 = vadd.f32 %v5204_v5, %v5365_v58 }
 0x3a8   : > { %6943 = vst [vmem:[#allocation51_spill] sm:$0xff] %v5387_v13  ;;  %v5397_v23 = vpop.f32.mrb[159].mxu1  ;;  %6946 = vst [vmem:[#allocation54_spill] sm:$0xff] %v5409_v63  ;;  %v5411_v13 = vrot.slane %v2109_v12, %v2096_v60  ;;  %v5430_v12 = vadd.f32 %v5221_v54, %v5363_v0  ;;  %v5434_v60 = vadd.f32 %v5223_v35, %v5365_v58 }
 0x3a9   : > { %6944 = vst [vmem:[#allocation52_spill] sm:$0xff] %v5397_v23  ;;  %v5446_v23 = vadd.f32 %v5228_v44, %v5365_v58  ;;  %v5450_v54 = vadd.f32 %v5233_v31, %v5363_v0  ;;  %v5454_v35 = vadd.f32 %v5235_v55, %v5365_v58  ;;  %v5467_v44 = vadd.f32 %v5240_v10, %v5365_v58 }
 0x3aa   : > { %v5471_v31 = vadd.f32 %v5245_v20, %v5363_v0  ;;  %v5475_v55 = vadd.f32 %v5247_v36, %v5365_v58  ;;  %v5487_v10 = vadd.f32 %v5251_v25, %v5403_v7  ;;  %v5519_v37 = vadd.f32 %v5259_v15, %v5411_v13  ;;  %6969 = vst [vmem:[#allocation77_spill] sm:$0xff] %v5554_v3 }
 0x3ab   : > { %v5413_v5 = vpop.f32.mrb[176].mxu0  ;;  %6949 = vst [vmem:[#allocation57_spill] sm:$0xff] %v5454_v35  ;;  %6953 = vst [vmem:[#allocation61_spill] sm:$0xff] %v5467_v44  ;;  %v5542_v25 = vadd.f32 %v5268_v29, %v5403_v7  ;;  %v5563_v29 = vadd.f32 %v5277_v41, %v5411_v13  ;;  %v5583_v41 = vadd.f32 %v5286_v45, %v5403_v7 }
 0x3ac   : > { %v5425_v26 = vpop.f32.mrb[177].mxu0  ;;  %6954 = vst [vmem:[#allocation62_spill] sm:$0xff] %v5471_v31  ;;  %6955 = vst [vmem:[#allocation63_spill] sm:$0xff] %v5475_v55  ;;  %v5603_v31 = vadd.f32 %v5290_v47, %v5411_v13  ;;  %v5615_v18 = vadd.f32 %v5295_v43, %v5411_v13  ;;  %v5622_v47 = vadd.f32 %v5297_v19, %v5363_v0 }
 0x3ad   : > { %v5440_v6 = vpop.f32.mrb[178].mxu0  ;;  %v5442_v24 = vpop.f32.mrb[160].mxu1  ;;  %6958 = vst [vmem:[#allocation66_spill] sm:$0xff] %v5487_v10  ;;  %6962 = vst [vmem:[#allocation70_spill] sm:$0xff] %v5519_v37  ;;  %v5579_v10 = vadd.f32 %v5284_v33, %v5363_v0  ;;  %v5611_v37 = vadd.f32 %v5292_v48, %v5403_v7  ;;  %v5626_v55 = vadd.f32 %v5299_v34, %v5365_v58 }
 0x3ae   : > { %v5460_v17 = vpop.f32.mrb[179].mxu0  ;;  %v5462_v59 = vpop.f32.mrb[161].mxu1  ;;  %6966 = vst [vmem:[#allocation74_spill] sm:$0xff] %v5542_v25  ;;  %6970 = vst [vmem:[#allocation78_spill] sm:$0xff] %v5563_v29  ;;  %v5630_v48 = vadd.f32 %v5301_v49, %v5363_v0  ;;  %v5638_v45 = vadd.f32 %v5303_v50, %v5403_v7  ;;  %v5642_v19 = vadd.f32 %v5305_v51, %v5365_v58  ;;  %v6987_v51 = vld [vmem:[#allocation23_spill] sm:$0xff]  ;;  %v7001_v25 = vld [vmem:[#allocation30_spill] sm:$0xff] }
 0x3af   : > { %6951 = vst [vmem:[#allocation59_spill] sm:$0xff] %v5460_v17  ;;  %6952 = vst [vmem:[#allocation60_spill] sm:$0xff] %v5462_v59  ;;  %v5477_v1 = vpop.f32.mrb[162].mxu1  ;;  %v5496_v17 = vadd.f32 %v5253_v9, %v5365_v58  ;;  %v5530_v59 = vadd.f32 %v5264_v62, %v5365_v58  ;;  %v5550_v62 = vadd.f32 %v5272_v38, %v5411_v13  ;;  %v7005_v29 = vld [vmem:[#allocation32_spill] sm:$0xff] }
 0x3b0   : > { %6956 = vst [vmem:[#allocation64_spill] sm:$0xff] %v5477_v1  ;;  %v5489_v20 = vpop.f32.mrb[163].mxu1  ;;  %v5507_v1 = vadd.f32 %v5255_v27, %v5411_v13  ;;  %v5526_v27 = vadd.f32 %v5262_v28, %v5363_v0  ;;  %v5546_v28 = vadd.f32 %v5270_v30, %v5365_v58  ;;  %v5567_v30 = vadd.f32 %v5280_v46, %v5363_v0 }
 0x3b1   : > { %6959 = vst [vmem:[#allocation67_spill] sm:$0xff] %v5496_v17  ;;  %6964 = vst [vmem:[#allocation72_spill] sm:$0xff] %v5530_v59  ;;  %v5571_v38 = vadd.f32 %v5282_v32, %v5365_v58  ;;  %v5646_v34 = vadd.f32 %v5307_v52, %v5411_v13  ;;  %v5650_v49 = vadd.f32 %v5309_v53, %v5403_v7  ;;  %v6989_v52 = vld [vmem:[#allocation24_spill] sm:$0xff] }
 0x3b2   : > { %6960 = vst [vmem:[#allocation68_spill] sm:$0xff] %v5507_v1  ;;  %6963 = vst [vmem:[#allocation71_spill] sm:$0xff] %v5526_v27  ;;  %v5659_v50 = vadd.f32 %v5311_v61, %v5411_v13  ;;  %v6993_v61 = vld [vmem:[#allocation26_spill] sm:$0xff]  ;;  %v7030_v27 = vld [vmem:[#allocation43_spill] sm:$0xff] }
 0x3b3   : > { %v5509_v9 = vpop.f32.mrb[180].mxu0  ;;  %6967 = vst [vmem:[#allocation75_spill] sm:$0xff] %v5546_v28  ;;  %6968 = vst [vmem:[#allocation76_spill] sm:$0xff] %v5550_v62  ;;  %v5679_v3 = vadd.f32 %v6993_v61, %v5403_v7  ;;  %v6997_v28 = vld [vmem:[#allocation28_spill] sm:$0xff]  ;;  %v5711_v61 = vadd.f32 %v7001_v25, %v5411_v13 }
 0x3b4   : > { %v5521_v63 = vpop.f32.mrb[181].mxu0  ;;  %6971 = vst [vmem:[#allocation79_spill] sm:$0xff] %v5567_v30  ;;  %6972 = vst [vmem:[#allocation80_spill] sm:$0xff] %v5571_v38  ;;  %v5667_v38 = vadd.f32 %v6989_v52, %v5365_v58  ;;  %v6995_v30 = vld [vmem:[#allocation27_spill] sm:$0xff] }
 0x3b5   : > { %v5536_v4 = vpop.f32.mrb[182].mxu0  ;;  %v5538_v15 = vpop.f32.mrb[164].mxu1  ;;  %6973 = vst [vmem:[#allocation81_spill] sm:$0xff] %v5579_v10  ;;  %6974 = vst [vmem:[#allocation82_spill] sm:$0xff] %v5583_v41  ;;  %v5663_v10 = vadd.f32 %v6987_v51, %v5363_v0  ;;  %v6991_v41 = vld [vmem:[#allocation25_spill] sm:$0xff]  ;;  %v7011_v52 = vld [vmem:[#allocation35_spill] sm:$0xff] }
 0x3b6   : > { %v5556_v36 = vpop.f32.mrb[183].mxu0  ;;  %v5558_v17 = vpop.f32.mrb[165].mxu1  ;;  %6976 = vst [vmem:[#allocation84_spill] sm:$0xff] %v5603_v31  ;;  %6977 = vst [vmem:[#allocation85_spill] sm:$0xff] %v5611_v37  ;;  %v5675_v31 = vadd.f32 %v6991_v41, %v5363_v0  ;;  %v5688_v37 = vadd.f32 %v6995_v30, %v5365_v58  ;;  %v7007_v41 = vld [vmem:[#allocation33_spill] sm:$0xff] }
 0x3b7   : > { %v5573_v39 = vpop.f32.mrb[166].mxu1  ;;  %6978 = vst [vmem:[#allocation86_spill] sm:$0xff] %v5615_v18  ;;  %6979 = vst [vmem:[#allocation87_spill] sm:$0xff] %v5622_v47  ;;  %v6999_v18 = vld [vmem:[#allocation29_spill] sm:$0xff] }
 0x3b8   : > { %v5585_v46 = vpop.f32.mrb[167].mxu1  ;;  %6980 = vst [vmem:[#allocation88_spill] sm:$0xff] %v5626_v55  ;;  %6981 = vst [vmem:[#allocation89_spill] sm:$0xff] %v5630_v48  ;;  %v5699_v48 = vadd.f32 %v6997_v28, %v5411_v13  ;;  %v7003_v28 = vld [vmem:[#allocation31_spill] sm:$0xff]  ;;  %v7025_v55 = vld [vmem:[#allocation41_spill] sm:$0xff] }
 0x3b9   : > { %6982 = vst [vmem:[#allocation90_spill] sm:$0xff] %v5638_v45  ;;  %6983 = vst [vmem:[#allocation91_spill] sm:$0xff] %v5642_v19 }
 0x3ba   : > { %6984 = vst [vmem:[#allocation92_spill] sm:$0xff] %v5646_v34  ;;  %6985 = vst [vmem:[#allocation93_spill] sm:$0xff] %v5650_v49  ;;  %v5707_v34 = vadd.f32 %v6999_v18, %v5403_v7  ;;  %v5726_v18 = vadd.f32 %v7007_v41, %v5363_v0  ;;  %v7015_v49 = vld [vmem:[#allocation37_spill] sm:$0xff] }
 0x3bb   : > { %v5605_v42 = vpop.f32.mrb[184].mxu0  ;;  %6986 = vst [vmem:[#allocation94_spill] sm:$0xff] %v5659_v50  ;;  %6988 = vst [vmem:[#allocation23_spill] sm:$0xff] %v5663_v10  ;;  %v7009_v10 = vld [vmem:[#allocation34_spill] sm:$0xff]  ;;  %v5746_v41 = vadd.f32 %v7015_v49, %v5403_v7 }
 0x3bc   : > { %v5617_v1 = vpop.f32.mrb[185].mxu0  ;;  %6990 = vst [vmem:[#allocation24_spill] sm:$0xff] %v5667_v38  ;;  %6992 = vst [vmem:[#allocation25_spill] sm:$0xff] %v5675_v31  ;;  %v5718_v38 = vadd.f32 %v7003_v28, %v5363_v0  ;;  %v5722_v31 = vadd.f32 %v7005_v29, %v5365_v58  ;;  %v5734_v50 = vadd.f32 %v7009_v10, %v5403_v7  ;;  %v7018_v10 = vld [vmem:[#allocation38_spill] sm:$0xff] }
 0x3bd   : > { %v5632_v33 = vpop.f32.mrb[186].mxu0  ;;  %v5634_v43 = vpop.f32.mrb[168].mxu1  ;;  %6994 = vst [vmem:[#allocation26_spill] sm:$0xff] %v5679_v3  ;;  %6996 = vst [vmem:[#allocation27_spill] sm:$0xff] %v5688_v37  ;;  %v5738_v28 = vadd.f32 %v7011_v52, %v5365_v58  ;;  %v7013_v37 = vld [vmem:[#allocation36_spill] sm:$0xff]  ;;  %v5755_v47 = vadd.f32 %v7018_v10, %v5411_v13  ;;  %v7020_v52 = vld [vmem:[#allocation39_spill] sm:$0xff] }
 0x3be   : > { %v5652_v32 = vpop.f32.mrb[187].mxu0  ;;  %v5654_v56 = vpop.f32.mrb[169].mxu1  ;;  %6998 = vst [vmem:[#allocation28_spill] sm:$0xff] %v5699_v48  ;;  %7000 = vst [vmem:[#allocation29_spill] sm:$0xff] %v5707_v34  ;;  %v5742_v29 = vadd.f32 %v7013_v37, %v5411_v13  ;;  %v5759_v11 = vadd.f32 %v7020_v52, %v5363_v0  ;;  %v7022_v37 = vld [vmem:[#allocation40_spill] sm:$0xff]  ;;  %v5771_v48 = vadd.f32 %v7025_v55, %v5363_v0  ;;  %v7027_v10 = vld [vmem:[#allocation42_spill] sm:$0xff] }
 0x3bf   : > { %v5669_v53 = vpop.f32.mrb[170].mxu1  ;;  %7002 = vst [vmem:[#allocation30_spill] sm:$0xff] %v5711_v61  ;;  %7004 = vst [vmem:[#allocation31_spill] sm:$0xff] %v5718_v38  ;;  %v5763_v59 = vadd.f32 %v7022_v37, %v5365_v58  ;;  %v5775_v40 = vadd.f32 %v7027_v10, %v5403_v7  ;;  %v5784_v34 = vadd.f32 %v7030_v27, %v5365_v58  ;;  %v7033_v55 = vld [vmem:[#allocation45_spill] sm:$0xff] }
 0x3c0   : > { %v5681_v51 = vpop.f32.mrb[171].mxu1  ;;  %7006 = vst [vmem:[#allocation32_spill] sm:$0xff] %v5722_v31  ;;  %7008 = vst [vmem:[#allocation33_spill] sm:$0xff] %v5726_v18  ;;  %v5801_v61 = vadd.f32 %v7033_v55, %v5403_v7  ;;  %v5807_v37 = vadd.f32 %v5361_v2, %v5411_v13  ;;  %v5818_v55 = vadd.f32 %v5369_v57, %v5365_v58 }
 0x3c1   : > { %7010 = vst [vmem:[#allocation34_spill] sm:$0xff] %v5734_v50  ;;  %7012 = vst [vmem:[#allocation35_spill] sm:$0xff] %v5738_v28 }
 0x3c2   : > { %7014 = vst [vmem:[#allocation36_spill] sm:$0xff] %v5742_v29  ;;  %7016 = vst [vmem:[#allocation37_spill] sm:$0xff] %v5746_v41 }
 0x3c3   : > { %v5701_v30 = vpop.f32.mrb[188].mxu0  ;;  %7019 = vst [vmem:[#allocation38_spill] sm:$0xff] %v5755_v47  ;;  %7021 = vst [vmem:[#allocation39_spill] sm:$0xff] %v5759_v11  ;;  %v7041_v47 = vld [vmem:[#allocation49_spill] sm:$0xff] }
 0x3c4   : > { %v5713_v62 = vpop.f32.mrb[189].mxu0  ;;  %7023 = vst [vmem:[#allocation40_spill] sm:$0xff] %v5763_v59  ;;  %7026 = vst [vmem:[#allocation41_spill] sm:$0xff] %v5771_v48  ;;  %v5833_v41 = vadd.f32 %v7041_v47, %v5365_v58 }
 0x3c5   : > { %v5728_v3 = vpop.f32.mrb[190].mxu0  ;;  %v5730_v25 = vpop.f32.mrb[172].mxu1  ;;  %7028 = vst [vmem:[#allocation42_spill] sm:$0xff] %v5775_v40  ;;  %7031 = vst [vmem:[#allocation43_spill] sm:$0xff] %v5784_v34 }
 0x3c6   : > { %v5748_v19 = vpop.f32.mrb[191].mxu0  ;;  %v5750_v45 = vpop.f32.mrb[173].mxu1 }
 0x3c7   : > { %7017 = vst [vmem:[#allocation95_spill] sm:$0xff] %v5750_v45  ;;  %v5765_v49 = vpop.f32.mrb[174].mxu1 }
 0x3c8   : > { %7024 = vst [vmem:[#allocation96_spill] sm:$0xff] %v5765_v49  ;;  %v5777_v52 = vpop.f32.mrb[175].mxu1  ;;  %v7032_v49 = vld [vmem:[#allocation44_spill] sm:$0xff] }
 0x3c9   : > { %7029 = vst [vmem:[#allocation97_spill] sm:$0xff] %v5777_v52  ;;  %v5795_v18 = vadd.f32 %v7032_v49, %v5411_v13  ;;  %v7034_v49 = vld [vmem:[#allocation46_spill] sm:$0xff] }
 0x3ca   : > { %v5811_v59 = vadd.f32 %v7034_v49, %v5363_v0  ;;  %v7039_v49 = vld [vmem:[#allocation48_spill] sm:$0xff] }
 0x3cb   : > { %v2644_v27 = vpop.f32.mrb[192].mxu0  ;;  %7042 = vst [vmem:[#allocation48_spill] sm:$0xff] %v5833_v41  ;;  %v7066_v41 = vld [vmem:[#allocation54_spill] sm:$0xff] }
 0x3cc   : > { %v2645_v10 = vadd.f32 %v2644_v27, %v5363_v0  ;;  %v2646_v52 = vpop.f32.mrb[193].mxu0  ;;  %v7036_v27 = vld [vmem:[#allocation47_spill] sm:$0xff] }
 0x3cd   : > { %v2647_v31 = vadd.f32 %v2646_v52, %v5365_v58  ;;  %v2648_v44 = vpop.f32.mrb[194].mxu0  ;;  %v5814_v40 = vpop.f32.mrb[176].mxu1  ;;  %v5822_v35 = vadd.f32 %v7036_v27, %v5363_v0  ;;  %v5829_v52 = vadd.f32 %v7039_v49, %v5403_v7  ;;  %v7048_v49 = vmax.f32 %v5381_v22, 0.0  ;;  %v7056_v22 = vld [vmem:[#allocation52_spill] sm:$0xff] }
 0x3ce   : > { %7035 = vst [vmem:[#allocation44_spill] sm:$0xff] %v5814_v40  ;;  %v3284_v34 = vmax.f32 %v2645_v10, 0.0  ;;  %v2649_v2 = vadd.f32 %v2648_v44, %v5363_v0  ;;  %v2650_v48 = vpop.f32.mrb[195].mxu0  ;;  %v5825_v11 = vpop.f32.mrb[177].mxu1  ;;  %v7044_v10 = vld [vmem:[#allocation50_spill] sm:$0xff]  ;;  %v7046_v44 = vld [vmem:[#allocation51_spill] sm:$0xff] }
 0x3cf   : > { %7037 = vst [vmem:[#allocation45_spill] sm:$0xff] %v5822_v35  ;;  %7038 = vst [vmem:[#allocation46_spill] sm:$0xff] %v5825_v11  ;;  %v3285_v57 = vmax.f32 %v2647_v31, 0.0  ;;  %v2651_v29 = vadd.f32 %v2650_v48, %v5365_v58  ;;  %v5836_v28 = vpop.f32.mrb[178].mxu1  ;;  %v5840_v27 = vadd.f32 %v7044_v10, %v5411_v13  ;;  %v5844_v50 = vadd.f32 %v7046_v44, %v5403_v7 }
 0x3d0   : > { %7040 = vst [vmem:[#allocation47_spill] sm:$0xff] %v5829_v52  ;;  %7043 = vst [vmem:[#allocation49_spill] sm:$0xff] %v5836_v28  ;;  %v5848_v38 = vmax.f32 %v7048_v49, %v3284_v34  ;;  %v3288_v11 = vmax.f32 %v2649_v2, 0.0  ;;  %v5850_v47 = vpop.f32.mrb[179].mxu1  ;;  %v7050_v28 = vmax.f32 %v5385_v8, 0.0  ;;  %v7052_v34 = vmax.f32 %v5391_v14, 0.0 }
 0x3d1   : > { %7045 = vst [vmem:[#allocation50_spill] sm:$0xff] %v5840_v27  ;;  %7047 = vst [vmem:[#allocation51_spill] sm:$0xff] %v5844_v50  ;;  %v3289_v10 = vmax.f32 %v2651_v29, 0.0  ;;  %v7054_v8 = vmax.f32 %v5395_v16, 0.0  ;;  %v5876_v14 = vadd.f32 %v7056_v22, %v5411_v13  ;;  %v5881_v31 = vadd.f32 %v5413_v5, %v5363_v0  ;;  %v7058_v5 = vld [vmem:[#allocation59_spill] sm:$0xff] }
 0x3d2   : > { %7049 = vst [vmem:[#allocation98_spill] sm:$0xff] %v5848_v38  ;;  %v5856_v40 = vmax.f32 %v7050_v28, %v3285_v57  ;;  %v5863_v2 = vmax.f32 %v7052_v34, %v3288_v11  ;;  %v5885_v16 = vadd.f32 %v5425_v26, %v5365_v58  ;;  %v5900_v57 = vadd.f32 %v7058_v5, %v5365_v58  ;;  %v7062_v5 = vld [vmem:[#allocation53_spill] sm:$0xff] }
 0x3d3   : > { %v5870_v28 = vmax.f32 %v7054_v8, %v3289_v10  ;;  %v2654_v29 = vpop.f32.mrb[196].mxu0  ;;  %7057 = vst [vmem:[#allocation52_spill] sm:$0xff] %v5876_v14  ;;  %v5889_v10 = vadd.f32 %v5440_v6, %v5363_v0  ;;  %v7059_v6 = vld [vmem:[#allocation60_spill] sm:$0xff] }
 0x3d4   : > { %7051 = vst [vmem:[#allocation99_spill] sm:$0xff] %v5856_v40  ;;  %7053 = vst [vmem:[#allocation100_spill] sm:$0xff] %v5863_v2  ;;  %v2655_v11 = vadd.f32 %v2654_v29, %v5363_v0  ;;  %v2656_v34 = vpop.f32.mrb[197].mxu0  ;;  %v5896_v29 = vadd.f32 %v5442_v24, %v5403_v7 }
 0x3d5   : > { %7055 = vst [vmem:[#allocation101_spill] sm:$0xff] %v5870_v28  ;;  %v2657_v8 = vadd.f32 %v2656_v34, %v5365_v58  ;;  %v2658_v44 = vpop.f32.mrb[198].mxu0  ;;  %v5892_v22 = vpop.f32.mrb[180].mxu1  ;;  %v5907_v34 = vadd.f32 %v7059_v6, %v5411_v13  ;;  %v7060_v28 = vld [vmem:[#allocation64_spill] sm:$0xff]  ;;  %v7063_v6 = vmax.f32 %v7062_v5, 0.0 }
 0x3d6   : > { %v3292_v48 = vmax.f32 %v2655_v11, 0.0  ;;  %v2659_v26 = vadd.f32 %v2658_v44, %v5363_v0  ;;  %v2660_v49 = vpop.f32.mrb[199].mxu0  ;;  %v5903_v45 = vpop.f32.mrb[181].mxu1  ;;  %v5911_v2 = vadd.f32 %v7060_v28, %v5403_v7  ;;  %v5918_v11 = vadd.f32 %v5489_v20, %v5411_v13 }
 0x3d7   : > { %v3293_v24 = vmax.f32 %v2657_v8, 0.0  ;;  %v2661_v40 = vadd.f32 %v2660_v49, %v5365_v58  ;;  %v5914_v38 = vpop.f32.mrb[182].mxu1  ;;  %v5922_v44 = vadd.f32 %v5509_v9, %v5363_v0  ;;  %v5933_v49 = vadd.f32 %v5521_v63, %v5365_v58 }
 0x3d8   : > { %v5926_v50 = vmax.f32 %v7063_v6, %v3292_v48  ;;  %v3296_v27 = vmax.f32 %v2659_v26, 0.0  ;;  %v5928_v28 = vpop.f32.mrb[183].mxu1  ;;  %v7067_v20 = vmax.f32 %v7066_v41, 0.0  ;;  %v7069_v26 = vld [vmem:[#allocation55_spill] sm:$0xff]  ;;  %v7072_v41 = vld [vmem:[#allocation56_spill] sm:$0xff]  ;;  %v5960_v63 = vadd.f32 %v5536_v4, %v5363_v0 }
 0x3d9   : > { %7061 = vst [vmem:[#allocation59_spill] sm:$0xff] %v5922_v44  ;;  %7065 = vst [vmem:[#allocation64_spill] sm:$0xff] %v5933_v49  ;;  %v3297_v35 = vmax.f32 %v2661_v40, 0.0  ;;  %v7070_v6 = vmax.f32 %v7069_v26, 0.0  ;;  %v5971_v48 = vadd.f32 %v5556_v36, %v5365_v58 }
 0x3da   : > { %7064 = vst [vmem:[#allocation60_spill] sm:$0xff] %v5926_v50  ;;  %v5937_v52 = vmax.f32 %v7067_v20, %v3293_v24  ;;  %v7073_v24 = vmax.f32 %v7072_v41, 0.0 }
 0x3db   : > { %v5944_v50 = vmax.f32 %v7070_v6, %v3296_v27  ;;  %v2664_v40 = vpop.f32.mrb[200].mxu0  ;;  %7076 = vst [vmem:[#allocation102_spill] sm:$0xff] %v5971_v48 }
 0x3dc   : > { %7068 = vst [vmem:[#allocation53_spill] sm:$0xff] %v5937_v52  ;;  %v5951_v20 = vmax.f32 %v7073_v24, %v3297_v35  ;;  %v2665_v27 = vadd.f32 %v2664_v40, %v5363_v0  ;;  %v2666_v26 = vpop.f32.mrb[201].mxu0  ;;  %v5964_v35 = vadd.f32 %v5538_v15, %v5403_v7  ;;  %v5975_v40 = vadd.f32 %v5558_v17, %v5411_v13 }
 0x3dd   : > { %7071 = vst [vmem:[#allocation54_spill] sm:$0xff] %v5944_v50  ;;  %v2667_v41 = vadd.f32 %v2666_v26, %v5365_v58  ;;  %v2668_v24 = vpop.f32.mrb[202].mxu0  ;;  %v5967_v9 = vpop.f32.mrb[184].mxu1  ;;  %v5982_v15 = vadd.f32 %v5573_v39, %v5403_v7  ;;  %v5986_v26 = vadd.f32 %v5585_v46, %v5411_v13  ;;  %v5993_v17 = vadd.f32 %v5605_v42, %v5363_v0 }
 0x3de   : > { %7074 = vst [vmem:[#allocation55_spill] sm:$0xff] %v5951_v20  ;;  %7075 = vst [vmem:[#allocation56_spill] sm:$0xff] %v5964_v35  ;;  %v3300_v6 = vmax.f32 %v2665_v27, 0.0  ;;  %v2669_v4 = vadd.f32 %v2668_v24, %v5363_v0  ;;  %v2670_v5 = vpop.f32.mrb[203].mxu0  ;;  %v5978_v14 = vpop.f32.mrb[185].mxu1  ;;  %v5997_v27 = vadd.f32 %v5617_v1, %v5365_v58  ;;  %v7082_v39 = vmax.f32 %v5430_v12, 0.0 }
 0x3df   : > { %7077 = vst [vmem:[#allocation103_spill] sm:$0xff] %v5975_v40  ;;  %7078 = vst [vmem:[#allocation104_spill] sm:$0xff] %v5982_v15  ;;  %v3301_v36 = vmax.f32 %v2667_v41, 0.0  ;;  %v2671_v8 = vadd.f32 %v2670_v5, %v5365_v58  ;;  %v5989_v20 = vpop.f32.mrb[186].mxu1  ;;  %v6007_v5 = vadd.f32 %v5632_v33, %v5363_v0  ;;  %v6011_v41 = vadd.f32 %v5634_v43, %v5403_v7  ;;  %v7118_v40 = vld [vmem:[#allocation65_spill] sm:$0xff] }
 0x3e0   : > { %7079 = vst [vmem:[#allocation105_spill] sm:$0xff] %v5986_v26  ;;  %7080 = vst [vmem:[#allocation106_spill] sm:$0xff] %v5993_v17  ;;  %v6001_v24 = vmax.f32 %v7082_v39, %v3300_v6  ;;  %v3304_v50 = vmax.f32 %v2669_v4, 0.0  ;;  %v6003_v46 = vpop.f32.mrb[187].mxu1  ;;  %v7085_v42 = vmax.f32 %v5434_v60, 0.0  ;;  %v7086_v39 = vmax.f32 %v5438_v21, 0.0 }
 0x3e1   : > { %7081 = vst [vmem:[#allocation107_spill] sm:$0xff] %v5997_v27  ;;  %7083 = vst [vmem:[#allocation108_spill] sm:$0xff] %v6007_v5  ;;  %v3305_v1 = vmax.f32 %v2671_v8, 0.0  ;;  %v7087_v60 = vmax.f32 %v5446_v23, 0.0  ;;  %v6035_v21 = vadd.f32 %v5652_v32, %v5365_v58  ;;  %v6042_v23 = vadd.f32 %v5654_v56, %v5411_v13 }
 0x3e2   : > { %7084 = vst [vmem:[#allocation109_spill] sm:$0xff] %v6011_v41  ;;  %v6015_v52 = vmax.f32 %v7085_v42, %v3301_v36  ;;  %v6022_v49 = vmax.f32 %v7086_v39, %v3304_v50  ;;  %v6049_v32 = vadd.f32 %v5669_v53, %v5403_v7  ;;  %v6060_v56 = vadd.f32 %v5701_v30, %v5363_v0 }
 0x3e3   : > { %v6029_v36 = vmax.f32 %v7087_v60, %v3305_v1  ;;  %v2674_v8 = vpop.f32.mrb[204].mxu0  ;;  %7088 = vst [vmem:[#allocation110_spill] sm:$0xff] %v6035_v21  ;;  %7089 = vst [vmem:[#allocation111_spill] sm:$0xff] %v6042_v23  ;;  %v7097_v30 = vmax.f32 %v5450_v54, 0.0 }
 0x3e4   : > { %v2675_v50 = vadd.f32 %v2674_v8, %v5363_v0  ;;  %v2676_v39 = vpop.f32.mrb[205].mxu0  ;;  %7090 = vst [vmem:[#allocation112_spill] sm:$0xff] %v6049_v32  ;;  %v6053_v8 = vadd.f32 %v5681_v51, %v5411_v13  ;;  %7092 = vst [vmem:[#allocation114_spill] sm:$0xff] %v6060_v56  ;;  %v6071_v51 = vadd.f32 %v5728_v3, %v5363_v0  ;;  %v7102_v3 = vld [vmem:[#allocation57_spill] sm:$0xff] }
 0x3e5   : > { %v2677_v1 = vadd.f32 %v2676_v39, %v5365_v58  ;;  %v2678_v60 = vpop.f32.mrb[206].mxu0  ;;  %v6045_v42 = vpop.f32.mrb[188].mxu1  ;;  %v6064_v39 = vadd.f32 %v5713_v62, %v5365_v58  ;;  %v7103_v27 = vmax.f32 %v7102_v3, 0.0 }
 0x3e6   : > { %7091 = vst [vmem:[#allocation113_spill] sm:$0xff] %v6053_v8  ;;  %v3308_v43 = vmax.f32 %v2675_v50, 0.0  ;;  %v2679_v44 = vadd.f32 %v2678_v60, %v5363_v0  ;;  %v2680_v6 = vpop.f32.mrb[207].mxu0  ;;  %v6056_v33 = vpop.f32.mrb[189].mxu1  ;;  %7095 = vst [vmem:[#allocation117_spill] sm:$0xff] %v6071_v51  ;;  %v6075_v50 = vadd.f32 %v5730_v25, %v5403_v7  ;;  %v7116_v8 = vld [vmem:[#allocation63_spill] sm:$0xff] }
 0x3e7   : > { %7093 = vst [vmem:[#allocation115_spill] sm:$0xff] %v6064_v39  ;;  %v3309_v53 = vmax.f32 %v2677_v1, 0.0  ;;  %v2681_v4 = vadd.f32 %v2680_v6, %v5365_v58  ;;  %v6067_v12 = vpop.f32.mrb[190].mxu1  ;;  %v6085_v6 = vadd.f32 %v5748_v19, %v5365_v58  ;;  %v7100_v1 = vld [vmem:[#allocation95_spill] sm:$0xff]  ;;  %v7114_v39 = vld [vmem:[#allocation62_spill] sm:$0xff]  ;;  %v7117_v32 = vmax.f32 %v7116_v8, 0.0 }
 0x3e8   : > { %7094 = vst [vmem:[#allocation116_spill] sm:$0xff] %v6067_v12  ;;  %7096 = vst [vmem:[#allocation118_spill] sm:$0xff] %v6075_v50  ;;  %v6079_v60 = vmax.f32 %v7097_v30, %v3308_v43  ;;  %v3312_v41 = vmax.f32 %v2679_v44, 0.0  ;;  %v6081_v62 = vpop.f32.mrb[191].mxu1  ;;  %v6089_v5 = vadd.f32 %v7100_v1, %v5411_v13  ;;  %v7104_v44 = vld [vmem:[#allocation96_spill] sm:$0xff]  ;;  %v7115_v56 = vmax.f32 %v7114_v39, 0.0 }
 0x3e9   : > { %7098 = vst [vmem:[#allocation119_spill] sm:$0xff] %v6081_v62  ;;  %7099 = vst [vmem:[#allocation120_spill] sm:$0xff] %v6085_v6  ;;  %v6093_v17 = vmax.f32 %v7103_v27, %v3309_v53  ;;  %v3313_v25 = vmax.f32 %v2681_v4, 0.0  ;;  %v6099_v30 = vadd.f32 %v7104_v44, %v5403_v7  ;;  %v7106_v62 = vld [vmem:[#allocation58_spill] sm:$0xff]  ;;  %v7108_v53 = vld [vmem:[#allocation61_spill] sm:$0xff]  ;;  %v7119_v12 = vmax.f32 %v7118_v40, 0.0 }
 0x3ea   : > { %7101 = vst [vmem:[#allocation95_spill] sm:$0xff] %v6089_v5  ;;  %v7107_v19 = vmax.f32 %v7106_v62, 0.0  ;;  %v7109_v4 = vmax.f32 %v7108_v53, 0.0  ;;  %v7110_v27 = vld [vmem:[#allocation97_spill] sm:$0xff] }
 0x3eb   : > { %7105 = vst [vmem:[#allocation57_spill] sm:$0xff] %v6099_v30  ;;  %v2684_v54 = vpop.f32.mrb[208].mxu0  ;;  %v6120_v1 = vadd.f32 %v7110_v27, %v5411_v13 }
 0x3ec   : > { %v6103_v26 = vmax.f32 %v7107_v19, %v3312_v41  ;;  %v6110_v3 = vmax.f32 %v7109_v4, %v3313_v25  ;;  %v2685_v41 = vadd.f32 %v2684_v54, %v5363_v0  ;;  %v2686_v62 = vpop.f32.mrb[209].mxu0  ;;  %v7112_v19 = vld [vmem:[#allocation44_spill] sm:$0xff] }
 0x3ed   : > { %7111 = vst [vmem:[#allocation96_spill] sm:$0xff] %v6120_v1  ;;  %v2687_v25 = vadd.f32 %v2686_v62, %v5365_v58  ;;  %v2688_v53 = vpop.f32.mrb[210].mxu0  ;;  %v3017_v4 = vpop.f32.mrb[192].mxu1  ;;  %v6128_v15 = vadd.f32 %v7112_v19, %v5403_v7 }
 0x3ee   : > { %v3316_v44 = vmax.f32 %v2685_v41, 0.0  ;;  %v2689_v23 = vadd.f32 %v2688_v53, %v5363_v0  ;;  %v3018_v54 = vadd.f32 %v3017_v4, %v5403_v7  ;;  %v2690_v50 = vpop.f32.mrb[211].mxu0  ;;  %v3019_v51 = vpop.f32.mrb[193].mxu1 }
 0x3ef   : > { %7113 = vst [vmem:[#allocation58_spill] sm:$0xff] %v6128_v15  ;;  %v3317_v5 = vmax.f32 %v2687_v25, 0.0  ;;  %v2691_v27 = vadd.f32 %v2690_v50, %v5365_v58  ;;  %v3020_v62 = vadd.f32 %v3019_v51, %v5411_v13  ;;  %v3021_v6 = vpop.f32.mrb[194].mxu1 }
 0x3f0   : > { %v6134_v43 = vmax.f32 %v7115_v56, %v3316_v44  ;;  %v3320_v41 = vmax.f32 %v2689_v23, 0.0  ;;  %v3302_v53 = vmax.f32 %v3018_v54, 0.0  ;;  %v3022_v4 = vadd.f32 %v3021_v6, %v5403_v7  ;;  %v3023_v30 = vpop.f32.mrb[195].mxu1  ;;  %v7120_v56 = vld [vmem:[#allocation66_spill] sm:$0xff] }
 0x3f1   : > { %v6139_v21 = vmax.f32 %v7117_v32, %v3317_v5  ;;  %v3321_v19 = vmax.f32 %v2691_v27, 0.0  ;;  %v3303_v25 = vmax.f32 %v3020_v62, 0.0  ;;  %v3024_v50 = vadd.f32 %v3023_v30, %v5411_v13  ;;  %v7122_v6 = vld [vmem:[#allocation46_spill] sm:$0xff]  ;;  %v7124_v5 = vld [vmem:[#allocation67_spill] sm:$0xff]  ;;  %v7126_v27 = vld [vmem:[#allocation68_spill] sm:$0xff] }
 0x3f2   : > { %v6145_v39 = vmax.f32 %v7119_v12, %v3320_v41  ;;  %v7121_v23 = vmax.f32 %v7120_v56, 0.0  ;;  %v3306_v54 = vmax.f32 %v3022_v4, 0.0  ;;  %v6151_v48 = vadd.f32 %v7122_v6, %v5411_v13  ;;  %v7128_v41 = vld [vmem:[#allocation69_spill] sm:$0xff] }
 0x3f3   : > { %v7125_v32 = vmax.f32 %v7124_v5, 0.0  ;;  %v7127_v30 = vmax.f32 %v7126_v27, 0.0  ;;  %v3307_v51 = vmax.f32 %v3024_v50, 0.0  ;;  %v2694_v1 = vpop.f32.mrb[212].mxu0  ;;  %v7130_v6 = vld [vmem:[#allocation49_spill] sm:$0xff] }
 0x3f4   : > { %v3430_v44 = vmax.f32 %v7121_v23, %v3302_v53  ;;  %7123 = vst [vmem:[#allocation61_spill] sm:$0xff] %v6151_v48  ;;  %v7129_v53 = vmax.f32 %v7128_v41, 0.0  ;;  %v2695_v56 = vadd.f32 %v2694_v1, %v5363_v0  ;;  %v2696_v23 = vpop.f32.mrb[213].mxu0  ;;  %v6166_v5 = vadd.f32 %v7130_v6, %v5403_v7 }
 0x3f5   : > { %v6155_v8 = vmax.f32 %v7125_v32, %v3321_v19  ;;  %v3431_v62 = vmax.f32 %v7127_v30, %v3303_v25  ;;  %v7132_v32 = vld [vmem:[#allocation70_spill] sm:$0xff]  ;;  %v2697_v27 = vadd.f32 %v2696_v23, %v5365_v58  ;;  %v2698_v30 = vpop.f32.mrb[214].mxu0  ;;  %v3027_v40 = vpop.f32.mrb[196].mxu1  ;;  %v7134_v23 = vld [vmem:[#allocation71_spill] sm:$0xff] }
 0x3f6   : > { %v3548_v12 = vmax.f32 %v6001_v24, %v3430_v44  ;;  %v3434_v4 = vmax.f32 %v7129_v53, %v3306_v54  ;;  %7131 = vst [vmem:[#allocation97_spill] sm:$0xff] %v6166_v5  ;;  %v7133_v25 = vmax.f32 %v7132_v32, 0.0  ;;  %v3324_v44 = vmax.f32 %v2695_v56, 0.0  ;;  %v2700_v41 = vpop.f32.mrb[215].mxu0  ;;  %v3029_v53 = vpop.f32.mrb[197].mxu1 }
 0x3f7   : > { %v3549_v19 = vmax.f32 %v6015_v52, %v3431_v62  ;;  %v2699_v1 = vadd.f32 %v2698_v30, %v5363_v0  ;;  %v3028_v54 = vadd.f32 %v3027_v40, %v5403_v7  ;;  %v3325_v62 = vmax.f32 %v2697_v27, 0.0  ;;  %v3031_v32 = vpop.f32.mrb[198].mxu1  ;;  %v7136_v40 = vld [vmem:[#allocation72_spill] sm:$0xff] }
 0x3f8   : > { %v3435_v50 = vmax.f32 %v7133_v25, %v3307_v51  ;;  %v3550_v24 = vmax.f32 %v6022_v49, %v3434_v4  ;;  %v2701_v51 = vadd.f32 %v2700_v41, %v5365_v58  ;;  %v7135_v25 = vmax.f32 %v7134_v23, 0.0  ;;  %v3033_v30 = vpop.f32.mrb[199].mxu1  ;;  %v7140_v41 = vld [vmem:[#allocation74_spill] sm:$0xff] }
 0x3f9   : > { %v3608_v6 = vmax.f32 %v3548_v12, %v3549_v19  ;;  %v3328_v49 = vmax.f32 %v2699_v1, 0.0  ;;  %v3310_v4 = vmax.f32 %v3028_v54, 0.0  ;;  %v3030_v56 = vadd.f32 %v3029_v53, %v5411_v13 }
 0x3fa   : > { %v3551_v52 = vmax.f32 %v6029_v36, %v3435_v50  ;;  %v6179_v15 = vmax.f32 %v7135_v25, %v3324_v44  ;;  %v7137_v12 = vmax.f32 %v7136_v40, 0.0  ;;  %v3329_v50 = vmax.f32 %v2701_v51, 0.0  ;;  %v7138_v44 = vld [vmem:[#allocation73_spill] sm:$0xff] }
 0x3fb   : > { %3640 = vst [vmem:[%s6184_s28 + $0x20] sm:$0xff] %v3608_v6  ;;  %v3032_v27 = vadd.f32 %v3031_v32, %v5403_v7  ;;  %v7139_v1 = vmax.f32 %v7138_v44, 0.0  ;;  %v7141_v53 = vmax.f32 %v7140_v41, 0.0  ;;  %v3311_v25 = vmax.f32 %v3030_v56, 0.0 }
 0x3fc   : > { %v3609_v36 = vmax.f32 %v3550_v24, %v3551_v52  ;;  %v6189_v19 = vmax.f32 %v7137_v12, %v3325_v62  ;;  %v3034_v35 = vadd.f32 %v3033_v30, %v5411_v13  ;;  %v6202_v24 = vadd.f32 %v5850_v47, %v5411_v13  ;;  %v7143_v52 = vld [vmem:[#allocation75_spill] sm:$0xff]  ;;  %v7145_v12 = vld [vmem:[#allocation76_spill] sm:$0xff] }
 0x3fd   : > { %v6194_v54 = vmax.f32 %v7139_v1, %v3328_v49  ;;  %v3438_v23 = vmax.f32 %v7141_v53, %v3310_v4  ;;  %v7144_v62 = vmax.f32 %v7143_v52, 0.0  ;;  %v3314_v32 = vmax.f32 %v3032_v27, 0.0  ;;  %v2704_v49 = vpop.f32.mrb[216].mxu0 }
 0x3fe   : > { %7142 = vst [vmem:[#allocation44_spill] sm:$0xff] %v6202_v24  ;;  %3641 = vst [vmem:[%s6184_s28 + $0x28] sm:$0xff] %v3609_v36  ;;  %v7146_v4 = vmax.f32 %v7145_v12, 0.0  ;;  %v3315_v44 = vmax.f32 %v3034_v35, 0.0  ;;  %v2705_v30 = vadd.f32 %v2704_v49, %v5363_v0  ;;  %v2706_v1 = vpop.f32.mrb[217].mxu0  ;;  %v6216_v47 = vadd.f32 %v5892_v22, %v5403_v7  ;;  %v7148_v36 = vld [vmem:[#allocation77_spill] sm:$0xff] }
 0x3ff   : > { %v6207_v51 = vmax.f32 %v7144_v62, %v3329_v50  ;;  %v3552_v40 = vmax.f32 %v6079_v60, %v3438_v23  ;;  %v7149_v50 = vmax.f32 %v7148_v36, 0.0  ;;  %v2707_v27 = vadd.f32 %v2706_v1, %v5365_v58  ;;  %v2708_v52 = vpop.f32.mrb[218].mxu0  ;;  %v3037_v60 = vpop.f32.mrb[200].mxu1 }
 0x400   : > { %v3439_v56 = vmax.f32 %v7146_v4, %v3311_v25  ;;  %7147 = vst [vmem:[#allocation62_spill] sm:$0xff] %v6216_v47  ;;  %v7150_v25 = vld [vmem:[#allocation78_spill] sm:$0xff]  ;;  %v3332_v49 = vmax.f32 %v2705_v30, 0.0  ;;  %v2709_v12 = vadd.f32 %v2708_v52, %v5363_v0  ;;  %v2710_v4 = vpop.f32.mrb[219].mxu0  ;;  %v3039_v41 = vpop.f32.mrb[201].mxu1  ;;  %v7172_v47 = vld [vmem:[#allocation89_spill] sm:$0xff] }
 0x401   : > { %v3442_v53 = vmax.f32 %v7149_v50, %v3314_v32  ;;  %v7151_v35 = vmax.f32 %v7150_v25, 0.0  ;;  %v3333_v6 = vmax.f32 %v2707_v27, 0.0  ;;  %v3038_v32 = vadd.f32 %v3037_v60, %v5403_v7  ;;  %v3041_v36 = vpop.f32.mrb[202].mxu1 }
 0x402   : > { %v3553_v23 = vmax.f32 %v6093_v17, %v3439_v56  ;;  %v2711_v1 = vadd.f32 %v2710_v4, %v5365_v58  ;;  %v7152_v56 = vld [vmem:[#allocation79_spill] sm:$0xff]  ;;  %v3336_v30 = vmax.f32 %v2709_v12, 0.0  ;;  %v3043_v52 = vpop.f32.mrb[203].mxu1  ;;  %v3040_v27 = vadd.f32 %v3039_v41, %v5411_v13  ;;  %v7158_v4 = vld [vmem:[#allocation82_spill] sm:$0xff] }
 0x403   : > { %v3443_v62 = vmax.f32 %v7151_v35, %v3315_v44  ;;  %v3554_v22 = vmax.f32 %v6103_v26, %v3442_v53  ;;  %v7153_v25 = vmax.f32 %v7152_v56, 0.0  ;;  %v7154_v35 = vld [vmem:[#allocation80_spill] sm:$0xff]  ;;  %v3318_v26 = vmax.f32 %v3038_v32, 0.0 }
 0x404   : > { %v3610_v50 = vmax.f32 %v3552_v40, %v3553_v23  ;;  %v7155_v5 = vmax.f32 %v7154_v35, 0.0  ;;  %v3337_v53 = vmax.f32 %v2711_v1, 0.0  ;;  %v7156_v40 = vld [vmem:[#allocation81_spill] sm:$0xff]  ;;  %v7159_v56 = vmax.f32 %v7158_v4, 0.0 }
 0x405   : > { %v3555_v17 = vmax.f32 %v6110_v3, %v3443_v62  ;;  %v6231_v44 = vmax.f32 %v7153_v25, %v3332_v49  ;;  %v7157_v23 = vmax.f32 %v7156_v40, 0.0  ;;  %v3042_v62 = vadd.f32 %v3041_v36, %v5403_v7  ;;  %v3047_v4 = vpop.f32.mrb[204].mxu1 }
 0x406   : > { %v6235_v48 = vmax.f32 %v7155_v5, %v3333_v6  ;;  %3642 = vst [vmem:[%s6184_s28 + $0x30] sm:$0xff] %v3610_v50  ;;  %v3044_v49 = vadd.f32 %v3043_v52, %v5411_v13  ;;  %v3446_v5 = vmax.f32 %v7159_v56, %v3318_v26  ;;  %v7160_v6 = vld [vmem:[#allocation83_spill] sm:$0xff]  ;;  %v3319_v41 = vmax.f32 %v3040_v27, 0.0  ;;  %v2714_v50 = vpop.f32.mrb[220].mxu0  ;;  %v7162_v26 = vld [vmem:[#allocation84_spill] sm:$0xff]  ;;  %v7164_v56 = vld [vmem:[#allocation85_spill] sm:$0xff] }
 0x407   : > { %v3611_v60 = vmax.f32 %v3554_v22, %v3555_v17  ;;  %v6241_v3 = vmax.f32 %v7157_v23, %v3336_v30  ;;  %v7161_v32 = vmax.f32 %v7160_v6, 0.0  ;;  %v6254_v22 = vadd.f32 %v5903_v45, %v5411_v13  ;;  %v2716_v30 = vpop.f32.mrb[221].mxu0  ;;  %v3049_v52 = vpop.f32.mrb[205].mxu1 }
 0x408   : > { %v3322_v17 = vmax.f32 %v3042_v62, 0.0  ;;  %v3323_v36 = vmax.f32 %v3044_v49, 0.0  ;;  %v2715_v25 = vadd.f32 %v2714_v50, %v5363_v0  ;;  %v3556_v35 = vmax.f32 %v6134_v43, %v3446_v5  ;;  %v2718_v23 = vpop.f32.mrb[222].mxu0 }
 0x409   : > { %v6250_v1 = vmax.f32 %v7161_v32, %v3337_v53  ;;  %3643 = vst [vmem:[%s6184_s28 + $0x38] sm:$0xff] %v3611_v60  ;;  %v7163_v40 = vmax.f32 %v7162_v26, 0.0  ;;  %v2717_v27 = vadd.f32 %v2716_v30, %v5365_v58  ;;  %v7165_v45 = vmax.f32 %v7164_v56, 0.0  ;;  %v7166_v60 = vld [vmem:[#allocation86_spill] sm:$0xff]  ;;  %v2720_v12 = vpop.f32.mrb[223].mxu0  ;;  %v3051_v26 = vpop.f32.mrb[206].mxu1 }
 0x40a   : > { %v7167_v62 = vmax.f32 %v7166_v60, 0.0  ;;  %v3340_v32 = vmax.f32 %v2715_v25, 0.0  ;;  %v2719_v50 = vadd.f32 %v2718_v23, %v5363_v0  ;;  %v2721_v30 = vadd.f32 %v2720_v12, %v5365_v58  ;;  %v7168_v56 = vld [vmem:[#allocation87_spill] sm:$0xff] }
 0x40b   : > { %v3447_v53 = vmax.f32 %v7163_v40, %v3319_v41  ;;  %v3450_v6 = vmax.f32 %v7165_v45, %v3322_v17  ;;  %v3341_v5 = vmax.f32 %v2717_v27, 0.0  ;;  %v3048_v41 = vadd.f32 %v3047_v4, %v5403_v7  ;;  %v3053_v45 = vpop.f32.mrb[207].mxu1 }
 0x40c   : > { %v3451_v49 = vmax.f32 %v7167_v62, %v3323_v36  ;;  %v7169_v36 = vmax.f32 %v7168_v56, 0.0  ;;  %v3344_v23 = vmax.f32 %v2719_v50, 0.0  ;;  %v3345_v12 = vmax.f32 %v2721_v30, 0.0  ;;  %v7188_v30 = vld [vmem:[#allocation25_spill] sm:$0xff] }
 0x40d   : > { %v3557_v43 = vmax.f32 %v6139_v21, %v3447_v53  ;;  %v3558_v40 = vmax.f32 %v6145_v39, %v3450_v6  ;;  %v7170_v21 = vld [vmem:[#allocation88_spill] sm:$0xff]  ;;  %v3326_v4 = vmax.f32 %v3048_v41, 0.0  ;;  %v7173_v24 = vmax.f32 %v7172_v47, 0.0 }
 0x40e   : > { %v3559_v17 = vmax.f32 %v6155_v8, %v3451_v49  ;;  %v6275_v25 = vmax.f32 %v7169_v36, %v3340_v32  ;;  %v7171_v53 = vmax.f32 %v7170_v21, 0.0  ;;  %v3050_v8 = vadd.f32 %v3049_v52, %v5411_v13  ;;  %v7178_v21 = vld [vmem:[#allocation92_spill] sm:$0xff] }
 0x40f   : > { %v3612_v60 = vmax.f32 %v3556_v35, %v3557_v43  ;;  %v6283_v39 = vmax.f32 %v7173_v24, %v3344_v23  ;;  %v3052_v6 = vadd.f32 %v3051_v26, %v5403_v7  ;;  %v6289_v49 = vadd.f32 %v5914_v38, %v5403_v7  ;;  %v7174_v35 = vld [vmem:[#allocation90_spill] sm:$0xff]  ;;  %v7176_v43 = vld [vmem:[#allocation91_spill] sm:$0xff]  ;;  %v2724_v24 = vpop.f32.mrb[224].mxu0 }
 0x410   : > { %v6279_v27 = vmax.f32 %v7171_v53, %v3341_v5  ;;  %v3613_v62 = vmax.f32 %v3558_v40, %v3559_v17  ;;  %v7175_v32 = vmax.f32 %v7174_v35, 0.0  ;;  %v7177_v5 = vmax.f32 %v7176_v43, 0.0  ;;  %v2726_v38 = vpop.f32.mrb[225].mxu0 }
 0x411   : > { %3644 = vst [vmem:[%s6184_s28 + $0x40] sm:$0xff] %v3612_v60  ;;  %v3054_v47 = vadd.f32 %v3053_v45, %v5411_v13  ;;  %v3327_v52 = vmax.f32 %v3050_v8, 0.0  ;;  %v3330_v26 = vmax.f32 %v3052_v6, 0.0  ;;  %v2725_v40 = vadd.f32 %v2724_v24, %v5363_v0  ;;  %v2728_v60 = vpop.f32.mrb[226].mxu0  ;;  %v3057_v45 = vpop.f32.mrb[208].mxu1 }
 0x412   : > { %v3454_v50 = vmax.f32 %v7175_v32, %v3326_v4  ;;  %v6296_v41 = vmax.f32 %v7177_v5, %v3345_v12  ;;  %3645 = vst [vmem:[%s6184_s28 + $0x48] sm:$0xff] %v3613_v62  ;;  %v6304_v17 = vadd.f32 %v5928_v28, %v5411_v13  ;;  %v2727_v23 = vadd.f32 %v2726_v38, %v5365_v58  ;;  %v7180_v12 = vld [vmem:[#allocation93_spill] sm:$0xff]  ;;  %v2730_v32 = vpop.f32.mrb[227].mxu0  ;;  %v3059_v43 = vpop.f32.mrb[209].mxu1  ;;  %v7182_v28 = vld [vmem:[#allocation94_spill] sm:$0xff] }
 0x413   : > { %v3331_v36 = vmax.f32 %v3054_v47, 0.0  ;;  %v7179_v53 = vmax.f32 %v7178_v21, 0.0  ;;  %v7181_v62 = vmax.f32 %v7180_v12, 0.0  ;;  %v3348_v6 = vmax.f32 %v2725_v40, 0.0  ;;  %v3061_v38 = vpop.f32.mrb[210].mxu1 }
 0x414   : > { %v3560_v56 = vmax.f32 %v6179_v15, %v3454_v50  ;;  %v2729_v35 = vadd.f32 %v2728_v60, %v5363_v0  ;;  %v7183_v5 = vmax.f32 %v7182_v28, 0.0  ;;  %v3349_v15 = vmax.f32 %v2727_v23, 0.0  ;;  %v3063_v12 = vpop.f32.mrb[211].mxu1 }
 0x415   : > { %v3455_v4 = vmax.f32 %v7179_v53, %v3327_v52  ;;  %v3458_v8 = vmax.f32 %v7181_v62, %v3330_v26  ;;  %v3058_v50 = vadd.f32 %v3057_v45, %v5403_v7  ;;  %v2731_v47 = vadd.f32 %v2730_v32, %v5365_v58  ;;  %v7184_v53 = vld [vmem:[#allocation23_spill] sm:$0xff] }
 0x416   : > { %v3459_v24 = vmax.f32 %v7183_v5, %v3331_v36  ;;  %v7185_v26 = vmax.f32 %v7184_v53, 0.0  ;;  %v3352_v60 = vmax.f32 %v2729_v35, 0.0  ;;  %v7186_v36 = vld [vmem:[#allocation24_spill] sm:$0xff]  ;;  %v7190_v35 = vld [vmem:[#allocation26_spill] sm:$0xff] }
 0x417   : > { %v3561_v21 = vmax.f32 %v6189_v19, %v3455_v4  ;;  %v3562_v52 = vmax.f32 %v6194_v54, %v3458_v8  ;;  %v7187_v23 = vmax.f32 %v7186_v36, 0.0  ;;  %v3334_v45 = vmax.f32 %v3058_v50, 0.0 }
 0x418   : > { %v6321_v40 = vmax.f32 %v7185_v26, %v3348_v6  ;;  %v3563_v62 = vmax.f32 %v6207_v51, %v3459_v24  ;;  %v3353_v32 = vmax.f32 %v2731_v47, 0.0  ;;  %v7189_v19 = vmax.f32 %v7188_v30, 0.0  ;;  %v7192_v24 = vld [vmem:[#allocation27_spill] sm:$0xff] }
 0x419   : > { %v6326_v28 = vmax.f32 %v7187_v23, %v3349_v15  ;;  %v3614_v5 = vmax.f32 %v3560_v56, %v3561_v21  ;;  %v3060_v4 = vadd.f32 %v3059_v43, %v5411_v13  ;;  %v3062_v8 = vadd.f32 %v3061_v38, %v5403_v7  ;;  %v2734_v56 = vpop.f32.mrb[228].mxu0  ;;  %v3067_v23 = vpop.f32.mrb[212].mxu1 }
 0x41a   : > { %v6330_v54 = vmax.f32 %v7189_v19, %v3352_v60  ;;  %v3615_v6 = vmax.f32 %v3562_v52, %v3563_v62  ;;  %v7191_v53 = vmax.f32 %v7190_v35, 0.0  ;;  %v7193_v26 = vmax.f32 %v7192_v24, 0.0  ;;  %v2736_v21 = vpop.f32.mrb[229].mxu0  ;;  %v7198_v24 = vld [vmem:[#allocation30_spill] sm:$0xff] }
 0x41b   : > { %v3064_v50 = vadd.f32 %v3063_v12, %v5411_v13  ;;  %v6343_v30 = vadd.f32 %v5967_v9, %v5403_v7  ;;  %3646 = vst [vmem:[%s6184_s28 + $0x50] sm:$0xff] %v3614_v5  ;;  %v3335_v47 = vmax.f32 %v3060_v4, 0.0  ;;  %v3338_v43 = vmax.f32 %v3062_v8, 0.0  ;;  %v2738_v36 = vpop.f32.mrb[230].mxu0  ;;  %v7194_v9 = vld [vmem:[#allocation28_spill] sm:$0xff]  ;;  %v7196_v5 = vld [vmem:[#allocation29_spill] sm:$0xff] }
 0x41c   : > { %v3462_v51 = vmax.f32 %v7191_v53, %v3334_v45  ;;  %v6338_v15 = vmax.f32 %v7193_v26, %v3353_v32  ;;  %v2735_v38 = vadd.f32 %v2734_v56, %v5363_v0  ;;  %v6349_v52 = vadd.f32 %v5978_v14, %v5411_v13  ;;  %3647 = vst [vmem:[%s6184_s28 + $0x58] sm:$0xff] %v3615_v6  ;;  %v2740_v53 = vpop.f32.mrb[231].mxu0  ;;  %v3069_v14 = vpop.f32.mrb[213].mxu1 }
 0x41d   : > { %v3339_v62 = vmax.f32 %v3064_v50, 0.0  ;;  %v2737_v12 = vadd.f32 %v2736_v21, %v5365_v58  ;;  %v7195_v45 = vmax.f32 %v7194_v9, 0.0  ;;  %v7197_v19 = vmax.f32 %v7196_v5, 0.0  ;;  %v3071_v56 = vpop.f32.mrb[214].mxu1  ;;  %v7200_v9 = vld [vmem:[#allocation31_spill] sm:$0xff] }
 0x41e   : > { %v3564_v60 = vmax.f32 %v6231_v44, %v3462_v51  ;;  %v3356_v8 = vmax.f32 %v2735_v38, 0.0  ;;  %v2739_v35 = vadd.f32 %v2738_v36, %v5363_v0  ;;  %v7199_v6 = vmax.f32 %v7198_v24, 0.0 }
 0x41f   : > { %v3463_v32 = vmax.f32 %v7195_v45, %v3335_v47  ;;  %v3466_v4 = vmax.f32 %v7197_v19, %v3338_v43  ;;  %v3357_v44 = vmax.f32 %v2737_v12, 0.0  ;;  %v3068_v51 = vadd.f32 %v3067_v23, %v5403_v7  ;;  %v3073_v45 = vpop.f32.mrb[215].mxu1 }
 0x420   : > { %v3467_v26 = vmax.f32 %v7199_v6, %v3339_v62  ;;  %v2741_v50 = vadd.f32 %v2740_v53, %v5365_v58  ;;  %v7201_v43 = vmax.f32 %v7200_v9, 0.0  ;;  %v3360_v36 = vmax.f32 %v2739_v35, 0.0  ;;  %v7202_v62 = vld [vmem:[#allocation32_spill] sm:$0xff]  ;;  %v7204_v6 = vld [vmem:[#allocation33_spill] sm:$0xff]  ;;  %v7206_v35 = vld [vmem:[#allocation34_spill] sm:$0xff] }
 0x421   : > { %v3565_v21 = vmax.f32 %v6235_v48, %v3463_v32  ;;  %v3566_v47 = vmax.f32 %v6241_v3, %v3466_v4  ;;  %v7203_v12 = vmax.f32 %v7202_v62, 0.0  ;;  %v3342_v23 = vmax.f32 %v3068_v51, 0.0 }
 0x422   : > { %v6367_v38 = vmax.f32 %v7201_v43, %v3356_v8  ;;  %v3567_v5 = vmax.f32 %v6250_v1, %v3467_v26  ;;  %v3361_v53 = vmax.f32 %v2741_v50, 0.0  ;;  %v7205_v48 = vmax.f32 %v7204_v6, 0.0  ;;  %v7208_v26 = vld [vmem:[#allocation35_spill] sm:$0xff]  ;;  %v7220_v50 = vld [vmem:[#allocation41_spill] sm:$0xff] }
 0x423   : > { %v6372_v19 = vmax.f32 %v7203_v12, %v3357_v44  ;;  %v3616_v24 = vmax.f32 %v3564_v60, %v3565_v21  ;;  %v3070_v32 = vadd.f32 %v3069_v14, %v5411_v13  ;;  %v3072_v4 = vadd.f32 %v3071_v56, %v5403_v7  ;;  %v2744_v60 = vpop.f32.mrb[232].mxu0 }
 0x424   : > { %v6376_v3 = vmax.f32 %v7205_v48, %v3360_v36  ;;  %v3617_v8 = vmax.f32 %v3566_v47, %v3567_v5  ;;  %v7207_v9 = vmax.f32 %v7206_v35, 0.0  ;;  %v7209_v43 = vmax.f32 %v7208_v26, 0.0  ;;  %v2746_v62 = vpop.f32.mrb[233].mxu0  ;;  %v7212_v48 = vld [vmem:[#allocation37_spill] sm:$0xff] }
 0x425   : > { %v3074_v51 = vadd.f32 %v3073_v45, %v5411_v13  ;;  %3648 = vst [vmem:[%s6184_s28 + $0x60] sm:$0xff] %v3616_v24  ;;  %v3343_v21 = vmax.f32 %v3070_v32, 0.0  ;;  %v3346_v36 = vmax.f32 %v3072_v4, 0.0  ;;  %v2745_v14 = vadd.f32 %v2744_v60, %v5363_v0  ;;  %v2748_v45 = vpop.f32.mrb[234].mxu0 }
 0x426   : > { %v3470_v1 = vmax.f32 %v7207_v9, %v3342_v23  ;;  %v6384_v44 = vmax.f32 %v7209_v43, %v3361_v53  ;;  %v6392_v56 = vadd.f32 %v5989_v20, %v5403_v7  ;;  %3649 = vst [vmem:[%s6184_s28 + $0x68] sm:$0xff] %v3617_v8  ;;  %v2747_v12 = vadd.f32 %v2746_v62, %v5365_v58  ;;  %v3077_v23 = vpop.f32.mrb[216].mxu1  ;;  %v7210_v53 = vld [vmem:[#allocation36_spill] sm:$0xff]  ;;  %v2750_v26 = vpop.f32.mrb[235].mxu0  ;;  %v7214_v43 = vld [vmem:[#allocation38_spill] sm:$0xff] }
 0x427   : > { %v3347_v5 = vmax.f32 %v3074_v51, 0.0  ;;  %v7211_v6 = vmax.f32 %v7210_v53, 0.0  ;;  %v7213_v32 = vmax.f32 %v7212_v48, 0.0  ;;  %v3364_v35 = vmax.f32 %v2745_v14, 0.0  ;;  %v3079_v20 = vpop.f32.mrb[217].mxu1 }
 0x428   : > { %v3568_v47 = vmax.f32 %v6275_v25, %v3470_v1  ;;  %v2749_v9 = vadd.f32 %v2748_v45, %v5363_v0  ;;  %v7215_v8 = vmax.f32 %v7214_v43, 0.0  ;;  %v3365_v25 = vmax.f32 %v2747_v12, 0.0  ;;  %v3081_v62 = vpop.f32.mrb[218].mxu1 }
 0x429   : > { %v3471_v24 = vmax.f32 %v7211_v6, %v3343_v21  ;;  %v3474_v4 = vmax.f32 %v7213_v32, %v3346_v36  ;;  %v3078_v1 = vadd.f32 %v3077_v23, %v5403_v7  ;;  %v2751_v51 = vadd.f32 %v2750_v26, %v5365_v58  ;;  %v7216_v6 = vld [vmem:[#allocation39_spill] sm:$0xff]  ;;  %v3083_v48 = vpop.f32.mrb[219].mxu1 }
 0x42a   : > { %v3475_v60 = vmax.f32 %v7215_v8, %v3347_v5  ;;  %v7217_v36 = vmax.f32 %v7216_v6, 0.0  ;;  %v3368_v45 = vmax.f32 %v2749_v9, 0.0  ;;  %v7218_v5 = vld [vmem:[#allocation40_spill] sm:$0xff]  ;;  %v7222_v9 = vld [vmem:[#allocation42_spill] sm:$0xff] }
 0x42b   : > { %v3569_v53 = vmax.f32 %v6279_v27, %v3471_v24  ;;  %v3570_v21 = vmax.f32 %v6283_v39, %v3474_v4  ;;  %v7219_v12 = vmax.f32 %v7218_v5, 0.0  ;;  %v3350_v23 = vmax.f32 %v3078_v1, 0.0 }
 0x42c   : > { %v6410_v14 = vmax.f32 %v7217_v36, %v3364_v35  ;;  %v3571_v32 = vmax.f32 %v6296_v41, %v3475_v60  ;;  %v3369_v26 = vmax.f32 %v2751_v51, 0.0  ;;  %v7221_v27 = vmax.f32 %v7220_v50, 0.0  ;;  %v7224_v60 = vld [vmem:[#allocation43_spill] sm:$0xff] }
 0x42d   : > { %v6415_v43 = vmax.f32 %v7219_v12, %v3365_v25  ;;  %v3618_v8 = vmax.f32 %v3568_v47, %v3569_v53  ;;  %v3080_v24 = vadd.f32 %v3079_v20, %v5411_v13  ;;  %v3082_v4 = vadd.f32 %v3081_v62, %v5403_v7  ;;  %v2754_v47 = vpop.f32.mrb[236].mxu0  ;;  %v3087_v12 = vpop.f32.mrb[220].mxu1 }
 0x42e   : > { %v6419_v39 = vmax.f32 %v7221_v27, %v3368_v45  ;;  %v3619_v35 = vmax.f32 %v3570_v21, %v3571_v32  ;;  %v7223_v6 = vmax.f32 %v7222_v9, 0.0  ;;  %v7225_v36 = vmax.f32 %v7224_v60, 0.0  ;;  %v2756_v45 = vpop.f32.mrb[237].mxu0 }
 0x42f   : > { %v3084_v1 = vadd.f32 %v3083_v48, %v5411_v13  ;;  %v3287_v50 = vmax.f32 %v6349_v52, 0.0  ;;  %3650 = vst [vmem:[%s6184_s28 + $0x70] sm:$0xff] %v3618_v8  ;;  %v3351_v51 = vmax.f32 %v3080_v24, 0.0  ;;  %v3354_v53 = vmax.f32 %v3082_v4, 0.0  ;;  %v2758_v48 = vpop.f32.mrb[238].mxu0 }
 0x430   : > { %v3478_v41 = vmax.f32 %v7223_v6, %v3350_v23  ;;  %v6427_v25 = vmax.f32 %v7225_v36, %v3369_v26  ;;  %v2755_v20 = vadd.f32 %v2754_v47, %v5363_v0  ;;  %v6435_v62 = vadd.f32 %v6003_v46, %v5411_v13  ;;  %3651 = vst [vmem:[%s6184_s28 + $0x78] sm:$0xff] %v3619_v35  ;;  %v2760_v9 = vpop.f32.mrb[239].mxu0  ;;  %v3089_v46 = vpop.f32.mrb[221].mxu1 }
 0x431   : > { %v3355_v32 = vmax.f32 %v3084_v1, 0.0  ;;  %v2757_v5 = vadd.f32 %v2756_v45, %v5365_v58  ;;  %v7226_v23 = vmax.f32 %v5795_v18, 0.0  ;;  %v7227_v8 = vmax.f32 %v5801_v61, 0.0  ;;  %v3091_v36 = vpop.f32.mrb[222].mxu1 }
 0x432   : > { %v3572_v21 = vmax.f32 %v6321_v40, %v3478_v41  ;;  %v3372_v24 = vmax.f32 %v2755_v20, 0.0  ;;  %v2759_v4 = vadd.f32 %v2758_v48, %v5363_v0  ;;  %v7228_v35 = vmax.f32 %v5807_v37, 0.0 }
 0x433   : > { %v3479_v26 = vmax.f32 %v7226_v23, %v3351_v51  ;;  %v3482_v27 = vmax.f32 %v7227_v8, %v3354_v53  ;;  %v3373_v40 = vmax.f32 %v2757_v5, 0.0  ;;  %v3088_v41 = vadd.f32 %v3087_v12, %v5403_v7  ;;  %v3093_v53 = vpop.f32.mrb[223].mxu1  ;;  %v7231_v12 = vld [vmem:[#allocation45_spill] sm:$0xff]  ;;  %v7233_v8 = vld [vmem:[#allocation47_spill] sm:$0xff] }
 0x434   : > { %v3483_v6 = vmax.f32 %v7228_v35, %v3355_v32  ;;  %v2761_v60 = vadd.f32 %v2760_v9, %v5365_v58  ;;  %v7229_v61 = vmax.f32 %v5811_v59, 0.0  ;;  %v3376_v51 = vmax.f32 %v2759_v4, 0.0 }
 0x435   : > { %v3573_v18 = vmax.f32 %v6326_v28, %v3479_v26  ;;  %v3574_v1 = vmax.f32 %v6330_v54, %v3482_v27  ;;  %v7230_v20 = vmax.f32 %v5818_v55, 0.0  ;;  %v3358_v32 = vmax.f32 %v3088_v41, 0.0 }
 0x436   : > { %v6453_v47 = vmax.f32 %v7229_v61, %v3372_v24  ;;  %v3575_v37 = vmax.f32 %v6338_v15, %v3483_v6  ;;  %v3377_v5 = vmax.f32 %v2761_v60, 0.0  ;;  %v7232_v28 = vmax.f32 %v7231_v12, 0.0  ;;  %v7235_v24 = vld [vmem:[#allocation48_spill] sm:$0xff] }
 0x437   : > { %v6458_v45 = vmax.f32 %v7230_v20, %v3373_v40  ;;  %v3620_v48 = vmax.f32 %v3572_v21, %v3573_v18  ;;  %v3090_v59 = vadd.f32 %v3089_v46, %v5411_v13  ;;  %v3092_v23 = vadd.f32 %v3091_v36, %v5403_v7  ;;  %v2764_v21 = vpop.f32.mrb[240].mxu0 }
 0x438   : > { %v6462_v54 = vmax.f32 %v7232_v28, %v3376_v51  ;;  %v3621_v26 = vmax.f32 %v3574_v1, %v3575_v37  ;;  %v7234_v27 = vmax.f32 %v7233_v8, 0.0  ;;  %v7236_v55 = vmax.f32 %v7235_v24, 0.0  ;;  %v2766_v41 = vpop.f32.mrb[241].mxu0  ;;  %v3097_v51 = vpop.f32.mrb[224].mxu1  ;;  %v7241_v8 = vld [vmem:[#allocation52_spill] sm:$0xff] }
 0x439   : > { %v3094_v9 = vadd.f32 %v3093_v53, %v5411_v13  ;;  %v3290_v35 = vmax.f32 %v6392_v56, 0.0  ;;  %3652 = vst [vmem:[%s6184_s28 + $0x80] sm:$0xff] %v3620_v48  ;;  %v3359_v6 = vmax.f32 %v3090_v59, 0.0  ;;  %v3362_v40 = vmax.f32 %v3092_v23, 0.0  ;;  %v2768_v61 = vpop.f32.mrb[242].mxu0  ;;  %v7237_v53 = vld [vmem:[#allocation50_spill] sm:$0xff] }
 0x43a   : > { %v3486_v15 = vmax.f32 %v7234_v27, %v3358_v32  ;;  %v6470_v4 = vmax.f32 %v7236_v55, %v3377_v5  ;;  %v2765_v46 = vadd.f32 %v2764_v21, %v5363_v0  ;;  %v3291_v60 = vmax.f32 %v6435_v62, 0.0  ;;  %3653 = vst [vmem:[%s6184_s28 + $0x88] sm:$0xff] %v3621_v26  ;;  %v7239_v32 = vld [vmem:[#allocation51_spill] sm:$0xff]  ;;  %v2770_v59 = vpop.f32.mrb[243].mxu0  ;;  %v3099_v23 = vpop.f32.mrb[225].mxu1 }
 0x43b   : > { %v3363_v18 = vmax.f32 %v3094_v9, 0.0  ;;  %v2767_v1 = vadd.f32 %v2766_v41, %v5365_v58  ;;  %v7238_v37 = vmax.f32 %v7237_v53, 0.0  ;;  %v7240_v5 = vmax.f32 %v7239_v32, 0.0  ;;  %v3101_v55 = vpop.f32.mrb[226].mxu1 }
 0x43c   : > { %v3576_v36 = vmax.f32 %v6367_v38, %v3486_v15  ;;  %v3380_v12 = vmax.f32 %v2765_v46, 0.0  ;;  %v2769_v28 = vadd.f32 %v2768_v61, %v5363_v0  ;;  %v7242_v26 = vmax.f32 %v7241_v8, 0.0  ;;  %v3103_v41 = vpop.f32.mrb[227].mxu1 }
 0x43d   : > { %v3487_v20 = vmax.f32 %v7238_v37, %v3359_v6  ;;  %v3490_v48 = vmax.f32 %v7240_v5, %v3362_v40  ;;  %v3381_v38 = vmax.f32 %v2767_v1, 0.0  ;;  %v3098_v15 = vadd.f32 %v3097_v51, %v5403_v7 }
 0x43e   : > { %v3491_v27 = vmax.f32 %v7242_v26, %v3363_v18  ;;  %v2771_v24 = vadd.f32 %v2770_v59, %v5365_v58  ;;  %v7243_v6 = vmax.f32 %v5881_v31, 0.0  ;;  %v3384_v46 = vmax.f32 %v2769_v28, 0.0 }
 0x43f   : > { %v3577_v9 = vmax.f32 %v6372_v19, %v3487_v20  ;;  %v3578_v21 = vmax.f32 %v6376_v3, %v3490_v48  ;;  %v7244_v18 = vmax.f32 %v5885_v16, 0.0  ;;  %v3366_v51 = vmax.f32 %v3098_v15, 0.0  ;;  %v3107_v15 = vpop.f32.mrb[228].mxu1 }
 0x440   : > { %v6493_v40 = vmax.f32 %v7243_v6, %v3380_v12  ;;  %v3579_v61 = vmax.f32 %v6384_v44, %v3491_v27  ;;  %v3385_v53 = vmax.f32 %v2771_v24, 0.0  ;;  %v7245_v19 = vmax.f32 %v5889_v10, 0.0 }
 0x441   : > { %v6498_v1 = vmax.f32 %v7244_v18, %v3381_v38  ;;  %v3622_v37 = vmax.f32 %v3576_v36, %v3577_v9  ;;  %v3100_v31 = vadd.f32 %v3099_v23, %v5411_v13  ;;  %v3102_v20 = vadd.f32 %v3101_v55, %v5403_v7  ;;  %v2774_v36 = vpop.f32.mrb[244].mxu0 }
 0x442   : > { %v6502_v3 = vmax.f32 %v7245_v19, %v3384_v46  ;;  %v3623_v32 = vmax.f32 %v3578_v21, %v3579_v61  ;;  %v7246_v5 = vmax.f32 %v5896_v29, 0.0  ;;  %v7247_v16 = vmax.f32 %v5900_v57, 0.0  ;;  %v2776_v8 = vpop.f32.mrb[245].mxu0 }
 0x443   : > { %v3104_v12 = vadd.f32 %v3103_v41, %v5411_v13  ;;  %v6515_v10 = vadd.f32 %v6045_v42, %v5403_v7  ;;  %3654 = vst [vmem:[%s6184_s28 + $0x90] sm:$0xff] %v3622_v37  ;;  %v3367_v28 = vmax.f32 %v3100_v31, 0.0  ;;  %v3370_v59 = vmax.f32 %v3102_v20, 0.0  ;;  %v2778_v38 = vpop.f32.mrb[246].mxu0 }
 0x444   : > { %v3494_v44 = vmax.f32 %v7246_v5, %v3366_v51  ;;  %v6510_v48 = vmax.f32 %v7247_v16, %v3385_v53  ;;  %v2775_v23 = vadd.f32 %v2774_v36, %v5363_v0  ;;  %v6521_v29 = vadd.f32 %v6056_v33, %v5411_v13  ;;  %3655 = vst [vmem:[%s6184_s28 + $0x98] sm:$0xff] %v3623_v32  ;;  %v2780_v46 = vpop.f32.mrb[247].mxu0  ;;  %v3109_v33 = vpop.f32.mrb[229].mxu1  ;;  %v7253_v5 = vld [vmem:[#allocation64_spill] sm:$0xff] }
 0x445   : > { %v3371_v26 = vmax.f32 %v3104_v12, 0.0  ;;  %v2777_v27 = vadd.f32 %v2776_v8, %v5365_v58  ;;  %v7248_v42 = vmax.f32 %v5907_v34, 0.0  ;;  %v7249_v55 = vmax.f32 %v5911_v2, 0.0  ;;  %v3111_v53 = vpop.f32.mrb[230].mxu1  ;;  %v7251_v2 = vld [vmem:[#allocation59_spill] sm:$0xff] }
 0x446   : > { %v3580_v57 = vmax.f32 %v6410_v14, %v3494_v44  ;;  %v3388_v21 = vmax.f32 %v2775_v23, 0.0  ;;  %v2779_v6 = vadd.f32 %v2778_v38, %v5363_v0  ;;  %v7250_v41 = vmax.f32 %v5918_v11, 0.0  ;;  %v3113_v32 = vpop.f32.mrb[231].mxu1  ;;  %v7258_v38 = vld [vmem:[#allocation102_spill] sm:$0xff] }
 0x447   : > { %v3495_v24 = vmax.f32 %v7248_v42, %v3367_v28  ;;  %v3498_v9 = vmax.f32 %v7249_v55, %v3370_v59  ;;  %v3389_v14 = vmax.f32 %v2777_v27, 0.0  ;;  %v3108_v18 = vadd.f32 %v3107_v15, %v5403_v7 }
 0x448   : > { %v3499_v61 = vmax.f32 %v7250_v41, %v3371_v26  ;;  %v2781_v51 = vadd.f32 %v2780_v46, %v5365_v58  ;;  %v7252_v19 = vmax.f32 %v7251_v2, 0.0  ;;  %v3392_v20 = vmax.f32 %v2779_v6, 0.0  ;;  %v7256_v26 = vld [vmem:[#allocation56_spill] sm:$0xff] }
 0x449   : > { %v3581_v34 = vmax.f32 %v6415_v43, %v3495_v24  ;;  %v3582_v37 = vmax.f32 %v6419_v39, %v3498_v9  ;;  %v7254_v44 = vmax.f32 %v7253_v5, 0.0  ;;  %v3374_v12 = vmax.f32 %v3108_v18, 0.0  ;;  %v7260_v46 = vld [vmem:[#allocation116_spill] sm:$0xff] }
 0x44a   : > { %v6539_v31 = vmax.f32 %v7252_v19, %v3388_v21  ;;  %v3583_v11 = vmax.f32 %v6427_v25, %v3499_v61  ;;  %v3393_v36 = vmax.f32 %v2781_v51, 0.0  ;;  %v7255_v43 = vmax.f32 %v5960_v63, 0.0  ;;  %v3117_v51 = vpop.f32.mrb[232].mxu1  ;;  %v7263_v2 = vld [vmem:[#allocation104_spill] sm:$0xff] }
 0x44b   : > { %v6544_v16 = vmax.f32 %v7254_v44, %v3389_v14  ;;  %v3624_v28 = vmax.f32 %v3580_v57, %v3581_v34  ;;  %v3110_v59 = vadd.f32 %v3109_v33, %v5411_v13  ;;  %v3112_v23 = vadd.f32 %v3111_v53, %v5403_v7  ;;  %v2784_v57 = vpop.f32.mrb[248].mxu0  ;;  %v7261_v53 = vld [vmem:[#allocation103_spill] sm:$0xff]  ;;  %v3119_v44 = vpop.f32.mrb[233].mxu1 }
 0x44c   : > { %v6548_v39 = vmax.f32 %v7255_v43, %v3392_v20  ;;  %v3625_v8 = vmax.f32 %v3582_v37, %v3583_v11  ;;  %v7257_v27 = vmax.f32 %v7256_v26, 0.0  ;;  %v7259_v15 = vmax.f32 %v7258_v38, 0.0  ;;  %v2786_v6 = vpop.f32.mrb[249].mxu0 }
 0x44d   : > { %v3114_v24 = vadd.f32 %v3113_v32, %v5411_v13  ;;  %v3294_v63 = vmax.f32 %v6515_v10, 0.0  ;;  %3656 = vst [vmem:[%s6184_s28 + $0xa0] sm:$0xff] %v3624_v28  ;;  %v3375_v55 = vmax.f32 %v3110_v59, 0.0  ;;  %v3378_v9 = vmax.f32 %v3112_v23, 0.0  ;;  %v2788_v18 = vpop.f32.mrb[250].mxu0  ;;  %v3121_v23 = vpop.f32.mrb[234].mxu1 }
 0x44e   : > { %v3502_v25 = vmax.f32 %v7257_v27, %v3374_v12  ;;  %v6556_v42 = vmax.f32 %v7259_v15, %v3393_v36  ;;  %v2785_v21 = vadd.f32 %v2784_v57, %v5363_v0  ;;  %v6564_v33 = vadd.f32 %v7260_v46, %v5403_v7  ;;  %3657 = vst [vmem:[%s6184_s28 + $0xa8] sm:$0xff] %v3625_v8  ;;  %v2790_v5 = vpop.f32.mrb[251].mxu0  ;;  %v7265_v12 = vld [vmem:[#allocation105_spill] sm:$0xff]  ;;  %v7267_v27 = vld [vmem:[#allocation106_spill] sm:$0xff] }
 0x44f   : > { %v3379_v61 = vmax.f32 %v3114_v24, 0.0  ;;  %v2787_v14 = vadd.f32 %v2786_v6, %v5365_v58  ;;  %v7262_v34 = vmax.f32 %v7261_v53, 0.0  ;;  %v7264_v19 = vmax.f32 %v7263_v2, 0.0  ;;  %v3123_v24 = vpop.f32.mrb[235].mxu1  ;;  %v7275_v2 = vld [vmem:[#allocation110_spill] sm:$0xff] }
 0x450   : > { %v3584_v41 = vmax.f32 %v6453_v47, %v3502_v25  ;;  %v3396_v32 = vmax.f32 %v2785_v21, 0.0  ;;  %v2789_v11 = vadd.f32 %v2788_v18, %v5363_v0  ;;  %v7266_v36 = vmax.f32 %v7265_v12, 0.0  ;;  %v7314_v10 = vld [vmem:[#allocation62_spill] sm:$0xff] }
 0x451   : > { %v3503_v37 = vmax.f32 %v7262_v34, %v3375_v55  ;;  %v3506_v20 = vmax.f32 %v7264_v19, %v3378_v9  ;;  %v3397_v47 = vmax.f32 %v2787_v14, 0.0  ;;  %v3118_v43 = vadd.f32 %v3117_v51, %v5403_v7  ;;  %v7269_v55 = vld [vmem:[#allocation107_spill] sm:$0xff]  ;;  %v7271_v14 = vld [vmem:[#allocation108_spill] sm:$0xff]  ;;  %v7273_v34 = vld [vmem:[#allocation109_spill] sm:$0xff] }
 0x452   : > { %v3507_v28 = vmax.f32 %v7266_v36, %v3379_v61  ;;  %v2791_v59 = vadd.f32 %v2790_v5, %v5365_v58  ;;  %v7268_v25 = vmax.f32 %v7267_v27, 0.0  ;;  %v3400_v15 = vmax.f32 %v2789_v11, 0.0  ;;  %v7278_v27 = vld [vmem:[#allocation111_spill] sm:$0xff] }
 0x453   : > { %v3585_v8 = vmax.f32 %v6458_v45, %v3503_v37  ;;  %v3586_v26 = vmax.f32 %v6462_v54, %v3506_v20  ;;  %v7270_v9 = vmax.f32 %v7269_v55, 0.0  ;;  %v3382_v6 = vmax.f32 %v3118_v43, 0.0 }
 0x454   : > { %v6582_v38 = vmax.f32 %v7268_v25, %v3396_v32  ;;  %v3587_v57 = vmax.f32 %v6470_v4, %v3507_v28  ;;  %v3401_v46 = vmax.f32 %v2791_v59, 0.0  ;;  %v7272_v45 = vmax.f32 %v7271_v14, 0.0  ;;  %v7277_v28 = vld [vmem:[#allocation119_spill] sm:$0xff]  ;;  %v7282_v14 = vld [vmem:[#allocation113_spill] sm:$0xff] }
 0x455   : > { %v6587_v21 = vmax.f32 %v7270_v9, %v3397_v47  ;;  %v3626_v61 = vmax.f32 %v3584_v41, %v3585_v8  ;;  %v3120_v18 = vadd.f32 %v3119_v44, %v5411_v13  ;;  %v3122_v51 = vadd.f32 %v3121_v23, %v5403_v7  ;;  %v2794_v41 = vpop.f32.mrb[252].mxu0 }
 0x456   : > { %v6591_v54 = vmax.f32 %v7272_v45, %v3400_v15  ;;  %v3627_v53 = vmax.f32 %v3586_v26, %v3587_v57  ;;  %v7274_v37 = vmax.f32 %v7273_v34, 0.0  ;;  %v7276_v19 = vmax.f32 %v7275_v2, 0.0  ;;  %v2796_v36 = vpop.f32.mrb[253].mxu0  ;;  %v3127_v26 = vpop.f32.mrb[236].mxu1  ;;  %v7284_v2 = vld [vmem:[#allocation114_spill] sm:$0xff] }
 0x457   : > { %v3124_v32 = vadd.f32 %v3123_v24, %v5411_v13  ;;  %v3295_v11 = vmax.f32 %v6521_v29, 0.0  ;;  %3658 = vst [vmem:[%s6184_s28 + $0xb0] sm:$0xff] %v3626_v61  ;;  %v3383_v5 = vmax.f32 %v3120_v18, 0.0  ;;  %v3386_v12 = vmax.f32 %v3122_v51, 0.0  ;;  %v2798_v8 = vpop.f32.mrb[254].mxu0  ;;  %v7280_v24 = vld [vmem:[#allocation112_spill] sm:$0xff] }
 0x458   : > { %v3510_v4 = vmax.f32 %v7274_v37, %v3382_v6  ;;  %v6599_v20 = vmax.f32 %v7276_v19, %v3401_v46  ;;  %v2795_v44 = vadd.f32 %v2794_v41, %v5363_v0  ;;  %v6607_v47 = vadd.f32 %v7277_v28, %v5411_v13  ;;  %3659 = vst [vmem:[%s6184_s28 + $0xb8] sm:$0xff] %v3627_v53  ;;  %v2800_v46 = vpop.f32.mrb[255].mxu0  ;;  %v3129_v61 = vpop.f32.mrb[237].mxu1 }
 0x459   : > { %v3387_v59 = vmax.f32 %v3124_v32, 0.0  ;;  %v2797_v23 = vadd.f32 %v2796_v36, %v5365_v58  ;;  %v7279_v25 = vmax.f32 %v7278_v27, 0.0  ;;  %v7281_v57 = vmax.f32 %v7280_v24, 0.0  ;;  %v3131_v34 = vpop.f32.mrb[238].mxu1  ;;  %v7292_v24 = vld [vmem:[#allocation120_spill] sm:$0xff] }
 0x45a   : > { %v3588_v43 = vmax.f32 %v6493_v40, %v3510_v4  ;;  %v3404_v9 = vmax.f32 %v2795_v44, 0.0  ;;  %v2799_v6 = vadd.f32 %v2798_v8, %v5363_v0  ;;  %v7283_v45 = vmax.f32 %v7282_v14, 0.0  ;;  %v3133_v41 = vpop.f32.mrb[239].mxu1 }
 0x45b   : > { %v3511_v15 = vmax.f32 %v7279_v25, %v3383_v5  ;;  %v3514_v55 = vmax.f32 %v7281_v57, %v3386_v12  ;;  %v3405_v40 = vmax.f32 %v2797_v23, 0.0  ;;  %v3128_v51 = vadd.f32 %v3127_v26, %v5403_v7  ;;  %v7286_v12 = vld [vmem:[#allocation115_spill] sm:$0xff]  ;;  %v7288_v23 = vld [vmem:[#allocation117_spill] sm:$0xff]  ;;  %v7290_v25 = vld [vmem:[#allocation118_spill] sm:$0xff] }
 0x45c   : > { %v3515_v18 = vmax.f32 %v7283_v45, %v3387_v59  ;;  %v2801_v53 = vadd.f32 %v2800_v46, %v5365_v58  ;;  %v7285_v19 = vmax.f32 %v7284_v2, 0.0  ;;  %v3408_v0 = vmax.f32 %v2799_v6, 0.0 }
 0x45d   : > { %v3589_v37 = vmax.f32 %v6498_v1, %v3511_v15  ;;  %v3590_v4 = vmax.f32 %v6502_v3, %v3514_v55  ;;  %v7287_v44 = vmax.f32 %v7286_v12, 0.0  ;;  %v3390_v28 = vmax.f32 %v3128_v51, 0.0 }
 0x45e   : > { %v6625_v32 = vmax.f32 %v7285_v19, %v3404_v9  ;;  %v3591_v5 = vmax.f32 %v6510_v48, %v3515_v18  ;;  %v3409_v58 = vmax.f32 %v2801_v53, 0.0  ;;  %v7289_v1 = vmax.f32 %v7288_v23, 0.0 }
 0x45f   : > { %v6630_v36 = vmax.f32 %v7287_v44, %v3405_v40  ;;  %v3628_v59 = vmax.f32 %v3588_v43, %v3589_v37  ;;  %v3130_v8 = vadd.f32 %v3129_v61, %v5411_v13  ;;  %v3132_v26 = vadd.f32 %v3131_v34, %v5403_v7  ;;  %v2837_v43 = vpop.f32.mrb[0].mxu0  ;;  %v3137_v37 = vpop.f32.mrb[240].mxu1 }
 0x460   : > { %v6634_v3 = vmax.f32 %v7289_v1, %v3408_v0  ;;  %v3629_v27 = vmax.f32 %v3590_v4, %v3591_v5  ;;  %v7291_v15 = vmax.f32 %v7290_v25, 0.0  ;;  %v7293_v57 = vmax.f32 %v7292_v24, 0.0  ;;  %v2839_v45 = vpop.f32.mrb[1].mxu0  ;;  %v7294_v4 = vld [vmem:[#allocation95_spill] sm:$0xff]  ;;  %v7296_v0 = vld [vmem:[#allocation57_spill] sm:$0xff] }
 0x461   : > { %v3134_v9 = vadd.f32 %v3133_v41, %v5411_v13  ;;  %v3298_v6 = vmax.f32 %v6564_v33, 0.0  ;;  %3660 = vst [vmem:[%s6184_s28 + $0xc0] sm:$0xff] %v3628_v59  ;;  %v3391_v46 = vmax.f32 %v3130_v8, 0.0  ;;  %v3394_v14 = vmax.f32 %v3132_v26, 0.0  ;;  %v2841_v34 = vpop.f32.mrb[2].mxu0  ;;  %v7298_v59 = vld [vmem:[#allocation96_spill] sm:$0xff] }
 0x462   : > { %v3518_v48 = vmax.f32 %v7291_v15, %v3390_v28  ;;  %v6642_v55 = vmax.f32 %v7293_v57, %v3409_v58  ;;  %v2838_v61 = vadd.f32 %v2837_v43, %v5403_v7  ;;  %v3299_v18 = vmax.f32 %v6607_v47, 0.0  ;;  %3661 = vst [vmem:[%s6184_s28 + $0xc8] sm:$0xff] %v3629_v27  ;;  %v2843_v28 = vpop.f32.mrb[3].mxu0  ;;  %v3139_v58 = vpop.f32.mrb[241].mxu1 }
 0x463   : > { %v3395_v51 = vmax.f32 %v3134_v9, 0.0  ;;  %v2840_v53 = vadd.f32 %v2839_v45, %v5411_v13  ;;  %v7295_v2 = vmax.f32 %v7294_v4, 0.0  ;;  %v7297_v41 = vmax.f32 %v7296_v0, 0.0  ;;  %v3141_v27 = vpop.f32.mrb[242].mxu1  ;;  %v7303_v4 = vld [vmem:[#allocation58_spill] sm:$0xff] }
 0x464   : > { %v3592_v40 = vmax.f32 %v6539_v31, %v3518_v48  ;;  %v3158_v12 = vmax.f32 %v2838_v61, 0.0  ;;  %v2842_v44 = vadd.f32 %v2841_v34, %v5403_v7  ;;  %v7299_v23 = vmax.f32 %v7298_v59, 0.0  ;;  %v3143_v9 = vpop.f32.mrb[243].mxu1  ;;  %v7302_v34 = vld [vmem:[#allocation99_spill] sm:$0xff]  ;;  %v7307_v59 = vld [vmem:[#allocation61_spill] sm:$0xff] }
 0x465   : > { %v3519_v19 = vmax.f32 %v7295_v2, %v3391_v46  ;;  %v3522_v5 = vmax.f32 %v7297_v41, %v3394_v14  ;;  %v3159_v31 = vmax.f32 %v2840_v53, 0.0  ;;  %v3138_v8 = vadd.f32 %v3137_v37, %v5403_v7 }
 0x466   : > { %v3523_v1 = vmax.f32 %v7299_v23, %v3395_v51  ;;  %v2844_v26 = vadd.f32 %v2843_v28, %v5411_v13  ;;  %v7300_v48 = vmax.f32 %v6343_v30, 0.0  ;;  %v3162_v57 = vmax.f32 %v2842_v44, 0.0  ;;  %v7301_v51 = vld [vmem:[#allocation98_spill] sm:$0xff]  ;;  %v7306_v44 = vld [vmem:[#allocation101_spill] sm:$0xff] }
 0x467   : > { %v3593_v25 = vmax.f32 %v6544_v16, %v3519_v19  ;;  %v3594_v15 = vmax.f32 %v6548_v39, %v3522_v5  ;;  %v3415_v46 = vmax.f32 %v3159_v31, %v3287_v50  ;;  %v3398_v14 = vmax.f32 %v3138_v8, 0.0  ;;  %v2847_v50 = vpop.f32.mrb[4].mxu0  ;;  %v7305_v19 = vld [vmem:[#allocation100_spill] sm:$0xff] }
 0x468   : > { %v3414_v24 = vmax.f32 %v3158_v12, %v7300_v48  ;;  %v3595_v43 = vmax.f32 %v6556_v42, %v3523_v1  ;;  %v3163_v61 = vmax.f32 %v2844_v26, 0.0  ;;  %v3418_v16 = vmax.f32 %v3162_v57, %v3290_v35  ;;  %v2849_v35 = vpop.f32.mrb[5].mxu0 }
 0x469   : > { %v3630_v45 = vmax.f32 %v3592_v40, %v3593_v25  ;;  %v3140_v30 = vadd.f32 %v3139_v58, %v5411_v13  ;;  %v3541_v37 = vmax.f32 %v7302_v34, %v3415_v46  ;;  %v7304_v2 = vmax.f32 %v7303_v4, 0.0  ;;  %v3147_v58 = vpop.f32.mrb[244].mxu1 }
 0x46a   : > { %v3540_v53 = vmax.f32 %v7301_v51, %v3414_v24  ;;  %v3631_v39 = vmax.f32 %v3594_v15, %v3595_v43  ;;  %v3419_v52 = vmax.f32 %v3163_v61, %v3291_v60  ;;  %v3542_v40 = vmax.f32 %v7305_v19, %v3418_v16  ;;  %v2851_v60 = vpop.f32.mrb[6].mxu0  ;;  %v3149_v25 = vpop.f32.mrb[245].mxu1  ;;  %v7309_v43 = vld [vmem:[#allocation97_spill] sm:$0xff]  ;;  %v7311_v61 = vld [vmem:[#allocation44_spill] sm:$0xff] }
 0x46b   : > { %v3526_v42 = vmax.f32 %v7304_v2, %v3398_v14  ;;  %3662 = vst [vmem:[%s6184_s28 + $0xd0] sm:$0xff] %v3630_v45  ;;  %v3399_v0 = vmax.f32 %v3140_v30, 0.0  ;;  %v3142_v41 = vadd.f32 %v3141_v27, %v5403_v7  ;;  %v3144_v56 = vadd.f32 %v3143_v9, %v5411_v13  ;;  %v2853_v27 = vpop.f32.mrb[7].mxu0  ;;  %v3151_v57 = vpop.f32.mrb[246].mxu1 }
 0x46c   : > { %3663 = vst [vmem:[%s6184_s28 + $0xd8] sm:$0xff] %v3631_v39  ;;  %v3604_v5 = vmax.f32 %v3540_v53, %v3541_v37  ;;  %v3543_v28 = vmax.f32 %v7306_v44, %v3419_v52  ;;  %v2848_v62 = vadd.f32 %v2847_v50, %v5403_v7  ;;  %v7308_v23 = vmax.f32 %v7307_v59, 0.0  ;;  %v3153_v16 = vpop.f32.mrb[247].mxu1  ;;  %v7313_v52 = vld [vmem:[#allocation60_spill] sm:$0xff] }
 0x46d   : > { %v3596_v12 = vmax.f32 %v6582_v38, %v3526_v42  ;;  %v3402_v31 = vmax.f32 %v3142_v41, 0.0  ;;  %v3403_v8 = vmax.f32 %v3144_v56, 0.0  ;;  %v2850_v26 = vadd.f32 %v2849_v35, %v5411_v13  ;;  %v7316_v56 = vld [vmem:[#allocation53_spill] sm:$0xff]  ;;  %v7317_v35 = vld [vmem:[#allocation54_spill] sm:$0xff] }
 0x46e   : > { %v3527_v1 = vmax.f32 %v7308_v23, %v3399_v0  ;;  %3636 = vst [vmem:[%s6184_s28] sm:$0xff] %v3604_v5  ;;  %v3605_v15 = vmax.f32 %v3542_v40, %v3543_v28  ;;  %v3166_v48 = vmax.f32 %v2848_v62, 0.0  ;;  %v2852_v38 = vadd.f32 %v2851_v60, %v5403_v7  ;;  %v7318_v60 = vld [vmem:[#allocation55_spill] sm:$0xff] }
 0x46f   : > { %v3148_v24 = vadd.f32 %v3147_v58, %v5403_v7  ;;  %v7310_v46 = vmax.f32 %v7309_v43, 0.0  ;;  %v7312_v45 = vmax.f32 %v7311_v61, 0.0  ;;  %v3167_v53 = vmax.f32 %v2850_v26, 0.0 }
 0x470   : > { %v3597_v9 = vmax.f32 %v6587_v21, %v3527_v1  ;;  %3637 = vst [vmem:[%s6184_s28 + $0x8] sm:$0xff] %v3605_v15  ;;  %v3422_v30 = vmax.f32 %v3166_v48, %v3294_v63  ;;  %v3170_v39 = vmax.f32 %v2852_v38, 0.0  ;;  %v2854_v37 = vadd.f32 %v2853_v27, %v5411_v13 }
 0x471   : > { %v3530_v14 = vmax.f32 %v7310_v46, %v3402_v31  ;;  %v3531_v51 = vmax.f32 %v7312_v45, %v3403_v8  ;;  %v3406_v34 = vmax.f32 %v3148_v24, 0.0  ;;  %v3423_v42 = vmax.f32 %v3167_v53, %v3295_v11 }
 0x472   : > { %v3632_v4 = vmax.f32 %v3596_v12, %v3597_v9  ;;  %v3544_v50 = vmax.f32 %v7313_v52, %v3422_v30  ;;  %v3426_v19 = vmax.f32 %v3170_v39, %v3298_v6  ;;  %v7315_v63 = vmax.f32 %v7314_v10, 0.0 }
 0x473   : > { %v3598_v21 = vmax.f32 %v6591_v54, %v3530_v14  ;;  %v3599_v2 = vmax.f32 %v6599_v20, %v3531_v51  ;;  %v3171_v0 = vmax.f32 %v2854_v37, 0.0  ;;  %v3545_v54 = vmax.f32 %v7316_v56, %v3423_v42 }
 0x474   : > { %v3534_v40 = vmax.f32 %v7315_v63, %v3406_v34  ;;  %3664 = vst [vmem:[%s6184_s28 + $0xe0] sm:$0xff] %v3632_v4  ;;  %v3150_v20 = vadd.f32 %v3149_v25, %v5411_v13  ;;  %v3152_v29 = vadd.f32 %v3151_v57, %v5403_v7  ;;  %v3546_v11 = vmax.f32 %v7317_v35, %v3426_v19 }
 0x475   : > { %v3633_v41 = vmax.f32 %v3598_v21, %v3599_v2  ;;  %v3427_v33 = vmax.f32 %v3171_v0, %v3299_v18  ;;  %v3154_v6 = vadd.f32 %v3153_v16, %v5411_v13  ;;  %v3282_v12 = vmax.f32 %v6289_v49, 0.0 }
 0x476   : > { %v3600_v5 = vmax.f32 %v6625_v32, %v3534_v40  ;;  %v3606_v44 = vmax.f32 %v3544_v50, %v3545_v54  ;;  %v3407_v28 = vmax.f32 %v3150_v20, 0.0  ;;  %v3410_v62 = vmax.f32 %v3152_v29, 0.0 }
 0x477   : > { %3665 = vst [vmem:[%s6184_s28 + $0xe8] sm:$0xff] %v3633_v41  ;;  %v3283_v7 = vmax.f32 %v6304_v17, 0.0  ;;  %v3547_v58 = vmax.f32 %v7318_v60, %v3427_v33  ;;  %v3411_v59 = vmax.f32 %v3154_v6, 0.0  ;;  %v7319_v47 = vmax.f32 %v6254_v22, 0.0 }
 0x478   : > { %3638 = vst [vmem:[%s6184_s28 + $0x10] sm:$0xff] %v3606_v44  ;;  %v3538_v13 = vmax.f32 %v3282_v12, %v3410_v62 }
 0x479   : > { %v3535_v32 = vmax.f32 %v7319_v47, %v3407_v28  ;;  %v3607_v18 = vmax.f32 %v3546_v11, %v3547_v58  ;;  %v3539_v49 = vmax.f32 %v3283_v7, %v3411_v59 }
 0x47a   : > { %v3602_v17 = vmax.f32 %v6634_v3, %v3538_v13 }
 0x47b   : > { %v3601_v23 = vmax.f32 %v6630_v36, %v3535_v32  ;;  %3639 = vst [vmem:[%s6184_s28 + $0x18] sm:$0xff] %v3607_v18  ;;  %v3603_v1 = vmax.f32 %v6642_v55, %v3539_v49 }
 0x47d   : > { %v3634_v31 = vmax.f32 %v3600_v5, %v3601_v23  ;;  %v3635_v22 = vmax.f32 %v3602_v17, %v3603_v1 }
 0x47f   : > { %3666 = vst [vmem:[%s6184_s28 + $0xf0] sm:$0xff] %v3634_v31  ;;  %3667 = vst [vmem:[%s6184_s28 + $0xf8] sm:$0xff] %v3635_v22 }
 0x480   : > { %4466 = shalt.err (!%p4463_p3)
}
 0x481   : > { %s4467_s15 = scalar_lea.hbm %s6734_s6, 4096  ;;  %s4471_s8 = scalar_lea.hbm %s6787_s5, 8192 }
 0x482   : > { %p4468_p5 = scmp.ne.s32.totalorder %s6734_s6, %s4467_s15  ;;  %p4472_p12 = scmp.lt.u32.totalorder %s6734_s6, %s6787_s5 }
 0x483   : > { %p4473_p13 = scmp.lt.u32.totalorder %s4471_s8, %s4467_s15  ;;  %p4475_p8 = scmp.lt.u32.totalorder %s4467_s15, %s6734_s6 }
 0x484   : > { %p4469_p6 = pnand %p4468_p5, %p7320_p7 }
 0x485   : > { %p4474_p0 = por %p4473_p13, %p4472_p12 }
 0x486   : > { %p4470_p11 = pneg %p4469_p6 }
 0x487   : > { %p4476_p9 = por %p4475_p8, %p4474_p0 }
 0x489   : > { %p4477_p10 = pnand %p4476_p9, %p4470_p11 }
 0x48b   : > { %4480 = shalt.err (!%p4477_p10)
}
 0x48c   : > { %s4545_s12 = smov 128   ;;  %s4546_s1 = smov 8  }
 0x48d   : > { %4046 = dma.vmem_to_hbm [thread:$0]  (%p7320_p7), %s6736_s7, 4096, %s6734_s6, %s3669_s22, %s4545_s12, %s4545_s12, %s4546_s1  }
 0x48e PF: > { %s7321_s13 = sld [smem:[#allocation19_spill]]  ;;  %s7322_s18 = sld [smem:[#allocation22_spill]] }
 0x494   : > { %s3697_s28 = sand.u32 1, %s7321_s13   ;;  %p7323_p1 = scmp.ne.s32.totalorder %s7322_s18, 0 }
 0x495   : > { %s3698_s29 = scalar_lea.sflag [#allocation4], %s3697_s28 }
 0x496   : > { %p4062_p2 = pnand %p3799_p4, %p7323_p1 }
 0x498   : > { %4510 = dma.done.wait (!%p4062_p2), %s3698_s29, 4096  }
 0x499   : > { %4512 = vsyncadd (!%p4062_p2), %s3698_s29, 4294963200  ;;  %s7324_s21 = sld [smem:[#allocation20_spill]]  ;;  %s7325_s23 = sld [smem:[#allocation21_spill]] }
 0x49a   : > { %s7326_s18 = smov %s4519_s19  ;;  %s7327_s19 = smov %s4523_s20 }
 0x49f   : > { %p20_p3 = scmp.ge.s32.totalorder %s7324_s21, 4   ;;  %s7328_s20 = smov %s7325_s23 }
 0x4a1   :  { %22 = sbr.rel (!%p20_p3) target bundleno = 9 (0x9), region = 106 }
 0x4a8   :  { %3703 = vsyncpa [#allocation3], 1 }
 0x4a9   :  { %3705 = vsyncpa [#allocation3 + $0x1], 1 }
 0x4aa   :  { %3706 = vsyncpa [#allocation6], 1 }
 0x4ab   :  { %3707 = vsyncpa [#allocation9], 1 }
 0x4ac   :  { %3708 = vsyncpa [#allocation4], 1 }
 0x4ad   :  { %3710 = vsyncpa [#allocation4 + $0x1], 1 }

</bundles_post_ra>
